<compile_context>
chip_gen: v6e
topology: v6e:2x2x1
jax: 0.10.0
libtpu: 0.0.40
codegen_flags: <defaults>
</compile_context>

<pallas_src>
import functools

import jax
import jax.numpy as jnp
from jax.experimental import pallas as pl
from jax.experimental.pallas import tpu as pltpu


def _rc1d_kernel(x_ref, slab_ref, o_ref, *, hid, row_stride, row_len):
    """One grid step: tm rows packed along the lane axis (W = tm * row_stride).

    slab layout (f32, block-invariant, resident in VMEM):
      slab[0:H,  0:3H]   conv2 taps  [left | center | right]
      slab[H:2H, 0:3H]   conv3 taps  [left | center | right]
      slab[0:H,  3H+0]   conv1 weight   slab[0:H, 3H+1] conv1 bias
      slab[0:H,  3H+2]   conv2 bias     slab[0:H, 3H+3] conv3 bias
      slab[2H,   0:H]    conv4 weight   slab[2H,  H]    conv4 bias
    """
    H = hid
    W = x_ref.shape[-1]

    x_row = x_ref[0]                                    # (1, W)

    # Position-within-row along the packed lane axis (replicate-pad masks).
    lane = jax.lax.broadcasted_iota(jnp.int32, (1, W), 1)
    if (row_stride & (row_stride - 1)) == 0:            # power-of-two fast path
        pos = lane & (row_stride - 1)
    else:
        pos = lane % row_stride
    # Hoisted + broadcast once; reused by both k=3 conv layers.
    left_edge = jnp.broadcast_to(pos == 0, (H, W))
    right_edge = jnp.broadcast_to(pos == row_len - 1, (H, W))

    # Static slices of the resident weight slab (no runtime cost to form).
    w1 = slab_ref[0:H, 3 * H + 0:3 * H + 1]             # (H, 1)
    b1 = slab_ref[0:H, 3 * H + 1:3 * H + 2]
    b2 = slab_ref[0:H, 3 * H + 2:3 * H + 3]
    b3 = slab_ref[0:H, 3 * H + 3:3 * H + 4]
    w4 = slab_ref[2 * H:2 * H + 1, 0:H]                 # (1, H)
    b4 = slab_ref[2 * H:2 * H + 1, H:H + 1]             # (1, 1)

    # conv1: pointwise 1 -> H channels (broadcast multiply + bias).
    h = w1 * x_row + b1                                 # (H, W)

    def conv_k3(h, row0, b):
        # Conv1d(H, H, k=3, padding=1, padding_mode='replicate') as three
        # accumulating (H, H) @ (H, W) MXU matmuls on static weight slices —
        # no materialized (3H, W) operand and `h` itself is never copied.
        # Lane rotations go to the XLU; edge replication is one cheap select.
        x_prev = jnp.where(left_edge, h, pltpu.roll(h, 1, axis=1))
        x_next = jnp.where(right_edge, h, pltpu.roll(h, W - 1, axis=1))
        w_l = slab_ref[row0:row0 + H, 0:H]
        w_c = slab_ref[row0:row0 + H, H:2 * H]
        w_r = slab_ref[row0:row0 + H, 2 * H:3 * H]
        y = jnp.dot(w_c, h, preferred_element_type=jnp.float32)
        y = y + jnp.dot(w_l, x_prev, preferred_element_type=jnp.float32)
        y = y + jnp.dot(w_r, x_next, preferred_element_type=jnp.float32)
        return y + b

    h = jnp.maximum(conv_k3(h, 0, b2) + h, 0.0)         # relu(conv2(x) + x)
    h = jnp.maximum(conv_k3(h, H, b3) + h, 0.0)         # relu(conv3(x) + x)

    # conv4: pointwise H -> 1 channel.
    y = jnp.dot(w4, h, preferred_element_type=jnp.float32) + b4
    o_ref[0] = y.astype(o_ref.dtype)                    # (1, W)


def rc_1d_pallas(x, params, *, rows_per_step=None):
    """x: (batch, num_node, feature_dim) float32.  params in torch layout."""
    (w1, b1, w2, b2, w3, b3, w4, b4) = params
    B, N, L = x.shape
    H = w1.shape[0]
    M = B * N

    # Pad the row length to a lane-dense multiple of 128. Pad lanes never
    # feed real lanes: the replicate-pad right edge is masked at the
    # *original* row length, so lane L-1 always takes its own value.
    L_pad = ((L + 127) // 128) * 128

    # Rows packed per grid step. Small problems -> single grid step (a second
    # step on single-TC v5e/v6e is pure overhead). Large problems -> 128
    # rows/step: each (H, W) f32 temp is ~2 MiB at H=32/L=128, so a handful of
    # live temps stays well inside even v7x's 64 MiB VMEM.
    if rows_per_step is None:
        rows_per_step = min(M, 128)
    tm = max(1, min(rows_per_step, M))
    grid_m = pl.cdiv(M, tm)
    m_pad = grid_m * tm
    W = tm * L_pad

    x_flat = x.reshape(M, L).astype(jnp.float32)
    if L_pad != L:
        x_flat = jnp.pad(x_flat, ((0, 0), (0, L_pad - L)))
    if m_pad != M:                                      # pad ragged remainder rows
        x_flat = jnp.pad(x_flat, ((0, m_pad - M), (0, 0)))
    x_packed = x_flat.reshape(grid_m, 1, W)

    # Pack ALL weights/biases into one block-invariant f32 slab: one BlockSpec
    # and one resident double-buffered VMEM buffer instead of ~10.
    R = 2 * H + 8
    C = ((max(3 * H + 4, H + 2) + 127) // 128) * 128
    w2_f = jnp.transpose(w2, (0, 2, 1)).reshape(H, 3 * H).astype(jnp.float32)
    w3_f = jnp.transpose(w3, (0, 2, 1)).reshape(H, 3 * H).astype(jnp.float32)
    slab = jnp.zeros((R, C), jnp.float32)
    slab = slab.at[0:H, 0:3 * H].set(w2_f)
    slab = slab.at[H:2 * H, 0:3 * H].set(w3_f)
    slab = slab.at[0:H, 3 * H + 0].set(w1.reshape(H).astype(jnp.float32))
    slab = slab.at[0:H, 3 * H + 1].set(b1.reshape(H).astype(jnp.float32))
    slab = slab.at[0:H, 3 * H + 2].set(b2.reshape(H).astype(jnp.float32))
    slab = slab.at[0:H, 3 * H + 3].set(b3.reshape(H).astype(jnp.float32))
    slab = slab.at[2 * H, 0:H].set(w4.reshape(H).astype(jnp.float32))
    slab = slab.at[2 * H, H].set(b4.reshape(()).astype(jnp.float32))

    # TODO(synk): on v6e/v7x a bf16 activation pipeline (cast once after conv1,
    # keep f32 MXU accumulation) halves store/VMEM bytes; kept f32 here so one
    # kernel is bit-accurate on every generation (v5e has no bf16 VALU).

    out = pl.pallas_call(
        functools.partial(_rc1d_kernel, hid=H, row_stride=L_pad, row_len=L),
        out_shape=jax.ShapeDtypeStruct((grid_m, 1, W), jnp.float32),
        grid=(grid_m,),
        in_specs=[
            pl.BlockSpec((1, 1, W), lambda m: (m, 0, 0)),   # tm packed rows/step
            pl.BlockSpec((R, C), lambda m: (0, 0)),         # weight slab (resident)
        ],
        out_specs=pl.BlockSpec((1, 1, W), lambda m: (m, 0, 0)),
        compiler_params=pltpu.CompilerParams(
            dimension_semantics=("parallel",),
            vmem_limit_bytes=48 * 1024 * 1024),
    )(x_packed, slab)

    return out.reshape(m_pad, L_pad)[:M, :L].reshape(B, N, L)


def rc_1d_ref(x, params):
    """Pure-JAX reference matching the PyTorch forward exactly."""
    (w1, b1, w2, b2, w3, b3, w4, b4) = params
    B, N, L = x.shape
    H = w1.shape[0]
    h = x.reshape(B * N, 1, L)
    h = w1.reshape(1, H, 1) * h + b1.reshape(1, H, 1)     # conv1, (M, H, L)

    def conv_k3(h, w, b):
        hp = jnp.concatenate([h[:, :, :1], h, h[:, :, -1:]], axis=2)  # replicate pad
        y = (jnp.einsum('oc,mcl->mol', w[:, :, 0], hp[:, :, 0:L])
             + jnp.einsum('oc,mcl->mol', w[:, :, 1], hp[:, :, 1:L + 1])
             + jnp.einsum('oc,mcl->mol', w[:, :, 2], hp[:, :, 2:L + 2]))
        return y + b.reshape(1, H, 1)

    out = conv_k3(h, w2, b2)
    h = jax.nn.relu(out + h)
    out = conv_k3(h, w3, b3)
    h = jax.nn.relu(out + h)
    y = jnp.einsum('c,mcl->ml', w4.reshape(H), h) + b4.reshape(1, 1)  # conv4
    return y.reshape(B, N, L)


if __name__ == "__main__":
    key = jax.random.PRNGKey(0)
    B, N, L, H = 2, 4, 128, 32   # batch, num_node, feature_dim, hid_channel
    ks = jax.random.split(key, 9)

    def u(k, shape, fan_in):
        bound = 1.0 / (fan_in ** 0.5)
        return jax.random.uniform(k, shape, jnp.float32, -bound, bound)

    x = jax.random.normal(ks[0], (B, N, L), jnp.float32)
    params = (
        u(ks[1], (H, 1, 1), 1),      u(ks[2], (H,), 1),        # conv1 (out,in,k), bias
        u(ks[3], (H, H, 3), H * 3),  u(ks[4], (H,), H * 3),    # conv2
        u(ks[5], (H, H, 3), H * 3),  u(ks[6], (H,), H * 3),    # conv3
        u(ks[7], (1, H, 1), H),      u(ks[8], (1,), H),        # conv4
    )

    out = jax.block_until_ready(rc_1d_pallas(x, params))
    ref = jax.block_until_ready(rc_1d_ref(x, params))

    assert out.shape == (B, N, L), out.shape
    err = float(jnp.max(jnp.abs(out - ref)))
    assert jnp.allclose(out, ref, rtol=1e-3, atol=1e-3), f"max abs err {err}"
    print("KERNEL_OK")
</pallas_src>

<mosaic_0001>
module attributes {stable_mosaic.version = 11 : i64} {
  func.func @_rc1d_kernel(%arg0: i32, %arg1: memref<1x1x1024xf32, #tpu.memory_space<vmem>>, %arg2: memref<72x128xf32, #tpu.memory_space<vmem>>, %arg3: memref<1x1x1024xf32, #tpu.memory_space<vmem>>) attributes {dimension_semantics = [#tpu.dimension_semantics<parallel>], iteration_bounds = array<i64: 1>, scalar_prefetch = 0 : i64, scratch_operands = 0 : i64, tpu.core_type = #tpu.core_type<tc>, window_params = [{transform_indices = @transform_0, window_bounds = array<i64: 1, 1, 1024>}, {pipeline_mode = #tpu.pipeline_mode<synchronous>, transform_indices = @transform_1, window_bounds = array<i64: 72, 128>}, {transform_indices = @transform_2, window_bounds = array<i64: 1, 1, 1024>}]} {
    %c0 = arith.constant 0 : index
    %c0_0 = arith.constant 0 : index
    %c0_1 = arith.constant 0 : index
    %0 = vector.load %arg1[%c0, %c0_0, %c0_1] : memref<1x1x1024xf32, #tpu.memory_space<vmem>>, vector<1x1x1024xf32>
    %1 = vector.shape_cast %0 : vector<1x1x1024xf32> to vector<1x1024xf32>
    %2 = tpu.iota {dimensions = array<i32: 1>} : vector<1x1024xi32>
    %c127_i32 = arith.constant 127 : i32
    %3 = vector.broadcast %c127_i32 : i32 to vector<1x1024xi32>
    %4 = arith.andi %2, %3 : vector<1x1024xi32>
    %c0_i32 = arith.constant 0 : i32
    %5 = vector.broadcast %c0_i32 : i32 to vector<1x1024xi32>
    %6 = arith.cmpi eq, %4, %5 : vector<1x1024xi32>
    %7 = vector.shape_cast %6 : vector<1x1024xi1> to vector<1x1024xi1>
    %8 = vector.broadcast %7 : vector<1x1024xi1> to vector<32x1024xi1>
    %c127_i32_2 = arith.constant 127 : i32
    %9 = vector.broadcast %c127_i32_2 : i32 to vector<1x1024xi32>
    %10 = arith.cmpi eq, %4, %9 : vector<1x1024xi32>
    %11 = vector.shape_cast %10 : vector<1x1024xi1> to vector<1x1024xi1>
    %12 = vector.broadcast %11 : vector<1x1024xi1> to vector<32x1024xi1>
    %c0_3 = arith.constant 0 : index
    %c96 = arith.constant 96 : index
    %13 = vector.load %arg2[%c0_3, %c96] : memref<72x128xf32, #tpu.memory_space<vmem>>, vector<32x1xf32>
    %c0_4 = arith.constant 0 : index
    %c97 = arith.constant 97 : index
    %14 = vector.load %arg2[%c0_4, %c97] : memref<72x128xf32, #tpu.memory_space<vmem>>, vector<32x1xf32>
    %c0_5 = arith.constant 0 : index
    %c98 = arith.constant 98 : index
    %15 = vector.load %arg2[%c0_5, %c98] : memref<72x128xf32, #tpu.memory_space<vmem>>, vector<32x1xf32>
    %c0_6 = arith.constant 0 : index
    %c99 = arith.constant 99 : index
    %16 = vector.load %arg2[%c0_6, %c99] : memref<72x128xf32, #tpu.memory_space<vmem>>, vector<32x1xf32>
    %c64 = arith.constant 64 : index
    %c0_7 = arith.constant 0 : index
    %17 = vector.load %arg2[%c64, %c0_7] : memref<72x128xf32, #tpu.memory_space<vmem>>, vector<1x32xf32>
    %c64_8 = arith.constant 64 : index
    %c32 = arith.constant 32 : index
    %18 = vector.load %arg2[%c64_8, %c32] : memref<72x128xf32, #tpu.memory_space<vmem>>, vector<1x1xf32>
    %19 = vector.broadcast %13 : vector<32x1xf32> to vector<32x1024xf32>
    %20 = vector.broadcast %1 : vector<1x1024xf32> to vector<32x1024xf32>
    %21 = arith.mulf %19, %20 : vector<32x1024xf32>
    %22 = vector.broadcast %14 : vector<32x1xf32> to vector<32x1024xf32>
    %23 = arith.addf %21, %22 : vector<32x1024xf32>
    %c1_i32 = arith.constant 1 : i32
    %24 = tpu.dynamic_rotate %23 by %c1_i32 dim 1 : vector<32x1024xf32>, i32 -> vector<32x1024xf32>
    %25 = arith.select %8, %23, %24 : vector<32x1024xi1>, vector<32x1024xf32>
    %c1023_i32 = arith.constant 1023 : i32
    %26 = tpu.dynamic_rotate %23 by %c1023_i32 dim 1 : vector<32x1024xf32>, i32 -> vector<32x1024xf32>
    %27 = arith.select %12, %23, %26 : vector<32x1024xi1>, vector<32x1024xf32>
    %c0_9 = arith.constant 0 : index
    %c0_10 = arith.constant 0 : index
    %28 = vector.load %arg2[%c0_9, %c0_10] : memref<72x128xf32, #tpu.memory_space<vmem>>, vector<32x32xf32>
    %c0_11 = arith.constant 0 : index
    %c32_12 = arith.constant 32 : index
    %29 = vector.load %arg2[%c0_11, %c32_12] : memref<72x128xf32, #tpu.memory_space<vmem>>, vector<32x32xf32>
    %c0_13 = arith.constant 0 : index
    %c64_14 = arith.constant 64 : index
    %30 = vector.load %arg2[%c0_13, %c64_14] : memref<72x128xf32, #tpu.memory_space<vmem>>, vector<32x32xf32>
    %cst = arith.constant dense<0.000000e+00> : vector<32x1024xf32>
    %31 = tpu.matmul %29, %23, %cst {dimension_numbers = #tpu.dot_dimension_numbers<[1], [0], [0], [1], [0, 0, 1, 1], [], []>} : vector<32x32xf32>, vector<32x1024xf32>, vector<32x1024xf32> -> vector<32x1024xf32>
    %cst_15 = arith.constant dense<0.000000e+00> : vector<32x1024xf32>
    %32 = tpu.matmul %28, %25, %cst_15 {dimension_numbers = #tpu.dot_dimension_numbers<[1], [0], [0], [1], [0, 0, 1, 1], [], []>} : vector<32x32xf32>, vector<32x1024xf32>, vector<32x1024xf32> -> vector<32x1024xf32>
    %33 = arith.addf %31, %32 : vector<32x1024xf32>
    %cst_16 = arith.constant dense<0.000000e+00> : vector<32x1024xf32>
    %34 = tpu.matmul %30, %27, %cst_16 {dimension_numbers = #tpu.dot_dimension_numbers<[1], [0], [0], [1], [0, 0, 1, 1], [], []>} : vector<32x32xf32>, vector<32x1024xf32>, vector<32x1024xf32> -> vector<32x1024xf32>
    %35 = arith.addf %33, %34 : vector<32x1024xf32>
    %36 = vector.broadcast %15 : vector<32x1xf32> to vector<32x1024xf32>
    %37 = arith.addf %35, %36 : vector<32x1024xf32>
    %38 = arith.addf %37, %23 : vector<32x1024xf32>
    %cst_17 = arith.constant 0.000000e+00 : f32
    %39 = vector.broadcast %cst_17 : f32 to vector<32x1024xf32>
    %40 = arith.maximumf %38, %39 : vector<32x1024xf32>
    %c1_i32_18 = arith.constant 1 : i32
    %41 = tpu.dynamic_rotate %40 by %c1_i32_18 dim 1 : vector<32x1024xf32>, i32 -> vector<32x1024xf32>
    %42 = arith.select %8, %40, %41 : vector<32x1024xi1>, vector<32x1024xf32>
    %c1023_i32_19 = arith.constant 1023 : i32
    %43 = tpu.dynamic_rotate %40 by %c1023_i32_19 dim 1 : vector<32x1024xf32>, i32 -> vector<32x1024xf32>
    %44 = arith.select %12, %40, %43 : vector<32x1024xi1>, vector<32x1024xf32>
    %c32_20 = arith.constant 32 : index
    %c0_21 = arith.constant 0 : index
    %45 = vector.load %arg2[%c32_20, %c0_21] : memref<72x128xf32, #tpu.memory_space<vmem>>, vector<32x32xf32>
    %c32_22 = arith.constant 32 : index
    %c32_23 = arith.constant 32 : index
    %46 = vector.load %arg2[%c32_22, %c32_23] : memref<72x128xf32, #tpu.memory_space<vmem>>, vector<32x32xf32>
    %c32_24 = arith.constant 32 : index
    %c64_25 = arith.constant 64 : index
    %47 = vector.load %arg2[%c32_24, %c64_25] : memref<72x128xf32, #tpu.memory_space<vmem>>, vector<32x32xf32>
    %cst_26 = arith.constant dense<0.000000e+00> : vector<32x1024xf32>
    %48 = tpu.matmul %46, %40, %cst_26 {dimension_numbers = #tpu.dot_dimension_numbers<[1], [0], [0], [1], [0, 0, 1, 1], [], []>} : vector<32x32xf32>, vector<32x1024xf32>, vector<32x1024xf32> -> vector<32x1024xf32>
    %cst_27 = arith.constant dense<0.000000e+00> : vector<32x1024xf32>
    %49 = tpu.matmul %45, %42, %cst_27 {dimension_numbers = #tpu.dot_dimension_numbers<[1], [0], [0], [1], [0, 0, 1, 1], [], []>} : vector<32x32xf32>, vector<32x1024xf32>, vector<32x1024xf32> -> vector<32x1024xf32>
    %50 = arith.addf %48, %49 : vector<32x1024xf32>
    %cst_28 = arith.constant dense<0.000000e+00> : vector<32x1024xf32>
    %51 = tpu.matmul %47, %44, %cst_28 {dimension_numbers = #tpu.dot_dimension_numbers<[1], [0], [0], [1], [0, 0, 1, 1], [], []>} : vector<32x32xf32>, vector<32x1024xf32>, vector<32x1024xf32> -> vector<32x1024xf32>
    %52 = arith.addf %50, %51 : vector<32x1024xf32>
    %53 = vector.broadcast %16 : vector<32x1xf32> to vector<32x1024xf32>
    %54 = arith.addf %52, %53 : vector<32x1024xf32>
    %55 = arith.addf %54, %40 : vector<32x1024xf32>
    %cst_29 = arith.constant 0.000000e+00 : f32
    %56 = vector.broadcast %cst_29 : f32 to vector<32x1024xf32>
    %57 = arith.maximumf %55, %56 : vector<32x1024xf32>
    %cst_30 = arith.constant dense<0.000000e+00> : vector<1x1024xf32>
    %58 = tpu.matmul %17, %57, %cst_30 {dimension_numbers = #tpu.dot_dimension_numbers<[1], [0], [0], [1], [0, 0, 1, 1], [], []>} : vector<1x32xf32>, vector<32x1024xf32>, vector<1x1024xf32> -> vector<1x1024xf32>
    %59 = vector.broadcast %18 : vector<1x1xf32> to vector<1x1024xf32>
    %60 = arith.addf %58, %59 : vector<1x1024xf32>
    %c0_31 = arith.constant 0 : index
    %c0_32 = arith.constant 0 : index
    %c0_33 = arith.constant 0 : index
    %61 = vector.load %arg3[%c0_31, %c0_32, %c0_33] : memref<1x1x1024xf32, #tpu.memory_space<vmem>>, vector<1x1x1024xf32>
    %62 = vector.shape_cast %61 : vector<1x1x1024xf32> to vector<1x1024xf32>
    %63 = vector.shape_cast %60 : vector<1x1024xf32> to vector<1x1x1024xf32>
    tpu.vector_store %arg3[%c0_31, %c0_32, %c0_33], %63 {strides = array<i32>} : memref<1x1x1024xf32, #tpu.memory_space<vmem>>, vector<1x1x1024xf32>,
    return
  }
  func.func @transform_0(%arg0: i32) -> (i32, i32, i32) {
    %c0_i32 = arith.constant 0 : i32
    %c0_i32_0 = arith.constant 0 : i32
    %c0_i32_1 = arith.constant 0 : i32
    return %arg0, %c0_i32, %c0_i32_0 : i32, i32, i32
  }
  func.func @transform_1(%arg0: i32) -> (i32, i32) {
    %c0_i32 = arith.constant 0 : i32
    %c0_i32_0 = arith.constant 0 : i32
    %c0_i32_1 = arith.constant 0 : i32
    return %c0_i32, %c0_i32_0 : i32, i32
  }
  func.func @transform_2(%arg0: i32) -> (i32, i32, i32) {
    %c0_i32 = arith.constant 0 : i32
    %c0_i32_0 = arith.constant 0 : i32
    %c0_i32_1 = arith.constant 0 : i32
    return %arg0, %c0_i32, %c0_i32_0 : i32, i32, i32
  }
}

</mosaic_0001>

<bundles_post_ra>
// kernel: tpu_custom_call.1
= control target key start
LH: loop header
LB: loop body
LE: loop exit
PB: predicated region body
PF: predicated region fallthrough
CT: control target
= control target key end

     0   :  { %7 = vsyncpa [#allocation3], 0  ;;  %s6299_s0 = inlined_call_operand.hbm [shape: f32[1,1,1024], index: 0, kind: input, shape index: {}]   ;;  %s6300_s1 = inlined_call_operand.hbm [shape: f32[72,128], index: 1, kind: input, shape index: {}]   ;;  %s6301_s2 = inlined_call_operand.hbm [shape: f32[1,1,1024], index: 2, kind: output, shape index: {}]  }
   0x1   :  { %8 = vsyncpa [#allocation6], 0 }
   0x2   :  { %9 = vsyncpa [#allocation4], 0  ;;  %s3840_s9 = smov [#allocation2]   ;;  %s3841_s11 = smov [#allocation5]  }
   0x3   :  { %s16_s10 = sshll.u32 %s3840_s9, 4  ;;  %s25_s12 = sshll.u32 %s3841_s11, 4  ;;  %s17_s10 = int_to_ptr.vmem [resolvable:$true] %s16_s10  ;;  %s26_s12 = int_to_ptr.vmem [resolvable:$true] %s25_s12 }
   0x4   :  { %s3782_s13 = scalar_lea.vmem %s17_s10, 128  ;;  %p3787_p1 = scmp.lt.s32.totalorder %s17_s10, %s17_s10 }
   0x5   :  { %p3783_p0 = scmp.ne.s32.totalorder %s17_s10, %s3782_s13  ;;  %p3788_p2 = scmp.lt.s32.totalorder %s3782_s13, %s3782_s13 }
   0x7   :  { %p3789_p3 = por %p3788_p2, %p3787_p1 }
   0x9   :  { %p3790_p4 = pnand %p3789_p3, %p3783_p0 }
   0xb   :  { %3793 = shalt.err (!%p3790_p4)
}
   0xc   :  { %19 = dma.hbm_to_vmem [thread:$0]  %s6299_s0, 128, %s17_s10, [#allocation3]  }
   0xd   :  { %s3802_s16 = scalar_lea.vmem %s26_s12, 1152  ;;  %p3807_p6 = scmp.lt.s32.totalorder %s26_s12, %s26_s12 }
   0xe   :  { %p3803_p5 = scmp.ne.s32.totalorder %s26_s12, %s3802_s16  ;;  %p3808_p7 = scmp.lt.s32.totalorder %s3802_s16, %s3802_s16 }
  0x10   :  { %p3809_p8 = por %p3808_p7, %p3807_p6 }
  0x12   :  { %p3810_p9 = pnand %p3809_p8, %p3803_p5 }
  0x14   :  { %3813 = shalt.err (!%p3810_p9)
}
  0x15   :  { %s3842_s17 = smov 128   ;;  %s3843_s18 = smov 8  }
  0x16   :  { %31 = dma.hbm_to_vmem [thread:$0]  %s6300_s1, 1152, %s26_s12, [#allocation6], %s3842_s17, %s3842_s17, %s3843_s18  }
  0x17   :  { %3834 = dma.done.wait [#allocation3], 128  }
  0x18   :  { %3835 = vsyncadd [#allocation3], 4294967168 }
  0x19   :  { %3836 = dma.done.wait [#allocation6], 1152  }
  0x1a   :  { %3837 = vsyncadd [#allocation6], 4294966144  ;;  %v3844_v0 = vmov 97   ;;  %v3845_v1 = vmov 96   ;;  %v3877_v2 = vld [vmem:[#allocation5 + $0x18] sm:$0xff]  ;;  %v3881_v3 = vld [vmem:[#allocation5 + $0x10] sm:$0xff]  ;;  %v39_v6 = vlaneseq }
  0x1b   :  { %3760 = vset.pattern.permute.xlu1 %v3844_v0  ;;  %3759 = vset.pattern.permute.xlu0 %v3845_v1  ;;  %v3883_v4 = vld [vmem:[#allocation5 + $0x8] sm:$0xff]  ;;  %v3887_v5 = vld [vmem:[#allocation5] sm:$0xff]  ;;  %s3846_s0 = smov 96   ;;  %s3847_s1 = smov 64   ;;  %v3912_v10 = vld [vmem:[#allocation2] sm:$0xff]  ;;  %v6304_v56 = vmov 0.0  }
  0x1c   :  { %215 = vperm.xlu1 %3760, %v3877_v2   ;;  %126 = vperm.xlu0 %3759, %v3877_v2   ;;  %v3908_v7 = vshrl.u32 %v39_v6, 7  ;;  %s3848_s21 = smov 1   ;;  %s3850_s22 = smov 127   ;;  %vm6378_vm4 = vcmask 261120  }
  0x1d   :  { %670 = vmatprep.mubr.f32.mxu1 %v6304_v56  ;;  %581 = vmatprep.mubr.f32.mxu0 %v6304_v56  ;;  %s3855_s23 = smov [#allocation7]  }
  0x1e   :  { %6436 = vst [vmem:[#allocation11_spill] sm:$0xff] %v3908_v7  ;;  %v144_v8 = vsub.s32 3, %v3908_v7  ;;  %v140_v9 = vsub.s32 2, %v3908_v7  ;;  %v136_v11 = vsub.s32 1, %v3908_v7  ;;  %v132_v36 = vsub.s32 0, %v3908_v7  ;;  %s3633_s24 = sshll.u32 %s3855_s23, 4  ;;  %s3634_s24 = int_to_ptr.vmem [resolvable:$true] %s3633_s24 }
  0x1f   :  { %v156_v40 = vsub.s32 6, %v3908_v7  ;;  %v160_v44 = vsub.s32 7, %v3908_v7  ;;  %v152_v52 = vsub.s32 5, %v3908_v7  ;;  %s3814_s25 = scalar_lea.vmem %s3634_s24, 128  ;;  %p3819_p11 = scmp.lt.s32.totalorder %s3634_s24, %s3634_s24 }
  0x20   :  { %3761 = vset.pattern.permute.xlu1 %v3845_v1  ;;  %121 = vperm.xlu0 %3759, %v3881_v3   ;;  %v145_v12 = vrot.slane %v3912_v10, %v144_v8  ;;  %v141_v13 = vrot.slane %v3912_v10, %v140_v9  ;;  %v137_v14 = vrot.slane %v3912_v10, %v136_v11  ;;  %p3815_p10 = scmp.ne.s32.totalorder %s3634_s24, %s3814_s25  ;;  %p3820_p12 = scmp.lt.s32.totalorder %s3814_s25, %s3814_s25 }
  0x21   :  { %116 = vperm.xlu1 %3761, %v3883_v4   ;;  %v133_v43 = vrot.slane %v3912_v10, %v132_v36  ;;  %v157_v48 = vrot.slane %v3912_v10, %v156_v40  ;;  %v161_v51 = vrot.slane %v3912_v10, %v160_v44  ;;  %v153_v59 = vrot.slane %v3912_v10, %v152_v52 }
  0x22   :  { %p3821_p13 = por %p3820_p12, %p3819_p11 }
  0x24   :  { %3762 = vset.pattern.permute.xlu0 %v3844_v0  ;;  %p3822_p0 = pnand %p3821_p13, %p3815_p10 }
  0x25   :  { %211 = vperm.xlu0 %3762, %v3881_v3   ;;  %111 = vperm.xlu1 %3761, %v3887_v5  }
  0x29   :  { %203 = vperm.xlu0 %3762, %v3887_v5   ;;  %3763 = vset.pattern.permute.xlu1 %v3844_v0 }
  0x2a   :  { %207 = vperm.xlu1 %3763, %v3883_v4  }
  0x2d   :  { %875 = vrot.lane.b32.xlu0 %v3883_v4, %s3846_s0 }
  0x2e   :  { %873 = vrot.lane.b32.xlu1 %v3887_v5, %s3846_s0 }
  0x31   :  { %879 = vrot.lane.b32.xlu0 %v3877_v2, %s3846_s0 }
  0x32   :  { %877 = vrot.lane.b32.xlu1 %v3881_v3, %s3846_s0 }
  0x35   :  { %1247 = vrot.lane.b32.xlu0 %v3883_v4, %s3847_s1 }
  0x36   :  { %1245 = vrot.lane.b32.xlu1 %v3887_v5, %s3847_s1 }
  0x39   :  { %1249 = vrot.lane.b32.xlu0 %v3881_v3, %s3847_s1 }
  0x97   :  { %v3918_v15 = vpop.permute.xlu1 %215  ;;  %v3920_v16 = vpop.permute.xlu0 %126 }
  0x98   :  { %v197_v17 = vmul.f32 %v145_v12, %v3920_v16  ;;  %v196_v18 = vmul.f32 %v141_v13, %v3920_v16  ;;  %v195_v21 = vmul.f32 %v137_v14, %v3920_v16  ;;  %v194_v50 = vmul.f32 %v133_v43, %v3920_v16 }
  0x99   :  { %v200_v55 = vmul.f32 %v157_v48, %v3920_v16  ;;  %v201_v58 = vmul.f32 %v161_v51, %v3920_v16  ;;  %v199_v62 = vmul.f32 %v153_v59, %v3920_v16 }
  0x9a   :  { %v3925_v19 = vadd.f32 %v3918_v15, %v197_v17  ;;  %v3928_v20 = vadd.f32 %v3918_v15, %v196_v18  ;;  %v3940_v24 = vadd.f32 %v3918_v15, %v195_v21  ;;  %v4016_v57 = vadd.f32 %v3918_v15, %v194_v50 }
  0x9b   :  { %v3931_v22 = vpop.permute.xlu0 %121  ;;  %v4025_v60 = vadd.f32 %v3918_v15, %v200_v55  ;;  %v4028_v61 = vadd.f32 %v3918_v15, %v201_v58  ;;  %v4040_v1 = vadd.f32 %v3918_v15, %v199_v62 }
  0x9c   :  { %6437 = vst [vmem:[#allocation12_spill] sm:$0xff] %v3925_v19  ;;  %6438 = vst [vmem:[#allocation13_spill] sm:$0xff] %v3928_v20  ;;  %v3933_v23 = vpop.permute.xlu1 %116  ;;  %280 = vrot.lane.b32.xlu0 %v3925_v19, %s3848_s21  ;;  %272 = vrot.lane.b32.xlu1 %v3928_v20, %s3848_s21  ;;  %v188_v25 = vmul.f32 %v141_v13, %v3931_v22  ;;  %v189_v26 = vmul.f32 %v145_v12, %v3931_v22 }
  0x9d   :  { %6439 = vst [vmem:[#allocation14_spill] sm:$0xff] %v3940_v24  ;;  %v187_v31 = vmul.f32 %v137_v14, %v3931_v22  ;;  %v180_v32 = vmul.f32 %v141_v13, %v3933_v23  ;;  %v181_v37 = vmul.f32 %v145_v12, %v3933_v23  ;;  %v179_v38 = vmul.f32 %v137_v14, %v3933_v23 }
  0x9e   :  { %6443 = vst [vmem:[#allocation18_spill] sm:$0xff] %v4016_v57  ;;  %6444 = vst [vmem:[#allocation19_spill] sm:$0xff] %v4025_v60  ;;  %v186_v63 = vmul.f32 %v133_v43, %v3931_v22  ;;  %v192_v8 = vmul.f32 %v157_v48, %v3931_v22  ;;  %v193_v9 = vmul.f32 %v161_v51, %v3931_v22 }
  0x9f   :  { %6445 = vst [vmem:[#allocation20_spill] sm:$0xff] %v4028_v61  ;;  %6446 = vst [vmem:[#allocation21_spill] sm:$0xff] %v4040_v1  ;;  %v184_v21 = vmul.f32 %v157_v48, %v3933_v23 }
  0xa0   :  { %v3944_v27 = vpop.permute.xlu0 %211  ;;  %v3946_v28 = vpop.permute.xlu1 %111  ;;  %264 = vrot.lane.b32.xlu1 %v3940_v24, %s3848_s21 }
  0xa1   :  { %v3951_v29 = vadd.f32 %v3944_v27, %v188_v25  ;;  %v3954_v30 = vadd.f32 %v3944_v27, %v189_v26  ;;  %v3965_v34 = vadd.f32 %v3944_v27, %v187_v31  ;;  %v172_v45 = vmul.f32 %v141_v13, %v3946_v28 }
  0xa2   :  { %v173_v46 = vmul.f32 %v145_v12, %v3946_v28  ;;  %v171_v53 = vmul.f32 %v137_v14, %v3946_v28  ;;  %v4037_v0 = vadd.f32 %v3944_v27, %v186_v63  ;;  %v4049_v11 = vadd.f32 %v3944_v27, %v192_v8 }
  0xa3   :  { %6440 = vst [vmem:[#allocation15_spill] sm:$0xff] %v3951_v29  ;;  %6441 = vst [vmem:[#allocation16_spill] sm:$0xff] %v3954_v30  ;;  %270 = vrot.lane.b32.xlu0 %v3951_v29, %s3848_s21  ;;  %v4052_v12 = vadd.f32 %v3944_v27, %v193_v9  ;;  %v178_v13 = vmul.f32 %v133_v43, %v3933_v23  ;;  %v191_v14 = vmul.f32 %v153_v59, %v3931_v22 }
  0xa4   :  { %278 = vrot.lane.b32.xlu1 %v3954_v30, %s3848_s21  ;;  %v3981_v41 = vpop.permute.xlu0 %203  ;;  %6447 = vst [vmem:[#allocation22_spill] sm:$0xff] %v4049_v11  ;;  %v185_v25 = vmul.f32 %v161_v51, %v3933_v23  ;;  %v170_v36 = vmul.f32 %v133_v43, %v3946_v28  ;;  %v177_v43 = vmul.f32 %v161_v51, %v3946_v28 }
  0xa5   :  { %v3962_v33 = vpop.permute.xlu1 %207  ;;  %v3995_v47 = vadd.f32 %v3981_v41, %v172_v45  ;;  %v3999_v49 = vadd.f32 %v3981_v41, %v173_v46  ;;  %v4010_v54 = vadd.f32 %v3981_v41, %v171_v53  ;;  %6448 = vst [vmem:[#allocation23_spill] sm:$0xff] %v4052_v12  ;;  %v4064_v18 = vadd.f32 %v3944_v27, %v191_v14 }
  0xa6   :  { %v3968_v35 = vadd.f32 %v3962_v33, %v180_v32  ;;  %v3978_v39 = vadd.f32 %v3962_v33, %v181_v37  ;;  %v3984_v42 = vadd.f32 %v3962_v33, %v179_v38  ;;  %v4061_v17 = vadd.f32 %v3962_v33, %v178_v13 }
  0xa7   :  { %262 = vrot.lane.b32.xlu0 %v3965_v34, %s3848_s21  ;;  %6449 = vst [vmem:[#allocation24_spill] sm:$0xff] %v4064_v18  ;;  %v4073_v26 = vadd.f32 %v3962_v33, %v184_v21  ;;  %v4076_v31 = vadd.f32 %v3962_v33, %v185_v25  ;;  %v148_v32 = vsub.s32 4, %v3908_v7  ;;  %v183_v37 = vmul.f32 %v153_v59, %v3933_v23 }
  0xa8   :  { %268 = vrot.lane.b32.xlu1 %v3968_v35, %s3848_s21  ;;  %6442 = vst [vmem:[#allocation17_spill] sm:$0xff] %v3978_v39  ;;  %v4086_v38 = vadd.f32 %v3981_v41, %v170_v36  ;;  %v176_v45 = vmul.f32 %v157_v48, %v3946_v28  ;;  %v4102_v50 = vadd.f32 %v3981_v41, %v177_v43  ;;  %v6467_v13 = vmov 0 }
  0xa9   :  { %6450 = vst [vmem:[#allocation25_spill] sm:$0xff] %v4073_v26  ;;  %6451 = vst [vmem:[#allocation26_spill] sm:$0xff] %v4076_v31  ;;  %v4089_v40 = vadd.f32 %v3962_v33, %v183_v37  ;;  %v149_v44 = vrot.slane %v3912_v10, %v148_v32  ;;  %v175_v10 = vmul.f32 %v153_v59, %v3946_v28  ;;  %v6470_v37 = vmov 0 }
  0xaa   :  { %v4099_v46 = vadd.f32 %v3981_v41, %v176_v45  ;;  %6454 = vst [vmem:[#allocation29_spill] sm:$0xff] %v4102_v50 }
  0xab   :  { %276 = vrot.lane.b32.xlu0 %v3978_v39, %s3848_s21  ;;  %6452 = vst [vmem:[#allocation27_spill] sm:$0xff] %v4089_v40  ;;  %v198_v52 = vmul.f32 %v149_v44, %v3920_v16  ;;  %v4111_v48 = vadd.f32 %v3981_v41, %v175_v10  ;;  %v190_v53 = vmul.f32 %v149_v44, %v3931_v22 }
  0xac   :  { %260 = vrot.lane.b32.xlu1 %v3984_v42, %s3848_s21  ;;  %6453 = vst [vmem:[#allocation28_spill] sm:$0xff] %v4099_v46  ;;  %v182_v16 = vmul.f32 %v149_v44, %v3933_v23  ;;  %v4164_v23 = vpop.permute.xlu0 %875 }
  0xad   :  { %6455 = vst [vmem:[#allocation30_spill] sm:$0xff] %v4111_v48  ;;  %v4114_v51 = vadd.f32 %v3918_v15, %v198_v52  ;;  %v4123_v55 = vadd.f32 %v3944_v27, %v190_v53  ;;  %v174_v15 = vmul.f32 %v149_v44, %v3946_v28  ;;  %v4176_v28 = vpop.permute.xlu1 %873 }
  0xae   :  { %v4126_v58 = vadd.f32 %v3962_v33, %v182_v16  ;;  %v4183_v33 = vand.u32 127, %v39_v6 }
  0xaf   :  { %266 = vrot.lane.b32.xlu0 %v3995_v47, %s3848_s21  ;;  %6456 = vst [vmem:[#allocation31_spill] sm:$0xff] %v4114_v51  ;;  %6457 = vst [vmem:[#allocation32_spill] sm:$0xff] %v4123_v55  ;;  %v4134_v22 = vadd.f32 %v3981_v41, %v174_v15 }
  0xb0   :  { %274 = vrot.lane.b32.xlu1 %v3999_v49, %s3848_s21  ;;  %6458 = vst [vmem:[#allocation33_spill] sm:$0xff] %v4126_v58  ;;  %v4174_v27 = vpop.permute.xlu0 %879  ;;  %6461 = vst [vmem:[#allocation36_spill] sm:$0xff] %v4183_v33  ;;  %v4194_v62 = vadd.s32 384, %v4183_v33  ;;  %v4206_v9 = vadd.s32 256, %v4183_v33  ;;  %vm6341_vm0 = vcmp.lt.s32.totalorder %v4183_v33, 1  ;;  %v4289_v56 = vadd.s32 896, %v4183_v33 }
  0xb1   :  { %6459 = vst [vmem:[#allocation34_spill] sm:$0xff] %v4134_v22  ;;  %6460 = vst [vmem:[#allocation35_spill] sm:$0xff] %v4174_v27  ;;  %v4187_v59 = vpop.permute.xlu1 %877  ;;  %vm6340_vm5 = vcmp.eq.s32.totalorder %v4183_v33, 0  ;;  %vm6377_vm10 = vcmp.lt.s32.totalorder %v4183_v33, 127  ;;  %vm6342_vm15 = vcmp.eq.s32.totalorder %v4183_v33, 127 }
  0xb2   :  { %6463 = vst [vmem:[#allocation38_spill] sm:$0xff] %v4187_v59  ;;  %v6303_v8 = vand.u32 127, %v4194_v62  ;;  %6466 = vst [vmem:[#allocation41_spill] sm:$0xff] %v4206_v9  ;;  %v6302_v14 = vand.u32 127, %v4206_v9 }
  0xb3   :  { %258 = vrot.lane.b32.xlu0 %v4010_v54, %s3848_s21  ;;  %6474 = vst [vmem:[#allocation45_spill] sm:$0xff] %v4289_v56 }
  0xb4   :  { %256 = vrot.lane.b32.xlu1 %v4016_v57, %s3848_s21  ;;  %v4185_v41 = vpop.permute.xlu0 %1247  ;;  %vm4215_vm1 = vcmp.eq.s32.totalorder %v6303_v8, 0  ;;  %vm4234_vm2 = vcmp.eq.s32.totalorder %v6302_v14, 0 }
  0xb5   :  { %6462 = vst [vmem:[#allocation37_spill] sm:$0xff] %v4185_v41  ;;  %v4202_v63 = vpop.permute.xlu1 %1245  ;;  %v6468_v13 = vsel %vm4215_vm1, 4294967295, %v6467_v13  ;;  %v6471_v37 = vsel %vm4234_vm2, 4294967295, %v6470_v37 }
  0xb6   :  { %6465 = vst [vmem:[#allocation40_spill] sm:$0xff] %v4202_v63  ;;  %6469 = vst [vmem:[#allocation42_spill] sm:$0xff] %v6468_v13  ;;  %v6480_v63 = vmov 0 }
  0xb7   :  { %304 = vrot.lane.b32.xlu0 %v4025_v60, %s3848_s21  ;;  %6472 = vst [vmem:[#allocation43_spill] sm:$0xff] %v6471_v37 }
  0xb8   :  { %312 = vrot.lane.b32.xlu1 %v4028_v61, %s3848_s21  ;;  %v4200_v6 = vpop.permute.xlu0 %1249 }
  0xb9   :  { %6464 = vst [vmem:[#allocation39_spill] sm:$0xff] %v4200_v6  ;;  %v4309_v6 = vadd.s32 768, %v4183_v33 }
  0xbb   :  { %254 = vrot.lane.b32.xlu0 %v4037_v0, %s3848_s21  ;;  %6478 = vst [vmem:[#allocation47_spill] sm:$0xff] %v4309_v6 }
  0xbc   :  { %296 = vrot.lane.b32.xlu1 %v4040_v1, %s3848_s21 }
  0xbf   :  { %302 = vrot.lane.b32.xlu0 %v4049_v11, %s3848_s21 }
  0xc0   :  { %310 = vrot.lane.b32.xlu1 %v4052_v12, %s3848_s21 }
  0xc3   :  { %252 = vrot.lane.b32.xlu0 %v4061_v17, %s3848_s21 }
  0xc4   :  { %294 = vrot.lane.b32.xlu1 %v4064_v18, %s3848_s21 }
  0xc7   :  { %300 = vrot.lane.b32.xlu0 %v4073_v26, %s3848_s21 }
  0xc8   :  { %308 = vrot.lane.b32.xlu1 %v4076_v31, %s3848_s21 }
  0xcb   :  { %250 = vrot.lane.b32.xlu0 %v4086_v38, %s3848_s21 }
  0xcc   :  { %292 = vrot.lane.b32.xlu1 %v4089_v40, %s3848_s21 }
  0xcf   :  { %298 = vrot.lane.b32.xlu0 %v4099_v46, %s3848_s21 }
  0xd0   :  { %306 = vrot.lane.b32.xlu1 %v4102_v50, %s3848_s21 }
  0xd3   :  { %290 = vrot.lane.b32.xlu0 %v4111_v48, %s3848_s21 }
  0xd4   :  { %288 = vrot.lane.b32.xlu1 %v4114_v51, %s3848_s21 }
  0xd7   :  { %286 = vrot.lane.b32.xlu0 %v4123_v55, %s3848_s21 }
  0xd8   :  { %284 = vrot.lane.b32.xlu1 %v4126_v58, %s3848_s21 }
  0xdb   :  { %282 = vrot.lane.b32.xlu0 %v4134_v22, %s3848_s21 }
  0xdc   :  { %409 = vrot.lane.b32.xlu1 %v3925_v19, %s3850_s22 }
  0xdf   :  { %417 = vrot.lane.b32.xlu0 %v4114_v51, %s3850_s22 }
  0xe0   :  { %401 = vrot.lane.b32.xlu1 %v3928_v20, %s3850_s22 }
  0xe3   :  { %407 = vrot.lane.b32.xlu0 %v3954_v30, %s3850_s22 }
  0xe4   :  { %415 = vrot.lane.b32.xlu1 %v4123_v55, %s3850_s22 }
  0xe7   :  { %399 = vrot.lane.b32.xlu0 %v3951_v29, %s3850_s22 }
  0xe8   :  { %405 = vrot.lane.b32.xlu1 %v3978_v39, %s3850_s22 }
  0xeb   :  { %413 = vrot.lane.b32.xlu0 %v4126_v58, %s3850_s22 }
  0xec   :  { %397 = vrot.lane.b32.xlu1 %v3968_v35, %s3850_s22 }
  0xef   :  { %403 = vrot.lane.b32.xlu0 %v3999_v49, %s3850_s22 }
  0xf0   :  { %411 = vrot.lane.b32.xlu1 %v4134_v22, %s3850_s22 }
  0xf3   :  { %395 = vrot.lane.b32.xlu0 %v3995_v47, %s3850_s22 }
  0xf4   :  { %393 = vrot.lane.b32.xlu1 %v3940_v24, %s3850_s22 }
  0xf7   :  { %385 = vrot.lane.b32.xlu0 %v4016_v57, %s3850_s22 }
  0xf8   :  { %441 = vrot.lane.b32.xlu1 %v4028_v61, %s3850_s22 }
  0xfb   :  { %391 = vrot.lane.b32.xlu0 %v3965_v34, %s3850_s22 }
  0xfc   :  { %433 = vrot.lane.b32.xlu1 %v4025_v60, %s3850_s22 }
  0xff   :  { %383 = vrot.lane.b32.xlu0 %v4037_v0, %s3850_s22 }
 0x100   :  { %439 = vrot.lane.b32.xlu1 %v4052_v12, %s3850_s22 }
 0x103   :  { %431 = vrot.lane.b32.xlu0 %v4049_v11, %s3850_s22 }
 0x104   :  { %389 = vrot.lane.b32.xlu1 %v3984_v42, %s3850_s22 }
 0x107   :  { %437 = vrot.lane.b32.xlu0 %v4076_v31, %s3850_s22 }
 0x108   :  { %381 = vrot.lane.b32.xlu1 %v4061_v17, %s3850_s22 }
 0x10b   :  { %429 = vrot.lane.b32.xlu0 %v4073_v26, %s3850_s22 }
 0x10c   :  { %387 = vrot.lane.b32.xlu1 %v4010_v54, %s3850_s22 }
 0x10e   :  { %v4220_v21 = vpop.permute.xlu0 %280  ;;  %v273_v25 = vpop.permute.xlu1 %272 }
 0x10f   :  { %435 = vrot.lane.b32.xlu0 %v4102_v50, %s3850_s22  ;;  %v334_v32 = vsel %vm6341_vm0, %v273_v25, %v4220_v21 }
 0x110   :  { %379 = vrot.lane.b32.xlu1 %v4086_v38, %s3850_s22  ;;  %v374_v36 = vsel %vm4215_vm1, %v3925_v19, %v334_v32 }
 0x111   :  { %630 = vmatprep.subr.mxu1 %v374_v36 }
 0x112   :  { %v265_v44 = vpop.permute.xlu1 %264 }
 0x113   :  { %427 = vrot.lane.b32.xlu0 %v4099_v46, %s3850_s22  ;;  %v338_v45 = vsel %vm6341_vm0, %v265_v44, %v273_v25 }
 0x114   :  { %1251 = vrot.lane.b32.xlu1 %v3877_v2, %s3847_s1  ;;  %v373_v43 = vsel %vm4234_vm2, %v3928_v20, %v338_v45 }
 0x115   :  { %v271_v52 = vpop.permute.xlu0 %270  ;;  %631 = vmatpush1.msra.mxu1 %v373_v43  ;;  %v4271_v43 = vadd.s32 128, %v4183_v33 }
 0x116   :  { %v4247_v10 = vpop.permute.xlu1 %278 }
 0x117   :  { %v333_v53 = vsel %vm6341_vm0, %v271_v52, %v4247_v10  ;;  %423 = vrot.lane.b32.xlu0 %v4064_v18, %s3850_s22  ;;  %6473 = vst [vmem:[#allocation44_spill] sm:$0xff] %v4271_v43  ;;  %v6311_v8 = vand.u32 127, %v4271_v43  ;;  %v6485_v43 = vmov 0 }
 0x118   :  { %425 = vrot.lane.b32.xlu1 %v4040_v1, %s3850_s22  ;;  %v366_v16 = vsel %vm4215_vm1, %v3954_v30, %v333_v53 }
 0x119   :  { %632 = vmatprep.subr.mxu1 %v366_v16  ;;  %v263_v15 = vpop.permute.xlu0 %262  ;;  %vm4303_vm3 = vcmp.eq.s32.totalorder %v6311_v8, 0 }
 0x11a   :  { %v337_v25 = vsel %vm6341_vm0, %v263_v15, %v271_v52  ;;  %v269_v32 = vpop.permute.xlu1 %268 }
 0x11b   :  { %419 = vrot.lane.b32.xlu0 %v4111_v48, %s3850_s22  ;;  %v365_v36 = vsel %vm4234_vm2, %v3951_v29, %v337_v25 }
 0x11c   :  { %633 = vmatpush1.msra.mxu1 %v365_v36  ;;  %421 = vrot.lane.b32.xlu1 %v4089_v40, %s3850_s22 }
 0x11d   :  { %v4268_v45 = vpop.permute.xlu0 %276 }
 0x11e   :  { %v332_v52 = vsel %vm6341_vm0, %v269_v32, %v4268_v45  ;;  %v4276_v53 = vpop.permute.xlu1 %260 }
 0x11f   :  { %v336_v16 = vsel %vm6341_vm0, %v4276_v53, %v269_v32  ;;  %v358_v25 = vsel %vm4215_vm1, %v3978_v39, %v332_v52 }
 0x120   :  { %634 = vmatprep.subr.mxu1 %v358_v25  ;;  %v357_v36 = vsel %vm4234_vm2, %v3968_v35, %v336_v16  ;;  %v6475_v16 = vmov 0 }
 0x121   :  { %v267_v14 = vpop.permute.xlu0 %266  ;;  %635 = vmatpush1.msra.mxu1 %v357_v36  ;;  %v6476_v16 = vsel %vm4303_vm3, 4294967295, %v6475_v16 }
 0x122   :  { %v4291_v7 = vpop.permute.xlu1 %274  ;;  %6477 = vst [vmem:[#allocation46_spill] sm:$0xff] %v6476_v16 }
 0x123   :  { %v331_v32 = vsel %vm6341_vm0, %v267_v14, %v4291_v7 }
 0x124   :  { %v350_v52 = vsel %vm4215_vm1, %v3999_v49, %v331_v32 }
 0x125   :  { %636 = vmatprep.subr.mxu1 %v350_v52  ;;  %v4299_v25 = vpop.permute.xlu0 %258 }
 0x126   :  { %v335_v41 = vsel %vm6341_vm0, %v4299_v25, %v267_v14  ;;  %v257_v13 = vpop.permute.xlu1 %256  ;;  %v6479_v14 = vand.u32 127, %v4289_v56  ;;  %v6484_v56 = vand.u32 127, %v4309_v6  ;;  %v4410_v6 = vadd.s32 512, %v4183_v33 }
 0x127   :  { %v349_v32 = vsel %vm4234_vm2, %v3995_v47, %v335_v41  ;;  %v342_v52 = vsel %vm6341_vm0, %v257_v13, %v265_v44 }
 0x128   :  { %637 = vmatpush1.msra.mxu1 %v349_v32  ;;  %v372_v8 = vsel %vm4303_vm3, %v3940_v24, %v342_v52  ;;  %vm4325_vm6 = vcmp.eq.s32.totalorder %v6479_v14, 0  ;;  %v6483_v32 = vmov 0.0   ;;  %vm4345_vm7 = vcmp.eq.s32.totalorder %v6484_v56, 0 }
 0x129   :  { %v305_v36 = vpop.permute.xlu0 %304  ;;  %541 = vmatprep.subr.mxu0 %v372_v8  ;;  %v6481_v63 = vsel %vm4325_vm6, 4294967295, %v6480_v63  ;;  %3647 = vmatmul.mubr.msk.f32.vlgmr.msra.gmra.mxu1 %vm6378_vm4, %v3887_v5  ;;  %v6486_v43 = vsel %vm4345_vm7, 4294967295, %v6485_v43  ;;  %v6321_v27 = vand.u32 127, %v4410_v6 }
 0x12a   :  { %6482 = vst [vmem:[#allocation48_spill] sm:$0xff] %v6481_v63  ;;  %v313_v44 = vpop.permute.xlu1 %312  ;;  %676 = vmatprep.mubr.f32.mxu1 %v6483_v32  ;;  %6487 = vst [vmem:[#allocation49_spill] sm:$0xff] %v6486_v43 }
 0x12b   :  { %v318_v52 = vsel %vm6341_vm0, %v305_v36, %v313_v44  ;;  %v346_v8 = vsel %vm6341_vm0, %v313_v44, %v257_v13  ;;  %vm4443_vm9 = vcmp.eq.s32.totalorder %v6321_v27, 0 }
 0x12c   :  { %v371_v14 = vsel %vm6340_vm5, %v4016_v57, %v346_v8  ;;  %v378_v37 = vsel %vm4325_vm6, %v4028_v61, %v318_v52  ;;  %v3851_v8 = vmov 98  }
 0x12d   :  { %542 = vmatpush1.msra.mxu0 %v371_v14  ;;  %808 = vmatprep.subr.mxu1 %v378_v37  ;;  %v255_v41 = vpop.permute.xlu0 %254 }
 0x12e   :  { %v341_v13 = vsel %vm6341_vm0, %v255_v41, %v263_v15  ;;  %v4351_v44 = vpop.permute.xlu1 %296  ;;  %3648 = vmatmul.mubr.msk.f32.gmra.mxu1 %vm6378_vm4, %v3883_v4  ;;  %3764 = vset.pattern.permute.xlu1 %v3851_v8 }
 0x12f   :  { %v322_v37 = vsel %vm6341_vm0, %v4351_v44, %v305_v36  ;;  %v364_v56 = vsel %vm4303_vm3, %v3965_v34, %v341_v13  ;;  %682 = vmatprep.mubr.f32.mxu1 %v6483_v32  ;;  %1662 = vperm.xlu1 %3764, %v3877_v2  }
 0x130   :  { %543 = vmatprep.subr.mxu0 %v364_v56  ;;  %v377_v15 = vsel %vm4345_vm7, %v4025_v60, %v322_v37  ;;  %3765 = vset.pattern.permute.xlu0 %v3851_v8 }
 0x131   :  { %809 = vmatpush1.msra.mxu1 %v377_v15  ;;  %v303_v52 = vpop.permute.xlu0 %302  ;;  %1658 = vperm.xlu0 %3765, %v3881_v3  }
 0x132   :  { %v311_v14 = vpop.permute.xlu1 %310  ;;  %3649 = vmatmul.mubr.msk.f32.gmra.mxu1 %vm6378_vm4, %v3881_v3 }
 0x133   :  { %v317_v36 = vsel %vm6341_vm0, %v303_v52, %v311_v14  ;;  %v345_v13 = vsel %vm6341_vm0, %v311_v14, %v255_v41  ;;  %688 = vmatprep.mubr.f32.mxu1 %v6483_v32  ;;  %1654 = vperm.xlu1 %3764, %v3883_v4  }
 0x134   :  { %v363_v8 = vsel %vm6340_vm5, %v4037_v0, %v345_v13  ;;  %v370_v37 = vsel %vm4325_vm6, %v4052_v12, %v317_v36 }
 0x135   :  { %544 = vmatpush1.msra.mxu0 %v363_v8  ;;  %810 = vmatprep.subr.mxu1 %v370_v37  ;;  %v253_v56 = vpop.permute.xlu0 %252 }
 0x136   :  { %v340_v15 = vsel %vm6341_vm0, %v253_v56, %v4276_v53  ;;  %v295_v41 = vpop.permute.xlu1 %294  ;;  %3650 = vmatmul.mubr.msk.f32.gmra.mxu1 %vm6378_vm4, %v3877_v2 }
 0x137   :  { %v321_v14 = vsel %vm6341_vm0, %v295_v41, %v303_v52  ;;  %v356_v13 = vsel %vm4303_vm3, %v3984_v42, %v340_v15  ;;  %848 = vmatprep.mubr.f32.mxu1 %v6483_v32  ;;  %1650 = vperm.xlu1 %3764, %v3887_v5  }
 0x138   :  { %545 = vmatprep.subr.mxu0 %v356_v13  ;;  %v369_v53 = vsel %vm4345_vm7, %v4049_v11, %v321_v14 }
 0x139   :  { %811 = vmatpush1.msra.mxu1 %v369_v53  ;;  %v301_v36 = vpop.permute.xlu0 %300  ;;  %v4407_v53 = vadd.s32 640, %v4183_v33 }
 0x13a   :  { %v309_v8 = vpop.permute.xlu1 %308 }
 0x13b   :  { %v316_v37 = vsel %vm6341_vm0, %v301_v36, %v309_v8  ;;  %v344_v52 = vsel %vm6341_vm0, %v309_v8, %v253_v56  ;;  %v6322_v9 = vand.u32 127, %v4407_v53 }
 0x13c   :  { %v355_v15 = vsel %vm6340_vm5, %v4061_v17, %v344_v52  ;;  %v362_v13 = vsel %vm4325_vm6, %v4076_v31, %v316_v37 }
 0x13d   :  { %546 = vmatpush1.msra.mxu0 %v355_v15  ;;  %812 = vmatprep.subr.mxu1 %v362_v13  ;;  %v251_v14 = vpop.permute.xlu0 %250  ;;  %vm4437_vm8 = vcmp.eq.s32.totalorder %v6322_v9, 0  ;;  %v6499_v9 = vld [vmem:[#allocation35_spill] sm:$0xff] }
 0x13e   :  { %v339_v56 = vsel %vm6341_vm0, %v251_v14, %v4299_v25  ;;  %v293_v8 = vpop.permute.xlu1 %292 }
 0x13f   :  { %v320_v52 = vsel %vm6341_vm0, %v293_v8, %v301_v36  ;;  %v348_v37 = vsel %vm4303_vm3, %v4010_v54, %v339_v56 }
 0x140   :  { %547 = vmatprep.subr.mxu0 %v348_v37  ;;  %v361_v15 = vsel %vm4345_vm7, %v4073_v26, %v320_v52 }
 0x141   :  { %813 = vmatpush1.msra.mxu1 %v361_v15  ;;  %v299_v13 = vpop.permute.xlu0 %298  ;;  %v6488_v15 = vmov 0 }
 0x142   :  { %v307_v25 = vpop.permute.xlu1 %306  ;;  %v6489_v15 = vsel %vm4437_vm8, 4294967295, %v6488_v15 }
 0x143   :  { %v315_v59 = vsel %vm6341_vm0, %v299_v13, %v307_v25  ;;  %v343_v36 = vsel %vm6341_vm0, %v307_v25, %v251_v14  ;;  %6490 = vst [vmem:[#allocation50_spill] sm:$0xff] %v6489_v15  ;;  %v6491_v14 = vmov 0 }
 0x144   :  { %v347_v56 = vsel %vm6340_vm5, %v4086_v38, %v343_v36  ;;  %v354_v52 = vsel %vm4325_vm6, %v4102_v50, %v315_v59  ;;  %v6492_v14 = vsel %vm4443_vm9, 4294967295, %v6491_v14 }
 0x145   :  { %548 = vmatpush1.msra.mxu0 %v347_v56  ;;  %814 = vmatprep.subr.mxu1 %v354_v52  ;;  %v291_v37 = vpop.permute.xlu0 %290  ;;  %6493 = vst [vmem:[#allocation51_spill] sm:$0xff] %v6492_v14  ;;  %v6502_v14 = vmov 0 }
 0x146   :  { %v319_v25 = vsel %vm6341_vm0, %v291_v37, %v299_v13  ;;  %v289_v36 = vpop.permute.xlu1 %288  ;;  %3643 = vmatmul.mubr.msk.f32.vlgmr.msra.gmra.mxu0 %vm6378_vm4, %v3887_v5 }
 0x147   :  { %v326_v59 = vsel %vm6341_vm0, %v289_v36, %v4351_v44  ;;  %v330_v56 = vsel %vm6341_vm0, %v4220_v21, %v289_v36  ;;  %v353_v52 = vsel %vm4345_vm7, %v4099_v46, %v319_v25  ;;  %587 = vmatprep.mubr.f32.mxu0 %v6483_v32 }
 0x148   :  { %815 = vmatpush1.msra.mxu1 %v353_v52  ;;  %v376_v13 = vsel %vm4437_vm8, %v4040_v1, %v326_v59  ;;  %v375_v27 = vsel %vm4443_vm9, %v4114_v51, %v330_v56 }
 0x149   :  { %719 = vmatprep.subr.mxu0 %v376_v13  ;;  %3655 = vmatmul.mubr.msk.f32.vlgmr.msra.gmra.mxu1 %vm6378_vm4, %v3887_v5  ;;  %v287_v21 = vpop.permute.xlu0 %286 }
 0x14a   :  { %1002 = vmatprep.subr.mxu1 %v3925_v19  ;;  %v325_v44 = vsel %vm6341_vm0, %v287_v21, %v295_v41  ;;  %v329_v25 = vsel %vm6341_vm0, %v4247_v10, %v287_v21  ;;  %v285_v36 = vpop.permute.xlu1 %284  ;;  %3644 = vmatmul.mubr.msk.f32.gmra.mxu0 %vm6378_vm4, %v3883_v4 }
 0x14b   :  { %v324_v59 = vsel %vm6341_vm0, %v285_v36, %v293_v8  ;;  %720 = vmatpush1.msra.mxu0 %v375_v27  ;;  %1003 = vmatpush1.msra.mxu1 %v3928_v20  ;;  %v368_v56 = vsel %vm4437_vm8, %v4064_v18, %v325_v44  ;;  %v367_v10 = vsel %vm4443_vm9, %v4123_v55, %v329_v25 }
 0x14c   :  { %1004 = vmatprep.subr.mxu1 %v3954_v30  ;;  %721 = vmatprep.subr.mxu0 %v368_v56  ;;  %v328_v41 = vsel %vm6341_vm0, %v4268_v45, %v285_v36  ;;  %v360_v8 = vsel %vm4437_vm8, %v4089_v40, %v324_v59 }
 0x14d   :  { %854 = vmatprep.mubr.f32.mxu1 %v6483_v32  ;;  %1005 = vmatpush1.msra.mxu1 %v3951_v29  ;;  %v283_v27 = vpop.permute.xlu0 %282 }
 0x14e   :  { %593 = vmatprep.mubr.f32.mxu0 %v6483_v32  ;;  %722 = vmatpush1.msra.mxu0 %v367_v10  ;;  %v323_v52 = vsel %vm6341_vm0, %v283_v27, %v291_v37  ;;  %v327_v13 = vsel %vm6341_vm0, %v4291_v7, %v283_v27  ;;  %v4501_v45 = vpop.permute.xlu1 %409  ;;  %v359_v37 = vsel %vm4443_vm9, %v4126_v58, %v328_v41 }
 0x14f   :  { %3656 = vmatmul.mubr.msk.f32.gmra.mxu1 %vm6378_vm4, %v3883_v4  ;;  %1006 = vmatprep.subr.mxu1 %v3978_v39  ;;  %v352_v21 = vsel %vm4437_vm8, %v4111_v48, %v323_v52  ;;  %v351_v7 = vsel %vm4443_vm9, %v4134_v22, %v327_v13  ;;  %v6494_v52 = vand.u32 127, %v4194_v62  ;;  %v6495_v13 = vmov 0 }
 0x150   :  { %3645 = vmatmul.mubr.msk.f32.gmra.mxu0 %vm6378_vm4, %v3881_v3  ;;  %723 = vmatprep.subr.mxu0 %v360_v8 }
 0x151   :  { %1007 = vmatpush1.msra.mxu1 %v3968_v35  ;;  %724 = vmatpush1.msra.mxu0 %v359_v37  ;;  %v4518_v44 = vpop.permute.xlu0 %417  ;;  %vm4580_vm11 = vcmp.eq.s32.totalorder %v6494_v52, 127 }
 0x152   :  { %1008 = vmatprep.subr.mxu1 %v3999_v49  ;;  %725 = vmatprep.subr.mxu0 %v352_v21  ;;  %v4521_v25 = vpop.permute.xlu1 %401  ;;  %v6496_v13 = vsel %vm4580_vm11, 4294967295, %v6495_v13 }
 0x153   :  { %860 = vmatprep.mubr.f32.mxu1 %v6483_v32  ;;  %1009 = vmatpush1.msra.mxu1 %v3995_v47  ;;  %6497 = vst [vmem:[#allocation52_spill] sm:$0xff] %v6496_v13 }
 0x154   :  { %599 = vmatprep.mubr.f32.mxu0 %v6483_v32  ;;  %726 = vmatpush1.msra.mxu0 %v351_v7  ;;  %v6498_v7 = vld [vmem:[#allocation38_spill] sm:$0xff] }
 0x155   :  { %3657 = vmatmul.mubr.msk.f32.gmra.mxu1 %vm6378_vm4, %v3881_v3  ;;  %1180 = vmatprep.subr.mxu1 %v4028_v61  ;;  %v4529_v36 = vpop.permute.xlu0 %407 }
 0x156   :  { %3646 = vmatmul.mubr.msk.f32.gmra.mxu0 %vm6378_vm4, %v3877_v2  ;;  %913 = vmatprep.subr.mxu0 %v3940_v24  ;;  %v4534_v59 = vpop.permute.xlu1 %415 }
 0x157   :  { %866 = vmatprep.mubr.f32.mxu1 %v6483_v32  ;;  %759 = vmatprep.mubr.f32.mxu0 %v6483_v32  ;;  %v458_v15 = vsel %vm6377_vm10, %v4529_v36, %v4534_v59 }
 0x159   :  { %3658 = vmatmul.mubr.msk.f32.gmra.mxu1 %vm6378_vm4, %v3877_v2  ;;  %v4540_v56 = vpop.permute.xlu0 %399 }
 0x15a   :  { %3651 = vmatmul.mubr.msk.f32.vlgmr.msra.gmra.mxu0 %vm6378_vm4, %v3887_v5  ;;  %1042 = vmatprep.mubr.f32.mxu1 %v6483_v32  ;;  %v4545_v10 = vpop.permute.xlu1 %405 }
 0x15b   :  { %914 = vmatpush1.msra.mxu0 %v4016_v57  ;;  %765 = vmatprep.mubr.f32.mxu0 %v6483_v32 }
 0x15c   :  { %915 = vmatprep.subr.mxu0 %v3965_v34 }
 0x15d   :  { %916 = vmatpush1.msra.mxu0 %v4037_v0  ;;  %3663 = vmatmul.mubr.msk.f32.vlgmr.msra.gmra.mxu1 %vm6378_vm4, %v4176_v28  ;;  %v4553_v41 = vpop.permute.xlu0 %413 }
 0x15e   :  { %917 = vmatprep.subr.mxu0 %v3984_v42  ;;  %1181 = vmatpush1.msra.mxu1 %v4025_v60  ;;  %v4557_v5 = vpop.permute.xlu1 %397  ;;  %v457_v63 = vsel %vm6377_vm10, %v4545_v10, %v4553_v41 }
 0x15f   :  { %3652 = vmatmul.mubr.msk.f32.gmra.mxu0 %vm6378_vm4, %v3883_v4  ;;  %1182 = vmatprep.subr.mxu1 %v4052_v12  ;;  %v459_v4 = vsel %vm6377_vm10, %v4501_v45, %v4518_v44 }
 0x160   :  { %918 = vmatpush1.msra.mxu0 %v4061_v17  ;;  %1183 = vmatpush1.msra.mxu1 %v4049_v11  ;;  %v503_v62 = vsel %vm4580_vm11, %v3925_v19, %v459_v4  ;;  %v463_v4 = vsel %vm6377_vm10, %v4521_v25, %v4501_v45  ;;  %v461_v19 = vsel %vm6377_vm10, %v4557_v5, %v4545_v10 }
 0x161   :  { %919 = vmatprep.subr.mxu0 %v4010_v54  ;;  %1048 = vmatprep.mubr.f32.mxu1 %v6483_v32  ;;  %v404_v27 = vpop.permute.xlu0 %403 }
 0x162   :  { %920 = vmatpush1.msra.mxu0 %v4086_v38  ;;  %1184 = vmatprep.subr.mxu1 %v4076_v31  ;;  %v4569_v8 = vpop.permute.xlu1 %411 }
 0x163   :  { %771 = vmatprep.mubr.f32.mxu0 %v6483_v32  ;;  %3664 = vmatmul.mubr.msk.f32.gmra.mxu1 %vm6378_vm4, %v4164_v23 }
 0x164   :  { %1091 = vmatprep.subr.mxu0 %v4040_v1  ;;  %1185 = vmatpush1.msra.mxu1 %v4073_v26 }
 0x165   :  { %3653 = vmatmul.mubr.msk.f32.gmra.mxu0 %vm6378_vm4, %v3881_v3  ;;  %1186 = vmatprep.subr.mxu1 %v4102_v50  ;;  %v4589_v21 = vpop.permute.xlu0 %395 }
 0x166   :  { %1187 = vmatpush1.msra.mxu1 %v4099_v46  ;;  %1054 = vmatprep.mubr.f32.mxu1 %v6483_v32  ;;  %v4596_v37 = vpop.permute.xlu1 %393  ;;  %v460_v10 = vsel %vm6377_vm10, %v4589_v21, %v404_v27 }
 0x167   :  { %1374 = vmatprep.subr.mxu1 %v503_v62  ;;  %777 = vmatprep.mubr.f32.mxu0 %v6483_v32 }
 0x168   :  { %3665 = vmatmul.mubr.msk.f32.gmra.mxu1 %vm6378_vm4, %v6498_v7 }
 0x169   :  { %3654 = vmatmul.mubr.msk.f32.gmra.mxu0 %vm6378_vm4, %v3877_v2  ;;  %1060 = vmatprep.mubr.f32.mxu1 %v6483_v32  ;;  %v386_v3 = vpop.permute.xlu0 %385  ;;  %v6500_v2 = vld [vmem:[#allocation41_spill] sm:$0xff] }
 0x16a   :  { %953 = vmatprep.mubr.f32.mxu0 %v6483_v32  ;;  %v4605_v52 = vpop.permute.xlu1 %441  ;;  %v6501_v62 = vand.u32 127, %v6500_v2  ;;  %v462_v2 = vsel %vm6377_vm10, %v4540_v56, %v4529_v36  ;;  %v495_v36 = vsel %vm4580_vm11, %v3954_v30, %v458_v15  ;;  %v467_v15 = vsel %vm6377_vm10, %v4596_v37, %v4521_v25 }
 0x16b   :  { %v6507_v30 = vmov 0  ;;  %v487_v25 = vsel %vm4580_vm11, %v3978_v39, %v457_v63 }
 0x16c   :  { %3666 = vmatmul.mubr.msk.f32.gmra.mxu1 %vm6378_vm4, %v6499_v9  ;;  %vm4618_vm12 = vcmp.eq.s32.totalorder %v6501_v62, 127 }
 0x16d   :  { %3659 = vmatmul.mubr.msk.f32.vlgmr.msra.gmra.mxu0 %vm6378_vm4, %v4176_v28  ;;  %1220 = vmatprep.mubr.f32.mxu1 %v6483_v32  ;;  %v6503_v14 = vsel %vm4618_vm12, 4294967295, %v6502_v14  ;;  %v4622_v43 = vpop.permute.xlu0 %391  ;;  %v502_v62 = vsel %vm4618_vm12, %v3928_v20, %v463_v4  ;;  %v494_v4 = vsel %vm4618_vm12, %v3951_v29, %v462_v2  ;;  %v456_v2 = vsel %vm6377_vm10, %v404_v27, %v4569_v8 }
 0x16e   :  { %6504 = vst [vmem:[#allocation38_spill] sm:$0xff] %v6503_v14  ;;  %1092 = vmatpush1.msra.mxu0 %v4114_v51  ;;  %959 = vmatprep.mubr.f32.mxu0 %v6483_v32  ;;  %v4630_v45 = vpop.permute.xlu1 %433  ;;  %v486_v27 = vsel %vm4618_vm12, %v3968_v35, %v461_v19  ;;  %v6512_v29 = vmov 0  ;;  %v478_v19 = vsel %vm4618_vm12, %v3995_v47, %v460_v10 }
 0x16f   :  { %1093 = vmatprep.subr.mxu0 %v4064_v18  ;;  %v466_v10 = vsel %vm6377_vm10, %v4622_v43, %v4540_v56 }
 0x170   :  { %1094 = vmatpush1.msra.mxu0 %v4123_v55  ;;  %3671 = vmatmul.mubr.msk.f32.vlgmr.msra.gmra.mxu1 %vm6378_vm4, %v4176_v28 }
 0x171   :  { %1095 = vmatprep.subr.mxu0 %v4089_v40  ;;  %1375 = vmatpush1.msra.mxu1 %v502_v62  ;;  %v384_v16 = vpop.permute.xlu0 %383  ;;  %v6505_v62 = vld [vmem:[#allocation44_spill] sm:$0xff] }
 0x172   :  { %3660 = vmatmul.mubr.msk.f32.gmra.mxu0 %vm6378_vm4, %v4164_v23  ;;  %1376 = vmatprep.subr.mxu1 %v495_v36  ;;  %v440_v20 = vpop.permute.xlu1 %439  ;;  %v6506_v36 = vand.u32 127, %v6505_v62  ;;  %v475_v62 = vsel %vm6377_vm10, %v4605_v52, %v386_v3 }
 0x173   :  { %1096 = vmatpush1.msra.mxu0 %v4126_v58  ;;  %1377 = vmatpush1.msra.mxu1 %v494_v4 }
 0x174   :  { %vm4667_vm13 = vcmp.eq.s32.totalorder %v6506_v36, 127  ;;  %1097 = vmatprep.subr.mxu0 %v4111_v48  ;;  %1226 = vmatprep.mubr.f32.mxu1 %v6483_v32  ;;  %v6510_v36 = vld [vmem:[#allocation45_spill] sm:$0xff] }
 0x175   :  { %v6508_v30 = vsel %vm4667_vm13, 4294967295, %v6507_v30  ;;  %1098 = vmatpush1.msra.mxu0 %v4134_v22  ;;  %1378 = vmatprep.subr.mxu1 %v487_v25  ;;  %v4683_v4 = vpop.permute.xlu0 %431  ;;  %v501_v63 = vsel %vm4667_vm13, %v3940_v24, %v467_v15  ;;  %v6511_v25 = vand.u32 127, %v6510_v36  ;;  %v479_v22 = vsel %vm4580_vm11, %v3999_v49, %v456_v2 }
 0x176   :  { %6509 = vst [vmem:[#allocation35_spill] sm:$0xff] %v6508_v30  ;;  %965 = vmatprep.mubr.f32.mxu0 %v6483_v32  ;;  %3672 = vmatmul.mubr.msk.f32.gmra.mxu1 %vm6378_vm4, %v4164_v23  ;;  %v390_v39 = vpop.permute.xlu1 %389  ;;  %v447_v36 = vsel %vm6377_vm10, %v4630_v45, %v4605_v52  ;;  %v446_v52 = vsel %vm6377_vm10, %v4683_v4, %v440_v20 }
 0x177   :  { %vm4699_vm14 = vcmp.eq.s32.totalorder %v6511_v25, 127  ;;  %1285 = vmatprep.subr.mxu0 %v501_v63  ;;  %1379 = vmatpush1.msra.mxu1 %v486_v27  ;;  %v470_v27 = vsel %vm6377_vm10, %v384_v16, %v4622_v43  ;;  %v493_v43 = vsel %vm4667_vm13, %v3965_v34, %v466_v10  ;;  %v6515_v25 = vld [vmem:[#allocation47_spill] sm:$0xff] }
 0x178   :  { %v6513_v29 = vsel %vm4699_vm14, 4294967295, %v6512_v29  ;;  %3661 = vmatmul.mubr.msk.f32.gmra.mxu0 %vm6378_vm4, %v6498_v7  ;;  %1380 = vmatprep.subr.mxu1 %v479_v22  ;;  %v507_v15 = vsel %vm4699_vm14, %v4028_v61, %v475_v62  ;;  %v471_v22 = vsel %vm6377_vm10, %v386_v3, %v4596_v37  ;;  %v465_v37 = vsel %vm6377_vm10, %v390_v39, %v4557_v5 }
 0x179   :  { %6514 = vst [vmem:[#allocation41_spill] sm:$0xff] %v6513_v29  ;;  %1381 = vmatpush1.msra.mxu1 %v478_v19  ;;  %1232 = vmatprep.mubr.f32.mxu1 %v6483_v32  ;;  %v438_v63 = vpop.permute.xlu0 %437  ;;  %v500_v56 = vsel %vm6342_vm15, %v4016_v57, %v471_v22  ;;  %v474_v5 = vsel %vm6377_vm10, %v440_v20, %v384_v16  ;;  %v6516_v19 = vand.u32 127, %v6515_v25 }
 0x17a   :  { %1552 = vmatprep.subr.mxu1 %v507_v15  ;;  %971 = vmatprep.mubr.f32.mxu0 %v6483_v32  ;;  %v382_v2 = vpop.permute.xlu1 %381  ;;  %v6517_v15 = vmov 0  ;;  %v492_v10 = vsel %vm6342_vm15, %v4037_v0, %v470_v27 }
 0x17b   :  { %3673 = vmatmul.mubr.msk.f32.gmra.mxu1 %vm6378_vm4, %v6498_v7  ;;  %vm4757_vm5 = vcmp.eq.s32.totalorder %v6516_v19, 127  ;;  %v469_v16 = vsel %vm6377_vm10, %v382_v2, %v390_v39  ;;  %v473_v25 = vsel %vm6377_vm10, %v438_v63, %v382_v2  ;;  %v499_v39 = vsel %vm4699_vm14, %v4052_v12, %v474_v5 }
 0x17c   :  { %3662 = vmatmul.mubr.msk.f32.gmra.mxu0 %vm6378_vm4, %v6499_v9  ;;  %1238 = vmatprep.mubr.f32.mxu1 %v6483_v32  ;;  %v6518_v15 = vsel %vm4757_vm5, 4294967295, %v6517_v15  ;;  %v498_v27 = vsel %vm4757_vm5, %v4049_v11, %v446_v52  ;;  %v484_v2 = vsel %vm6342_vm15, %v4061_v17, %v469_v16 }
 0x17d   :  { %1131 = vmatprep.mubr.f32.mxu0 %v6483_v32  ;;  %v4730_v62 = vpop.permute.xlu0 %429  ;;  %6519 = vst [vmem:[#allocation44_spill] sm:$0xff] %v6518_v15 }
 0x17e   :  { %v388_v3 = vpop.permute.xlu1 %387 }
 0x17f   :  { %3674 = vmatmul.mubr.msk.f32.gmra.mxu1 %vm6378_vm4, %v6499_v9  ;;  %v464_v5 = vsel %vm6377_vm10, %v388_v3, %v4589_v21  ;;  %v6521_v21 = vld [vmem:[#allocation37_spill] sm:$0xff] }
 0x180   :  { %3667 = vmatmul.mubr.msk.f32.vlgmr.msra.gmra.mxu0 %vm6378_vm4, %v4176_v28  ;;  %1414 = vmatprep.mubr.f32.mxu1 %v6483_v32  ;;  %v485_v28 = vsel %vm4667_vm13, %v3984_v42, %v465_v37  ;;  %v506_v37 = vsel %vm4757_vm5, %v4025_v60, %v447_v36  ;;  %v491_v36 = vsel %vm4699_vm14, %v4076_v31, %v473_v25 }
 0x181   :  { %1286 = vmatpush1.msra.mxu0 %v500_v56  ;;  %1137 = vmatprep.mubr.f32.mxu0 %v6483_v32  ;;  %v436_v22 = vpop.permute.xlu0 %435  ;;  %v6520_v56 = vld [vmem:[#allocation40_spill] sm:$0xff]  ;;  %v477_v16 = vsel %vm4667_vm13, %v4010_v54, %v464_v5  ;;  %v6528_v5 = vmov 0 }
 0x182   :  { %1287 = vmatprep.subr.mxu0 %v493_v43  ;;  %v380_v20 = vpop.permute.xlu1 %379  ;;  %v445_v43 = vsel %vm6377_vm10, %v4730_v62, %v438_v63 }
 0x183   :  { %1288 = vmatpush1.msra.mxu0 %v492_v10  ;;  %3679 = vmatmul.mubr.msk.f32.vlgmr.msra.gmra.mxu1 %vm6378_vm4, %v6520_v56  ;;  %v472_v19 = vsel %vm6377_vm10, %v436_v22, %v380_v20  ;;  %v468_v63 = vsel %vm6377_vm10, %v380_v20, %v388_v3  ;;  %v6522_v20 = vand.u32 127, %v4407_v53  ;;  %v6526_v53 = vld [vmem:[#allocation39_spill] sm:$0xff] }
 0x184   :  { %1289 = vmatprep.subr.mxu0 %v485_v28  ;;  %1553 = vmatpush1.msra.mxu1 %v506_v37  ;;  %v490_v28 = vsel %vm4757_vm5, %v4073_v26, %v445_v43  ;;  %v483_v3 = vsel %vm4699_vm14, %v4102_v50, %v472_v19  ;;  %v476_v25 = vsel %vm6342_vm15, %v4086_v38, %v468_v63  ;;  %v6523_v37 = vmov 0 }
 0x185   :  { %3668 = vmatmul.mubr.msk.f32.gmra.mxu0 %vm6378_vm4, %v4164_v23  ;;  %1554 = vmatprep.subr.mxu1 %v499_v39  ;;  %v428_v52 = vpop.permute.xlu0 %427  ;;  %vm4829_vm0 = vcmp.eq.s32.totalorder %v6522_v20, 127 }
 0x186   :  { %1555 = vmatpush1.msra.mxu1 %v498_v27  ;;  %1420 = vmatprep.mubr.f32.mxu1 %v6483_v32  ;;  %v4805_v23 = vpop.permute.xlu1 %1251  ;;  %v444_v10 = vsel %vm6377_vm10, %v428_v52, %v436_v22  ;;  %v6524_v37 = vsel %vm4829_vm0, 4294967295, %v6523_v37 }
 0x187   :  { %1143 = vmatprep.mubr.f32.mxu0 %v6483_v32  ;;  %1290 = vmatpush1.msra.mxu0 %v484_v2  ;;  %6525 = vst [vmem:[#allocation45_spill] sm:$0xff] %v6524_v37 }
 0x188   :  { %3680 = vmatmul.mubr.msk.f32.gmra.mxu1 %vm6378_vm4, %v6521_v21  ;;  %1556 = vmatprep.subr.mxu1 %v491_v36  ;;  %v6527_v36 = vand.u32 127, %v4410_v6 }
 0x189   :  { %3669 = vmatmul.mubr.msk.f32.gmra.mxu0 %vm6378_vm4, %v6498_v7  ;;  %1426 = vmatprep.mubr.f32.mxu1 %v6483_v32  ;;  %v482_v7 = vsel %vm4757_vm5, %v4099_v46, %v444_v10  ;;  %v424_v22 = vpop.permute.xlu0 %423  ;;  %v6531_v10 = vld [vmem:[#allocation34_spill] sm:$0xff] }
 0x18a   :  { %1557 = vmatpush1.msra.mxu1 %v490_v28  ;;  %1149 = vmatprep.mubr.f32.mxu0 %v6483_v32  ;;  %v426_v39 = vpop.permute.xlu1 %425  ;;  %vm4850_vm15 = vcmp.eq.s32.totalorder %v6527_v36, 127 }
 0x18b   :  { %1291 = vmatprep.subr.mxu0 %v477_v16  ;;  %1558 = vmatprep.subr.mxu1 %v483_v3  ;;  %v451_v27 = vsel %vm6377_vm10, %v426_v39, %v4630_v45  ;;  %v455_v2 = vsel %vm6377_vm10, %v4518_v44, %v426_v39  ;;  %v6529_v5 = vsel %vm4850_vm15, 4294967295, %v6528_v5  ;;  %v450_v44 = vsel %vm6377_vm10, %v424_v22, %v4683_v4 }
 0x18c   :  { %3681 = vmatmul.mubr.msk.f32.gmra.mxu1 %vm6378_vm4, %v6526_v53  ;;  %1292 = vmatpush1.msra.mxu0 %v476_v25  ;;  %v505_v43 = vsel %vm4829_vm0, %v4040_v1, %v451_v27  ;;  %6530 = vst [vmem:[#allocation47_spill] sm:$0xff] %v6529_v5  ;;  %v504_v6 = vsel %vm4850_vm15, %v4114_v51, %v455_v2 }
 0x18d   :  { %3670 = vmatmul.mubr.msk.f32.gmra.mxu0 %vm6378_vm4, %v6499_v9  ;;  %1432 = vmatprep.mubr.f32.mxu1 %v6483_v32  ;;  %v454_v9 = vsel %vm6377_vm10, %v4534_v59, %v424_v22  ;;  %v420_v4 = vpop.permute.xlu0 %419  ;;  %v497_v59 = vsel %vm4829_vm0, %v4064_v18, %v450_v44 }
 0x18e   :  { %1325 = vmatprep.mubr.f32.mxu0 %v6483_v32  ;;  %1559 = vmatpush1.msra.mxu1 %v482_v7  ;;  %v422_v45 = vpop.permute.xlu1 %421  ;;  %v452_v3 = vsel %vm6377_vm10, %v4569_v8, %v420_v4 }
 0x18f   :  { %1463 = vmatprep.subr.mxu0 %v505_v43  ;;  %v449_v19 = vsel %vm6377_vm10, %v422_v45, %v4730_v62  ;;  %v453_v63 = vsel %vm6377_vm10, %v4553_v41, %v422_v45  ;;  %v496_v62 = vsel %vm4850_vm15, %v4123_v55, %v454_v9  ;;  %v448_v41 = vsel %vm6377_vm10, %v420_v4, %v428_v52 }
 0x190   :  { %3682 = vmatmul.mubr.msk.f32.gmra.mxu1 %vm6378_vm4, %v4805_v23  ;;  %v489_v28 = vsel %vm4829_vm0, %v4089_v40, %v449_v19  ;;  %v488_v16 = vsel %vm4850_vm15, %v4126_v58, %v453_v63  ;;  %v481_v52 = vsel %vm4829_vm0, %v4111_v48, %v448_v41  ;;  %v480_v25 = vsel %vm4850_vm15, %v6531_v10, %v452_v3 }
 0x191   :  { %3675 = vmatmul.mubr.msk.f32.vlgmr.msra.gmra.mxu0 %vm6378_vm4, %v6520_v56  ;;  %1592 = vmatprep.mubr.f32.mxu1 %v6483_v32 }
 0x192   :  { %1331 = vmatprep.mubr.f32.mxu0 %v6483_v32  ;;  %1464 = vmatpush1.msra.mxu0 %v504_v6 }
 0x193   :  { %1465 = vmatprep.subr.mxu0 %v497_v59 }
 0x194   :  { %3687 = vmatmul.mubr.msk.f32.vlgmr.msra.gmra.mxu1 %vm6378_vm4, %v6520_v56  ;;  %1466 = vmatpush1.msra.mxu0 %v496_v62 }
 0x195   :  { %3676 = vmatmul.mubr.msk.f32.gmra.mxu0 %vm6378_vm4, %v6521_v21  ;;  %1598 = vmatprep.mubr.f32.mxu1 %v6483_v32 }
 0x196   :  { %1337 = vmatprep.mubr.f32.mxu0 %v6483_v32  ;;  %1467 = vmatprep.subr.mxu0 %v489_v28 }
 0x197   :  { %1468 = vmatpush1.msra.mxu0 %v488_v16 }
 0x198   :  { %3688 = vmatmul.mubr.msk.f32.gmra.mxu1 %vm6378_vm4, %v6521_v21  ;;  %1469 = vmatprep.subr.mxu0 %v481_v52 }
 0x199   :  { %3677 = vmatmul.mubr.msk.f32.gmra.mxu0 %vm6378_vm4, %v6526_v53  ;;  %1604 = vmatprep.mubr.f32.mxu1 %v6483_v32 }
 0x19a   :  { %1343 = vmatprep.mubr.f32.mxu0 %v6483_v32  ;;  %1470 = vmatpush1.msra.mxu0 %v480_v25 }
 0x19c   :  { %3689 = vmatmul.mubr.msk.f32.gmra.mxu1 %vm6378_vm4, %v6526_v53 }
 0x19d   :  { %3678 = vmatmul.mubr.msk.f32.gmra.mxu0 %vm6378_vm4, %v4805_v23  ;;  %1610 = vmatprep.mubr.f32.mxu1 %v6483_v32 }
 0x19e   :  { %1503 = vmatprep.mubr.f32.mxu0 %v6483_v32 }
 0x1a0   :  { %3690 = vmatmul.mubr.msk.f32.gmra.mxu1 %vm6378_vm4, %v4805_v23 }
 0x1a1   :  { %3683 = vmatmul.mubr.msk.f32.vlgmr.msra.gmra.mxu0 %vm6378_vm4, %v6520_v56  ;;  %2186 = vmatprep.mubr.f32.mxu1 %v6483_v32 }
 0x1a2   :  { %1509 = vmatprep.mubr.f32.mxu0 %v6483_v32 }
 0x1a5   :  { %3684 = vmatmul.mubr.msk.f32.gmra.mxu0 %vm6378_vm4, %v6521_v21 }
 0x1a6   :  { %1515 = vmatprep.mubr.f32.mxu0 %v6483_v32 }
 0x1a9   :  { %3685 = vmatmul.mubr.msk.f32.gmra.mxu0 %vm6378_vm4, %v6526_v53 }
 0x1aa   :  { %1521 = vmatprep.mubr.f32.mxu0 %v6483_v32 }
 0x1ad   :  { %3686 = vmatmul.mubr.msk.f32.gmra.mxu0 %vm6378_vm4, %v4805_v23 }
 0x1ae   :  { %2097 = vmatprep.mubr.f32.mxu0 %v6483_v32 }
 0x1e9   :  { %v4935_v8 = vpop.f32.mrf.mxu1 }
 0x1eb   :  { %v4937_v56 = vpop.f32.mrf.mxu1 }
 0x1ee   :  { %v4939_v20 = vpop.f32.mrf.mxu1 }
 0x1f0   :  { %v4941_v39 = vpop.f32.mrf.mxu1 }
 0x1f2   :  { %v4943_v21 = vpop.f32.mrf.mxu1 }
 0x1f4   :  { %v4945_v7 = vpop.f32.mrf.mxu1 }
 0x1f6   :  { %v4947_v22 = vpop.f32.mrf.mxu1 }
 0x1f8   :  { %v4949_v27 = vpop.f32.mrf.mxu1 }
 0x206   :  { %v4951_v53 = vpop.f32.mrf.mxu0 }
 0x208   :  { %v4953_v23 = vpop.f32.mrf.mxu0 }
 0x209   :  { %v850_v2 = vpop.f32.mrf.mxu1 }
 0x20a   :  { %v4955_v43 = vpop.f32.mrf.mxu0 }
 0x20b   :  { %v4957_v36 = vpop.f32.mrf.mxu1 }
 0x20c   :  { %v4959_v45 = vpop.f32.mrf.mxu0 }
 0x20f   :  { %v856_v44 = vpop.f32.mrf.mxu1 }
 0x210   :  { %v4961_v6 = vpop.f32.mrf.mxu0 }
 0x211   :  { %v4963_v9 = vpop.f32.mrf.mxu1 }
 0x212   :  { %6532 = vst [vmem:[#allocation40_spill] sm:$0xff] %v4963_v9  ;;  %v4965_v19 = vpop.f32.mrf.mxu0 }
 0x215   :  { %v4967_v4 = vpop.f32.mrf.mxu1 }
 0x216   :  { %6533 = vst [vmem:[#allocation37_spill] sm:$0xff] %v4967_v4  ;;  %v4969_v63 = vpop.f32.mrf.mxu0 }
 0x217   :  { %v4971_v59 = vpop.f32.mrf.mxu1 }
 0x218   :  { %6534 = vst [vmem:[#allocation39_spill] sm:$0xff] %v4971_v59  ;;  %v4973_v62 = vpop.f32.mrf.mxu0 }
 0x219   :  { %v4975_v28 = vpop.f32.mrf.mxu1 }
 0x21a   :  { %6535 = vst [vmem:[#allocation53_spill] sm:$0xff] %v4975_v28  ;;  %v761_v41 = vpop.f32.mrf.mxu0 }
 0x21b   :  { %v4977_v16 = vpop.f32.mrf.mxu1 }
 0x21c   :  { %6536 = vst [vmem:[#allocation54_spill] sm:$0xff] %v4977_v16  ;;  %v763_v3 = vpop.f32.mrf.mxu0 }
 0x21d   :  { %v1044_v52 = vpop.f32.mrf.mxu1 }
 0x21f   :  { %v4979_v25 = vpop.f32.mrf.mxu0  ;;  %v1046_v5 = vpop.f32.mrf.mxu1 }
 0x221   :  { %v4981_v15 = vpop.f32.mrf.mxu0 }
 0x222   :  { %6537 = vst [vmem:[#allocation55_spill] sm:$0xff] %v4981_v15 }
 0x223   :  { %v4983_v29 = vpop.f32.mrf.mxu1 }
 0x225   :  { %v4985_v37 = vpop.f32.mrf.mxu0  ;;  %v1052_v14 = vpop.f32.mrf.mxu1 }
 0x226   :  { %6538 = vst [vmem:[#allocation56_spill] sm:$0xff] %v4985_v37 }
 0x227   :  { %v4987_v30 = vpop.f32.mrf.mxu0 }
 0x228   :  { %6539 = vst [vmem:[#allocation57_spill] sm:$0xff] %v4987_v30  ;;  %v4989_v13 = vpop.f32.mrf.mxu1 }
 0x229   :  { %v4991_v32 = vpop.f32.mrf.mxu0 }
 0x22a   :  { %6540 = vst [vmem:[#allocation58_spill] sm:$0xff] %v4991_v32  ;;  %v4993_v33 = vpop.f32.mrf.mxu1 }
 0x22b   :  { %v781_v1 = vpop.f32.mrf.mxu0 }
 0x22c   :  { %v4995_v48 = vpop.f32.mrf.mxu1 }
 0x22d   :  { %v955_v26 = vpop.f32.mrf.mxu0 }
 0x22e   :  { %v4997_v46 = vpop.f32.mrf.mxu1 }
 0x22f   :  { %v957_v61 = vpop.f32.mrf.mxu0 }
 0x230   :  { %v1222_v10 = vpop.f32.mrf.mxu1  ;;  %v958_v15 = vadd.f32 %v957_v61, %v4953_v23  ;;  %v1051_v23 = vadd.f32 %v4983_v29, %v4939_v20 }
 0x231   :  { %v4999_v60 = vadd.f32 %v1222_v10, %v850_v2 }
 0x232   :  { %v961_v12 = vpop.f32.mrf.mxu0  ;;  %v5001_v51 = vpop.f32.mrf.mxu1 }
 0x233   :  { %6541 = vst [vmem:[#allocation59_spill] sm:$0xff] %v4999_v60 }
 0x234   :  { %v963_v11 = vpop.f32.mrf.mxu0 }
 0x236   :  { %v1228_v16 = vpop.f32.mrf.mxu1 }
 0x237   :  { %v5003_v18 = vadd.f32 %v1228_v16, %v856_v44 }
 0x238   :  { %v967_v55 = vpop.f32.mrf.mxu0  ;;  %v5005_v28 = vpop.f32.mrf.mxu1 }
 0x239   :  { %6542 = vst [vmem:[#allocation60_spill] sm:$0xff] %v5003_v18  ;;  %6543 = vst [vmem:[#allocation61_spill] sm:$0xff] %v5005_v28  ;;  %v5023_v18 = vpop.permute.xlu1 %1662 }
 0x23a   :  { %v969_v31 = vpop.f32.mrf.mxu0 }
 0x23b   :  { %v5007_v59 = vpop.f32.mrf.mxu1 }
 0x23c   :  { %6544 = vst [vmem:[#allocation62_spill] sm:$0xff] %v5007_v59  ;;  %v5009_v40 = vpop.f32.mrf.mxu0 }
 0x23d   :  { %v5011_v32 = vpop.f32.mrf.mxu1  ;;  %v5031_v28 = vpop.permute.xlu1 %1654 }
 0x23e   :  { %6545 = vst [vmem:[#allocation63_spill] sm:$0xff] %v5011_v32  ;;  %v5013_v58 = vpop.f32.mrf.mxu0 }
 0x23f   :  { %v5015_v10 = vpop.f32.mrf.mxu1 }
 0x240   :  { %6546 = vst [vmem:[#allocation64_spill] sm:$0xff] %v5015_v10  ;;  %v1133_v2 = vpop.f32.mrf.mxu0 }
 0x241   :  { %v5017_v60 = vadd.f32 %v1133_v2, %v761_v41  ;;  %v5019_v4 = vpop.f32.mrf.mxu1  ;;  %v1045_v41 = vadd.f32 %v1044_v52, %v4935_v8  ;;  %v5040_v9 = vpop.permute.xlu1 %1650 }
 0x242   :  { %6548 = vst [vmem:[#allocation66_spill] sm:$0xff] %v5019_v4  ;;  %v1135_v44 = vpop.f32.mrf.mxu0  ;;  %v956_v4 = vadd.f32 %v955_v26, %v4951_v53  ;;  %v1053_v26 = vadd.f32 %v1052_v14, %v4941_v39  ;;  %v968_v39 = vadd.f32 %v967_v55, %v4961_v6 }
 0x243   :  { %6547 = vst [vmem:[#allocation65_spill] sm:$0xff] %v5017_v60  ;;  %v5021_v16 = vadd.f32 %v1135_v44, %v763_v3  ;;  %v1416_v50 = vpop.f32.mrf.mxu1 }
 0x244   :  { %v1619_v3 = vadd.f32 %v1416_v50, %v1045_v41  ;;  %v962_v50 = vadd.f32 %v961_v12, %v4955_v43 }
 0x245   :  { %6549 = vst [vmem:[#allocation67_spill] sm:$0xff] %v5021_v16  ;;  %v5025_v59 = vpop.f32.mrf.mxu0  ;;  %v1418_v32 = vpop.f32.mrf.mxu1  ;;  %v1047_v16 = vadd.f32 %v1046_v5, %v4937_v56  ;;  %v964_v56 = vadd.f32 %v963_v11, %v4959_v45 }
 0x246   :  { %v1667_v8 = vadd.f32 %v5040_v9, %v1619_v3  ;;  %v1057_v3 = vadd.f32 %v4989_v13, %v4943_v21 }
 0x247   :  { %v5027_v30 = vpop.f32.mrf.mxu0 }
 0x248   :  { %6550 = vst [vmem:[#allocation68_spill] sm:$0xff] %v5027_v30  ;;  %v1422_v2 = vpop.f32.mrf.mxu1 }
 0x249   :  { %v5029_v37 = vpop.f32.mrf.mxu0  ;;  %v1627_v45 = vadd.f32 %v1422_v2, %v1051_v23 }
 0x24a   :  { %6551 = vst [vmem:[#allocation69_spill] sm:$0xff] %v5029_v37  ;;  %v1424_v37 = vpop.f32.mrf.mxu1 }
 0x24b   :  { %v5033_v10 = vpop.f32.mrf.mxu0 }
 0x24c   :  { %6552 = vst [vmem:[#allocation70_spill] sm:$0xff] %v5033_v10  ;;  %v1620_v10 = vadd.f32 %v1418_v32, %v1047_v16 }
 0x24d   :  { %v5036_v60 = vpop.f32.mrf.mxu0 }
 0x24f   :  { %v1153_v44 = vpop.f32.mrf.mxu0 }
 0x250   :  { %v5042_v57 = vadd.f32 %v1153_v44, %v781_v1  ;;  %v1428_v1 = vpop.f32.mrf.mxu1  ;;  %v1668_v44 = vadd.f32 %v5040_v9, %v1620_v10 }
 0x251   :  { %v1327_v30 = vpop.f32.mrf.mxu0  ;;  %v1635_v21 = vadd.f32 %v1428_v1, %v1057_v3  ;;  %v974_v1 = vadd.f32 %v5009_v40, %v4969_v63 }
 0x252   :  { %v1617_v24 = vadd.f32 %v1327_v30, %v956_v4  ;;  %v1430_v4 = vpop.f32.mrf.mxu1  ;;  %v1700_v10 = vadd.f32 %v1668_v44, %v3999_v49 }
 0x253   :  { %v1329_v52 = vpop.f32.mrf.mxu0 }
 0x254   :  { %v1665_v41 = vadd.f32 %v5040_v9, %v1617_v24  ;;  %v1618_v5 = vadd.f32 %v1329_v52, %v958_v15  ;;  %v1699_v24 = vadd.f32 %v1667_v8, %v3995_v47  ;;  %v1628_v15 = vadd.f32 %v1424_v37, %v1053_v26 }
 0x255   :  { %v1333_v53 = vpop.f32.mrf.mxu0  ;;  %v970_v47 = vadd.f32 %v969_v31, %v4965_v19  ;;  %v5076_v52 = vmax.f32 %v1700_v10, 0.0  ;;  %v1675_v31 = vadd.f32 %v5031_v28, %v1627_v45  ;;  %v5079_v19 = vpop.permute.xlu0 %1658 }
 0x256   :  { %v1697_v61 = vadd.f32 %v1665_v41, %v4086_v38  ;;  %v1666_v30 = vadd.f32 %v5040_v9, %v1618_v5  ;;  %v1625_v32 = vadd.f32 %v1333_v53, %v962_v50  ;;  %v1676_v55 = vadd.f32 %v5031_v28, %v1628_v15 }
 0x257   :  { %v1335_v12 = vpop.f32.mrf.mxu0  ;;  %v5072_v49 = vmax.f32 %v1699_v24, 0.0  ;;  %6556 = vst [vmem:[#allocation74_spill] sm:$0xff] %v5076_v52  ;;  %v1065_v15 = vadd.f32 %v4997_v46, %v4949_v27  ;;  %v6563_v27 = vld [vmem:[#allocation15_spill] sm:$0xff] }
 0x258   :  { %v5056_v43 = vmax.f32 %v1697_v61, 0.0  ;;  %v1698_v11 = vadd.f32 %v1666_v30, %v4010_v54  ;;  %v1626_v14 = vadd.f32 %v1335_v12, %v964_v56  ;;  %v1673_v29 = vadd.f32 %v5031_v28, %v1625_v32  ;;  %v1434_v54 = vpop.f32.mrf.mxu1  ;;  %v6557_v56 = vld [vmem:[#allocation17_spill] sm:$0xff] }
 0x259   :  { %v1339_v38 = vpop.f32.mrf.mxu0  ;;  %6555 = vst [vmem:[#allocation73_spill] sm:$0xff] %v5072_v49  ;;  %v1708_v13 = vadd.f32 %v1676_v55, %v6557_v56  ;;  %v1707_v30 = vadd.f32 %v1675_v31, %v3968_v35  ;;  %v6569_v31 = vld [vmem:[#allocation68_spill] sm:$0xff]  ;;  %v6573_v56 = vld [vmem:[#allocation61_spill] sm:$0xff] }
 0x25a   :  { %6553 = vst [vmem:[#allocation71_spill] sm:$0xff] %v5056_v43  ;;  %v5061_v16 = vmax.f32 %v1698_v11, 0.0  ;;  %v1674_v20 = vadd.f32 %v5031_v28, %v1626_v14  ;;  %1761 = vrot.lane.b32.xlu1 %v5056_v43, %s3848_s21  ;;  %v1633_v2 = vadd.f32 %v1339_v38, %v968_v39  ;;  %v1705_v50 = vadd.f32 %v1673_v29, %v4061_v17  ;;  %v1436_v5 = vpop.f32.mrf.mxu1 }
 0x25b   :  { %v1341_v37 = vpop.f32.mrf.mxu0  ;;  %v976_v17 = vadd.f32 %v5013_v58, %v4973_v62  ;;  %v5108_v58 = vmax.f32 %v1708_v13, 0.0  ;;  %v1683_v62 = vadd.f32 %v5079_v19, %v1635_v21  ;;  %v5116_v11 = vmax.f32 %v1707_v30, 0.0 }
 0x25c   :  { %6554 = vst [vmem:[#allocation72_spill] sm:$0xff] %v5061_v16  ;;  %v1706_v6 = vadd.f32 %v1674_v20, %v3984_v42  ;;  %1769 = vrot.lane.b32.xlu0 %v5061_v16, %s3848_s21  ;;  %v1634_v41 = vadd.f32 %v1341_v37, %v970_v47  ;;  %v1059_v42 = vadd.f32 %v4993_v33, %v4945_v7  ;;  %v5097_v7 = vmax.f32 %v1705_v50, 0.0  ;;  %v5104_v23 = vpop.f32.mrf.mxu1 }
 0x25d   :  { %v1345_v8 = vpop.f32.mrf.mxu0  ;;  %v1681_v44 = vadd.f32 %v5079_v19, %v1633_v2  ;;  %6560 = vst [vmem:[#allocation76_spill] sm:$0xff] %v5108_v58  ;;  %6561 = vst [vmem:[#allocation77_spill] sm:$0xff] %v5116_v11  ;;  %v1715_v10 = vadd.f32 %v1683_v62, %v6563_v27  ;;  %v1140_v37 = vadd.f32 %v5025_v59, %v4979_v25  ;;  %v6576_v62 = vld [vmem:[#allocation56_spill] sm:$0xff] }
 0x25e   :  { %1777 = vrot.lane.b32.xlu1 %v5072_v49, %s3848_s21  ;;  %v5087_v53 = vmax.f32 %v1706_v6, 0.0  ;;  %v1636_v33 = vadd.f32 %v1430_v4, %v1059_v42  ;;  %6559 = vst [vmem:[#allocation75_spill] sm:$0xff] %v5097_v7  ;;  %v1682_v32 = vadd.f32 %v5079_v19, %v1634_v41  ;;  %v1641_v14 = vadd.f32 %v1345_v8, %v974_v1  ;;  %v1596_v39 = vpop.f32.mrf.mxu1  ;;  %v6568_v8 = vld [vmem:[#allocation55_spill] sm:$0xff]  ;;  %v6570_v42 = vld [vmem:[#allocation18_spill] sm:$0xff] }
 0x25f   :  { %v1347_v26 = vpop.f32.mrf.mxu0  ;;  %v1713_v35 = vadd.f32 %v1681_v44, %v4037_v0  ;;  %v1063_v0 = vadd.f32 %v4995_v48, %v4947_v22  ;;  %v1644_v4 = vadd.f32 %v1436_v5, %v1065_v15  ;;  %v6565_v22 = vld [vmem:[#allocation16_spill] sm:$0xff]  ;;  %v1142_v50 = vadd.f32 %v6569_v31, %v6568_v8  ;;  %v6578_v15 = vld [vmem:[#allocation13_spill] sm:$0xff]  ;;  %v6588_v31 = vld [vmem:[#allocation58_spill] sm:$0xff] }
 0x260   :  { %6558 = vst [vmem:[#allocation17_spill] sm:$0xff] %v5087_v53  ;;  %1785 = vrot.lane.b32.xlu0 %v5076_v52, %s3848_s21  ;;  %v1642_v24 = vadd.f32 %v1347_v26, %v976_v17  ;;  %v1684_v40 = vadd.f32 %v5079_v19, %v1636_v33  ;;  %v1714_v63 = vadd.f32 %v1682_v32, %v3965_v34  ;;  %v5140_v55 = vpop.f32.mrf.mxu1  ;;  %v6572_v26 = vld [vmem:[#allocation40_spill] sm:$0xff] }
 0x261   :  { %v5094_v61 = vpop.f32.mrf.mxu0  ;;  %v5124_v38 = vmax.f32 %v1713_v35, 0.0  ;;  %v1225_v34 = vadd.f32 %v5001_v51, %v4957_v36  ;;  %v1643_v29 = vadd.f32 %v1434_v54, %v1063_v0  ;;  %v1689_v48 = vadd.f32 %v5023_v18, %v1641_v14  ;;  %v6566_v51 = vld [vmem:[#allocation14_spill] sm:$0xff]  ;;  %v6574_v17 = vld [vmem:[#allocation12_spill] sm:$0xff]  ;;  %v6577_v35 = vld [vmem:[#allocation69_spill] sm:$0xff] }
 0x262   :  { %1771 = vrot.lane.b32.xlu1 %v5087_v53, %s3848_s21  ;;  %v1690_v46 = vadd.f32 %v5023_v18, %v1642_v24  ;;  %v5132_v20 = vmax.f32 %v1714_v63, 0.0  ;;  %v1716_v47 = vadd.f32 %v1684_v40, %v6565_v22  ;;  %v1692_v2 = vadd.f32 %v5023_v18, %v1644_v4  ;;  %v1602_v21 = vpop.f32.mrf.mxu1 }
 0x263   :  { %v5106_v12 = vpop.f32.mrf.mxu0  ;;  %6562 = vst [vmem:[#allocation78_spill] sm:$0xff] %v5124_v38  ;;  %v1624_v3 = vadd.f32 %v1596_v39, %v1225_v34  ;;  %v5146_v54 = vmax.f32 %v1715_v10, 0.0  ;;  %v1691_v41 = vadd.f32 %v5023_v18, %v1643_v29  ;;  %v1721_v59 = vadd.f32 %v1689_v48, %v6570_v42  ;;  %v6580_v39 = vld [vmem:[#allocation57_spill] sm:$0xff] }
 0x264   :  { %1763 = vrot.lane.b32.xlu0 %v5097_v7, %s3848_s21  ;;  %6564 = vst [vmem:[#allocation15_spill] sm:$0xff] %v5132_v20  ;;  %v1722_v36 = vadd.f32 %v1690_v46, %v6566_v51  ;;  %v5154_v5 = vmax.f32 %v1716_v47, 0.0  ;;  %v1231_v13 = vadd.f32 %v6573_v56, %v6572_v26  ;;  %v1724_v30 = vadd.f32 %v1692_v2, %v6574_v17  ;;  %v1606_v46 = vpop.f32.mrf.mxu1  ;;  %v6583_v34 = vld [vmem:[#allocation29_spill] sm:$0xff]  ;;  %v6590_v26 = vld [vmem:[#allocation27_spill] sm:$0xff] }
 0x265   :  { %v1511_v45 = vpop.f32.mrf.mxu0  ;;  %6567 = vst [vmem:[#allocation16_spill] sm:$0xff] %v5146_v54  ;;  %v1672_v33 = vadd.f32 %v5040_v9, %v1624_v3  ;;  %v1146_v24 = vadd.f32 %v6577_v35, %v6576_v62  ;;  %v1723_v40 = vadd.f32 %v1691_v41, %v6578_v15  ;;  %v5167_v14 = vmax.f32 %v1721_v59, 0.0  ;;  %v6584_v47 = vld [vmem:[#allocation37_spill] sm:$0xff] }
 0x266   :  { %1787 = vrot.lane.b32.xlu1 %v5108_v58, %s3848_s21  ;;  %v1629_v25 = vadd.f32 %v1511_v45, %v1140_v37  ;;  %6571 = vst [vmem:[#allocation14_spill] sm:$0xff] %v5154_v5  ;;  %v5160_v32 = vmax.f32 %v1722_v36, 0.0  ;;  %v1632_v63 = vadd.f32 %v1602_v21, %v1231_v13  ;;  %v6581_v45 = vld [vmem:[#allocation70_spill] sm:$0xff]  ;;  %v5174_v10 = vmax.f32 %v1724_v30, 0.0  ;;  %v6587_v51 = vld [vmem:[#allocation33_spill] sm:$0xff]  ;;  %v1608_v41 = vpop.f32.mrf.mxu1  ;;  %v6591_v21 = vld [vmem:[#allocation39_spill] sm:$0xff] }
 0x267   :  { %v1513_v6 = vpop.f32.mrf.mxu0  ;;  %6579 = vst [vmem:[#allocation68_spill] sm:$0xff] %v5167_v14  ;;  %v1148_v4 = vadd.f32 %v6581_v45, %v6580_v39  ;;  %v1704_v29 = vadd.f32 %v1672_v33, %v6583_v34  ;;  %v6585_v37 = vld [vmem:[#allocation62_spill] sm:$0xff]  ;;  %v5182_v2 = vmax.f32 %v1723_v40, 0.0  ;;  %v6595_v35 = vld [vmem:[#allocation53_spill] sm:$0xff]  ;;  %v6598_v45 = vld [vmem:[#allocation32_spill] sm:$0xff] }
 0x268   :  { %1779 = vrot.lane.b32.xlu0 %v5116_v11, %s3848_s21  ;;  %6575 = vst [vmem:[#allocation55_spill] sm:$0xff] %v5160_v32  ;;  %v1630_v1 = vadd.f32 %v1513_v6, %v1142_v50  ;;  %v1677_v0 = vadd.f32 %v5031_v28, %v1629_v25  ;;  %6582 = vst [vmem:[#allocation18_spill] sm:$0xff] %v5174_v10  ;;  %v1235_v6 = vadd.f32 %v6585_v37, %v6584_v47  ;;  %v6593_v30 = vld [vmem:[#allocation26_spill] sm:$0xff]  ;;  %v1612_v40 = vpop.f32.mrf.mxu1  ;;  %v6600_v34 = vld [vmem:[#allocation24_spill] sm:$0xff] }
 0x269   :  { %v1517_v44 = vpop.f32.mrf.mxu0  ;;  %6586 = vst [vmem:[#allocation40_spill] sm:$0xff] %v5182_v2  ;;  %v1680_v3 = vadd.f32 %v5031_v28, %v1632_v63  ;;  %v1152_v50 = vadd.f32 %v5036_v60, %v6588_v31  ;;  %v5190_v59 = vmax.f32 %v1704_v29, 0.0  ;;  %v6602_v47 = vld [vmem:[#allocation66_spill] sm:$0xff] }
 0x26a   :  { %1765 = vrot.lane.b32.xlu1 %v5124_v38, %s3848_s21  ;;  %v1678_v48 = vadd.f32 %v5031_v28, %v1630_v1  ;;  %v1637_v22 = vadd.f32 %v1517_v44, %v1146_v24  ;;  %v1709_v36 = vadd.f32 %v1677_v0, %v6587_v51  ;;  %v1639_v25 = vadd.f32 %v1606_v46, %v1235_v6  ;;  %v6592_v44 = vld [vmem:[#allocation63_spill] sm:$0xff]  ;;  %v6596_v24 = vld [vmem:[#allocation64_spill] sm:$0xff]  ;;  %v1614_v6 = vpop.f32.mrf.mxu1 }
 0x26b   :  { %v1519_v27 = vpop.f32.mrf.mxu0  ;;  %6589 = vst [vmem:[#allocation61_spill] sm:$0xff] %v5190_v59  ;;  %v1237_v17 = vadd.f32 %v6592_v44, %v6591_v21  ;;  %v1712_v33 = vadd.f32 %v1680_v3, %v6593_v30  ;;  %v1241_v15 = vadd.f32 %v6596_v24, %v6595_v35  ;;  %v6603_v3 = vld [vmem:[#allocation22_spill] sm:$0xff]  ;;  %v6611_v30 = vld [vmem:[#allocation60_spill] sm:$0xff] }
 0x26c   :  { %1773 = vrot.lane.b32.xlu0 %v5132_v20, %s3848_s21  ;;  %v1638_v8 = vadd.f32 %v1519_v27, %v1148_v4  ;;  %v1710_v56 = vadd.f32 %v1678_v48, %v6590_v26  ;;  %v1685_v13 = vadd.f32 %v5079_v19, %v1637_v22  ;;  %v5199_v1 = vmax.f32 %v1709_v36, 0.0  ;;  %v6601_v22 = vld [vmem:[#allocation54_spill] sm:$0xff]  ;;  %v6607_v26 = vld [vmem:[#allocation31_spill] sm:$0xff] }
 0x26d   :  { %v1523_v42 = vpop.f32.mrf.mxu0  ;;  %v1687_v63 = vadd.f32 %v5079_v19, %v1639_v25  ;;  %v1640_v0 = vadd.f32 %v1608_v41, %v1237_v17  ;;  %v5212_v46 = vmax.f32 %v1712_v33, 0.0  ;;  %v1647_v27 = vadd.f32 %v1612_v40, %v1241_v15  ;;  %v6615_v40 = vld [vmem:[#allocation34_spill] sm:$0xff] }
 0x26e   :  { %1781 = vrot.lane.b32.xlu1 %v5146_v54, %s3848_s21  ;;  %6594 = vst [vmem:[#allocation12_spill] sm:$0xff] %v5199_v1  ;;  %v1686_v60 = vadd.f32 %v5079_v19, %v1638_v8  ;;  %v1645_v62 = vadd.f32 %v1523_v42, %v1152_v50  ;;  %v5207_v39 = vmax.f32 %v1710_v56, 0.0  ;;  %v1717_v4 = vadd.f32 %v1685_v13, %v6598_v45  ;;  %v6604_v8 = vld [vmem:[#allocation65_spill] sm:$0xff]  ;;  %v6608_v13 = vld [vmem:[#allocation59_spill] sm:$0xff] }
 0x26f   :  { %6599 = vst [vmem:[#allocation69_spill] sm:$0xff] %v5212_v46  ;;  %v1243_v37 = vadd.f32 %v6602_v47, %v6601_v22  ;;  %v1719_v51 = vadd.f32 %v1687_v63, %v6603_v3  ;;  %v1688_v36 = vadd.f32 %v5079_v19, %v1640_v0  ;;  %v1621_v31 = vadd.f32 %v5094_v61, %v6604_v8  ;;  %v6610_v61 = vld [vmem:[#allocation23_spill] sm:$0xff]  ;;  %v1525_v47 = vpop.f32.mrf.mxu0  ;;  %v6625_v8 = vld [vmem:[#allocation30_spill] sm:$0xff] }
 0x270   :  { %1789 = vrot.lane.b32.xlu0 %v5154_v5, %s3848_s21  ;;  %6597 = vst [vmem:[#allocation56_spill] sm:$0xff] %v5207_v39  ;;  %v1718_v29 = vadd.f32 %v1686_v60, %v6600_v34  ;;  %v1693_v48 = vadd.f32 %v5023_v18, %v1645_v62  ;;  %v5224_v50 = vmax.f32 %v1717_v4, 0.0  ;;  %v1695_v41 = vadd.f32 %v5023_v18, %v1647_v27  ;;  %v6612_v60 = vld [vmem:[#allocation19_spill] sm:$0xff]  ;;  %v6618_v27 = vld [vmem:[#allocation20_spill] sm:$0xff] }
 0x271   :  { %v1648_v42 = vadd.f32 %v1614_v6, %v1243_v37  ;;  %v1623_v19 = vadd.f32 %v5104_v23, %v6608_v13  ;;  %v5236_v21 = vmax.f32 %v1719_v51, 0.0  ;;  %v1720_v44 = vadd.f32 %v1688_v36, %v6610_v61  ;;  %v6617_v45 = vld [vmem:[#allocation67_spill] sm:$0xff]  ;;  %v6621_v37 = vld [vmem:[#allocation25_spill] sm:$0xff] }
 0x272   :  { %1775 = vrot.lane.b32.xlu1 %v5160_v32, %s3848_s21  ;;  %6605 = vst [vmem:[#allocation13_spill] sm:$0xff] %v5224_v50  ;;  %v5229_v25 = vmax.f32 %v1718_v29, 0.0  ;;  %v1725_v56 = vadd.f32 %v1693_v48, %v6607_v26  ;;  %v1669_v17 = vadd.f32 %v5040_v9, %v1621_v31  ;;  %v1631_v33 = vadd.f32 %v5140_v55, %v6611_v30  ;;  %v6619_v29 = vld [vmem:[#allocation28_spill] sm:$0xff]  ;;  %v6627_v26 = vld [vmem:[#allocation21_spill] sm:$0xff] }
 0x273   :  { %6609 = vst [vmem:[#allocation70_spill] sm:$0xff] %v5236_v21  ;;  %v1727_v62 = vadd.f32 %v1695_v41, %v6612_v60  ;;  %v1696_v35 = vadd.f32 %v5023_v18, %v1648_v42  ;;  %v1671_v23 = vadd.f32 %v5040_v9, %v1623_v19  ;;  %v5251_v15 = vmax.f32 %v1720_v44, 0.0  ;;  %v5299_v13 = vld [vmem:[#allocation5 + $0x20] sm:$0xff]  ;;  %v5307_v19 = vld [vmem:[#allocation5 + $0x30] sm:$0xff] }
 0x274   :  { %1767 = vrot.lane.b32.xlu0 %v5167_v14, %s3848_s21  ;;  %6606 = vst [vmem:[#allocation57_spill] sm:$0xff] %v5229_v25  ;;  %v5246_v24 = vmax.f32 %v1725_v56, 0.0  ;;  %v1701_v63 = vadd.f32 %v1669_v17, %v6615_v40  ;;  %v1679_v55 = vadd.f32 %v5031_v28, %v1631_v33  ;;  %v1622_v4 = vadd.f32 %v5106_v12, %v6617_v45 }
 0x275   :  { %6614 = vst [vmem:[#allocation37_spill] sm:$0xff] %v5251_v15  ;;  %v5257_v0 = vmax.f32 %v1727_v62, 0.0  ;;  %v1728_v34 = vadd.f32 %v1696_v35, %v6618_v27  ;;  %v1703_v48 = vadd.f32 %v1671_v23, %v6619_v29  ;;  %v1646_v51 = vadd.f32 %v1525_v47, %v5042_v57  ;;  %v5294_v57 = vld [vmem:[#allocation5 + $0x38] sm:$0xff] }
 0x276   :  { %1791 = vrot.lane.b32.xlu1 %v5174_v10, %s3848_s21  ;;  %6613 = vst [vmem:[#allocation29_spill] sm:$0xff] %v5246_v24  ;;  %v5265_v22 = vmax.f32 %v1701_v63, 0.0  ;;  %v1711_v28 = vadd.f32 %v1679_v55, %v6621_v37  ;;  %v1670_v6 = vadd.f32 %v5040_v9, %v1622_v4  ;;  %v5285_v9 = vld [vmem:[#allocation5 + $0x28] sm:$0xff]  ;;  %v6629_v27 = vld [vmem:[#allocation36_spill] sm:$0xff] }
 0x277   :  { %6616 = vst [vmem:[#allocation62_spill] sm:$0xff] %v5257_v0  ;;  %v5271_v3 = vmax.f32 %v1728_v34, 0.0  ;;  %v5275_v12 = vmax.f32 %v1703_v48, 0.0  ;;  %v1694_v41 = vadd.f32 %v5023_v18, %v1646_v51  ;;  %vm6630_vm10 = vcmp.lt.s32.totalorder %v6629_v27, 1 }
 0x278   :  { %1783 = vrot.lane.b32.xlu0 %v5182_v2, %s3848_s21  ;;  %6620 = vst [vmem:[#allocation33_spill] sm:$0xff] %v5265_v22  ;;  %v5280_v36 = vmax.f32 %v1711_v28, 0.0  ;;  %v1702_v31 = vadd.f32 %v1670_v6, %v6625_v8  ;;  %vm6632_vm4 = vmmov %vm6630_vm10 }
 0x279   :  { %6622 = vst [vmem:[#allocation58_spill] sm:$0xff] %v5271_v3  ;;  %6623 = vst [vmem:[#allocation27_spill] sm:$0xff] %v5275_v12  ;;  %v1726_v56 = vadd.f32 %v1694_v41, %v6627_v26  ;;  %v3771_v41 = vld [vmem:[#allocation5 + $0x10] sm:$0xff] }
 0x27a   :  { %1817 = vrot.lane.b32.xlu1 %v5190_v59, %s3848_s21  ;;  %6624 = vst [vmem:[#allocation39_spill] sm:$0xff] %v5280_v36  ;;  %v5290_v42 = vmax.f32 %v1702_v31, 0.0  ;;  %vm6633_vm15 = vmmov %vm6632_vm4 }
 0x27b   :  { %v5303_v18 = vmax.f32 %v1726_v56, 0.0  ;;  %vm6635_vm5 = vmmov %vm6632_vm4  ;;  %v3772_v56 = vld [vmem:[#allocation5] sm:$0xff] }
 0x27c   :  { %1795 = vrot.lane.b32.xlu0 %v5199_v1, %s3848_s21  ;;  %6626 = vst [vmem:[#allocation63_spill] sm:$0xff] %v5290_v42 }
 0x27d   :  { %6628 = vst [vmem:[#allocation26_spill] sm:$0xff] %v5303_v18 }
 0x27e   :  { %1803 = vrot.lane.b32.xlu1 %v5207_v39, %s3848_s21 }
 0x280   :  { %1819 = vrot.lane.b32.xlu0 %v5212_v46, %s3848_s21 }
 0x282   :  { %1797 = vrot.lane.b32.xlu1 %v5224_v50, %s3848_s21 }
 0x284   :  { %1805 = vrot.lane.b32.xlu0 %v5229_v25, %s3848_s21 }
 0x286   :  { %1813 = vrot.lane.b32.xlu1 %v5236_v21, %s3848_s21 }
 0x288   :  { %1799 = vrot.lane.b32.xlu0 %v5246_v24, %s3848_s21 }
 0x28a   :  { %1821 = vrot.lane.b32.xlu1 %v5251_v15, %s3848_s21 }
 0x28c   :  { %1815 = vrot.lane.b32.xlu0 %v5257_v0, %s3848_s21 }
 0x28e   :  { %1793 = vrot.lane.b32.xlu1 %v5265_v22, %s3848_s21 }
 0x290   :  { %1823 = vrot.lane.b32.xlu0 %v5271_v3, %s3848_s21 }
 0x292   :  { %1809 = vrot.lane.b32.xlu1 %v5275_v12, %s3848_s21 }
 0x294   :  { %1811 = vrot.lane.b32.xlu0 %v5280_v36, %s3848_s21 }
 0x296   :  { %2391 = vrot.lane.b32.xlu1 %v5285_v9, %s3846_s0 }
 0x298   :  { %1801 = vrot.lane.b32.xlu0 %v5290_v42, %s3848_s21 }
 0x29a   :  { %2395 = vrot.lane.b32.xlu1 %v5294_v57, %s3846_s0 }
 0x29c   :  { %2389 = vrot.lane.b32.xlu0 %v5299_v13, %s3846_s0 }
 0x29e   :  { %1807 = vrot.lane.b32.xlu1 %v5303_v18, %s3848_s21 }
 0x2a0   :  { %2393 = vrot.lane.b32.xlu0 %v5307_v19, %s3846_s0 }
 0x2a2   :  { %1911 = vrot.lane.b32.xlu1 %v5182_v2, %s3850_s22 }
 0x2a4   :  { %1903 = vrot.lane.b32.xlu0 %v5160_v32, %s3850_s22 }
 0x2a6   :  { %1927 = vrot.lane.b32.xlu1 %v5246_v24, %s3850_s22 }
 0x2a8   :  { %1919 = vrot.lane.b32.xlu0 %v5174_v10, %s3850_s22 }
 0x2aa   :  { %1901 = vrot.lane.b32.xlu1 %v5132_v20, %s3850_s22 }
 0x2ac   :  { %1895 = vrot.lane.b32.xlu0 %v5167_v14, %s3850_s22 }
 0x2ae   :  { %1917 = vrot.lane.b32.xlu1 %v5154_v5, %s3850_s22 }
 0x2b0   :  { %1909 = vrot.lane.b32.xlu0 %v5146_v54, %s3850_s22 }
 0x2b2   :  { %1893 = vrot.lane.b32.xlu1 %v5124_v38, %s3850_s22 }
 0x2b4   :  { %1925 = vrot.lane.b32.xlu0 %v5224_v50, %s3850_s22 }
 0x2b6   :  { %1907 = vrot.lane.b32.xlu1 %v5116_v11, %s3850_s22 }
 0x2b8   :  { %1899 = vrot.lane.b32.xlu0 %v5087_v53, %s3850_s22 }
 0x2ba   :  { %1923 = vrot.lane.b32.xlu1 %v5199_v1, %s3850_s22 }
 0x2bc   :  { %1915 = vrot.lane.b32.xlu0 %v5108_v58, %s3850_s22 }
 0x2be   :  { %1897 = vrot.lane.b32.xlu1 %v5061_v16, %s3850_s22 }
 0x2c0   :  { %1891 = vrot.lane.b32.xlu0 %v5097_v7, %s3850_s22 }
 0x2c2   :  { %1913 = vrot.lane.b32.xlu1 %v5076_v52, %s3850_s22 }
 0x2c4   :  { %1905 = vrot.lane.b32.xlu0 %v5072_v49, %s3850_s22 }
 0x2c6   :  { %1889 = vrot.lane.b32.xlu1 %v5056_v43, %s3850_s22 }
 0x2c8   :  { %1921 = vrot.lane.b32.xlu0 %v5265_v22, %s3850_s22 }
 0x2ca   :  { %2763 = vrot.lane.b32.xlu1 %v5285_v9, %s3847_s1 }
 0x2cc   :  { %v5355_v61 = vpop.permute.xlu1 %1761  ;;  %2761 = vrot.lane.b32.xlu0 %v5299_v13, %s3847_s1 }
 0x2ce   :  { %1943 = vrot.lane.b32.xlu1 %v5257_v0, %s3850_s22  ;;  %v5361_v44 = vpop.permute.xlu0 %1769 }
 0x2d0   :  { %v1778_v17 = vpop.permute.xlu1 %1777  ;;  %1941 = vrot.lane.b32.xlu0 %v5236_v21, %s3850_s22 }
 0x2d2   :  { %1933 = vrot.lane.b32.xlu1 %v5229_v25, %s3850_s22  ;;  %v5367_v30 = vpop.permute.xlu0 %1785 }
 0x2d4   :  { %v5369_v33 = vpop.permute.xlu1 %1771  ;;  %2765 = vrot.lane.b32.xlu0 %v5307_v19, %s3847_s1 }
 0x2d6   :  { %1949 = vrot.lane.b32.xlu1 %v5251_v15, %s3850_s22  ;;  %v5375_v60 = vpop.permute.xlu0 %1763 }
 0x2d8   :  { %v5377_v62 = vpop.permute.xlu1 %1787  ;;  %1939 = vrot.lane.b32.xlu0 %v5280_v36, %s3850_s22 }
 0x2da   :  { %1931 = vrot.lane.b32.xlu1 %v5207_v39, %s3850_s22  ;;  %v1780_v35 = vpop.permute.xlu0 %1779 }
 0x2dc   :  { %1935 = vrot.lane.b32.xlu0 %v5303_v18, %s3850_s22  ;;  %v5385_v23 = vpop.permute.xlu1 %1765 }
 0x2de   :  { %1947 = vrot.lane.b32.xlu1 %v5212_v46, %s3850_s22  ;;  %v5389_v40 = vpop.permute.xlu0 %1773 }
 0x2e0   :  { %1951 = vrot.lane.b32.xlu0 %v5271_v3, %s3850_s22  ;;  %v1782_v63 = vpop.permute.xlu1 %1781 }
 0x2e1   :  { %v1847_v8 = vsel %vm6635_vm5, %v5389_v40, %v1782_v63  ;;  %vm6639_vm5 = vmmov %vm6632_vm4 }
 0x2e2   :  { %1937 = vrot.lane.b32.xlu1 %v5275_v12, %s3850_s22  ;;  %v5395_v55 = vpop.permute.xlu0 %1789 }
 0x2e3   :  { %v1843_v28 = vsel %vm6632_vm4, %v1782_v63, %v5395_v55 }
 0x2e4   :  { %1929 = vrot.lane.b32.xlu0 %v5290_v42, %s3850_s22  ;;  %v1776_v45 = vpop.permute.xlu1 %1775 }
 0x2e6   :  { %2767 = vrot.lane.b32.xlu1 %v5294_v57, %s3847_s1  ;;  %v5401_v4 = vpop.permute.xlu0 %1767 }
 0x2e7   :  { %v1852_v34 = vsel %vm6630_vm10, %v5401_v4, %v1776_v45  ;;  %vm6634_vm10 = vmmov %vm6632_vm4 }
 0x2e8   :  { %1945 = vrot.lane.b32.xlu0 %v5190_v59, %s3850_s22  ;;  %v5408_v29 = vpop.permute.xlu1 %1791  ;;  %v1882_v47 = vsel %vm4303_vm3, %v5160_v32, %v1852_v34 }
 0x2e9   :  { %2057 = vmatprep.subr.mxu0 %v1882_v47  ;;  %v1842_v47 = vsel %vm6632_vm4, %v1780_v35, %v5377_v62 }
 0x2ea   :  { %v1784_v37 = vpop.permute.xlu0 %1783 }
 0x2eb   :  { %v1844_v6 = vsel %vm6633_vm15, %v1784_v37, %v5408_v29  ;;  %v1848_v51 = vsel %vm6634_vm10, %v1776_v45, %v1784_v37  ;;  %vm6638_vm15 = vmmov %vm6632_vm4  ;;  %v1876_v37 = vsel %vm4215_vm1, %v5154_v5, %v1843_v28  ;;  %v1868_v28 = vsel %vm4215_vm1, %v5108_v58, %v1842_v47 }
 0x2ec   :  { %v5424_v31 = vpop.permute.xlu1 %1817  ;;  %v1884_v26 = vsel %vm4215_vm1, %v5174_v10, %v1844_v6  ;;  %v1883_v34 = vsel %vm4234_vm2, %v5182_v2, %v1848_v51  ;;  %v1846_v45 = vsel %vm6638_vm15, %v5369_v33, %v1780_v35  ;;  %v1841_v6 = vsel %vm6639_vm5, %v1778_v17, %v5367_v30  ;;  %vm6640_vm10 = vmmov %vm6632_vm4 }
 0x2ed   :  { %2146 = vmatprep.subr.mxu1 %v1884_v26  ;;  %v1875_v51 = vsel %vm4234_vm2, %v5146_v54, %v1847_v8  ;;  %v1845_v35 = vsel %vm6640_vm10, %v5361_v44, %v1778_v17  ;;  %v1860_v8 = vsel %vm4215_vm1, %v5076_v52, %v1841_v6  ;;  %v3852_v47 = vmov 99   ;;  %vm6646_vm10 = vmmov %vm6639_vm5 }
 0x2ee   :  { %2147 = vmatpush1.msra.mxu1 %v1883_v34  ;;  %v5438_v63 = vpop.permute.xlu0 %1795  ;;  %v1867_v34 = vsel %vm4234_vm2, %v5116_v11, %v1846_v45  ;;  %v1859_v17 = vsel %vm4234_vm2, %v5072_v49, %v1845_v35  ;;  %3766 = vset.pattern.permute.xlu0 %v3852_v47  ;;  %vm6641_vm4 = vcmask 261120   ;;  %v3770_v45 = vld [vmem:[#allocation5 + $0x18] sm:$0xff] }
 0x2ef   :  { %2148 = vmatprep.subr.mxu1 %v1876_v37  ;;  %3178 = vperm.xlu0 %3766, %v3770_v45   ;;  %vm6643_vm1 = vmmov %vm6641_vm4 }
 0x2f0   :  { %v5452_v26 = vpop.permute.xlu1 %1803  ;;  %2149 = vmatpush1.msra.mxu1 %v1875_v51  ;;  %3767 = vset.pattern.permute.xlu1 %v3852_v47  ;;  %vm6644_vm2 = vmmov %vm6643_vm1 }
 0x2f1   :  { %2150 = vmatprep.subr.mxu1 %v1868_v28  ;;  %3174 = vperm.xlu1 %3767, %v3771_v41   ;;  %vm6645_vm15 = vmmov %vm6643_vm1  ;;  %v1851_v41 = vsel %vm6639_vm5, %v5385_v23, %v5389_v40 }
 0x2f2   :  { %2151 = vmatpush1.msra.mxu1 %v1867_v34  ;;  %v5460_v37 = vpop.permute.xlu0 %1819  ;;  %v6642_v34 = vmov 0.0  }
 0x2f3   :  { %2152 = vmatprep.subr.mxu1 %v1860_v8  ;;  %3166 = vperm.xlu0 %3766, %v3772_v56   ;;  %v3773_v8 = vld [vmem:[#allocation5 + $0x8] sm:$0xff] }
 0x2f4   :  { %v5468_v51 = vpop.permute.xlu1 %1797  ;;  %2153 = vmatpush1.msra.mxu1 %v1859_v17 }
 0x2f5   :  { %3695 = vmatmul.mubr.msk.f32.vlgmr.msra.gmra.mxu1 %vm6641_vm4, %v5299_v13  ;;  %3170 = vperm.xlu1 %3767, %v3773_v8   ;;  %vm6647_vm4 = vmmov %vm6639_vm5 }
 0x2f6   :  { %v1806_v28 = vpop.permute.xlu0 %1805  ;;  %2192 = vmatprep.mubr.f32.mxu1 %v6642_v34 }
 0x2f8   :  { %v1814_v6 = vpop.permute.xlu1 %1813 }
 0x2f9   :  { %3696 = vmatmul.mubr.msk.f32.gmra.mxu1 %vm6643_vm1, %v5285_v9  ;;  %vm6648_vm1 = vmmov %vm6647_vm4 }
 0x2fa   :  { %v1800_v35 = vpop.permute.xlu0 %1799  ;;  %2198 = vmatprep.mubr.f32.mxu1 %v6642_v34  ;;  %vm6652_vm5 = vmmov %vm6648_vm1 }
 0x2fb   :  { %v1854_v5 = vsel %vm6652_vm5, %v5460_v37, %v5375_v60  ;;  %vm6657_vm5 = vcmask 261120  }
 0x2fc   :  { %v1822_v17 = vpop.permute.xlu1 %1821 }
 0x2fd   :  { %3697 = vmatmul.mubr.msk.f32.gmra.mxu1 %vm6644_vm2, %v5307_v19  ;;  %v1855_v8 = vsel %vm6646_vm10, %v1822_v17, %v5385_v23  ;;  %vm6649_vm2 = vmmov %vm6648_vm1 }
 0x2fe   :  { %v1816_v45 = vpop.permute.xlu0 %1815  ;;  %2204 = vmatprep.mubr.f32.mxu1 %v6642_v34  ;;  %v1850_v11 = vsel %vm6649_vm2, %v5375_v60, %v5369_v33  ;;  %v1874_v33 = vsel %vm4303_vm3, %v5132_v20, %v1851_v41  ;;  %vm6653_vm10 = vmmov %vm6648_vm1 }
 0x2ff   :  { %v1866_v60 = vsel %vm4303_vm3, %v5087_v53, %v1850_v11 }
 0x300   :  { %v5479_v47 = vpop.permute.xlu1 %1793 }
 0x301   :  { %3698 = vmatmul.mubr.msk.f32.gmra.mxu1 %vm6645_vm15, %v5294_v57  ;;  %vm6650_vm15 = vcmp.eq.s32.totalorder %v6629_v27, 0 }
 0x302   :  { %v1824_v56 = vpop.permute.xlu0 %1823  ;;  %2364 = vmatprep.mubr.f32.mxu1 %v6642_v34 }
 0x303   :  { %v1828_v49 = vsel %vm6647_vm4, %v1816_v45, %v1824_v56  ;;  %v1856_v52 = vsel %vm6648_vm1, %v1824_v56, %v5401_v4  ;;  %vm6654_vm4 = vmmov %vm6650_vm15 }
 0x304   :  { %v1810_v40 = vpop.permute.xlu1 %1809  ;;  %v1881_v58 = vsel %vm6650_vm15, %v5167_v14, %v1856_v52  ;;  %v1888_v23 = vsel %vm4325_vm6, %v5271_v3, %v1828_v49  ;;  %v1849_v52 = vsel %vm6653_vm10, %v5355_v61, %v5361_v44  ;;  %v1873_v49 = vsel %vm6654_vm4, %v5124_v38, %v1855_v8  ;;  %vm6655_vm2 = vmmov %vm6654_vm4 }
 0x305   :  { %2058 = vmatpush1.msra.mxu0 %v1881_v58  ;;  %2324 = vmatprep.subr.mxu1 %v1888_v23  ;;  %v1853_v58 = vsel %vm6648_vm1, %v5424_v31, %v5355_v61  ;;  %v1865_v44 = vsel %vm6655_vm2, %v5097_v7, %v1854_v5  ;;  %v1858_v56 = vsel %vm4303_vm3, %v5061_v16, %v1849_v52  ;;  %vm6656_vm15 = vmmov %vm6655_vm2 }
 0x306   :  { %2059 = vmatprep.subr.mxu0 %v1874_v33  ;;  %v1812_v4 = vpop.permute.xlu0 %1811  ;;  %v1857_v61 = vsel %vm6656_vm15, %v5056_v43, %v1853_v58  ;;  %vm6658_vm10 = vmmov %vm6648_vm1  ;;  %v1840_v52 = vsel %vm6648_vm1, %v5408_v29, %v1800_v35 }
 0x307   :  { %2060 = vmatpush1.msra.mxu0 %v1873_v49  ;;  %v1827_v48 = vsel %vm6658_vm10, %v1814_v6, %v1822_v17  ;;  %vm6659_vm3 = vmmov %vm6657_vm5 }
 0x308   :  { %v5527_v41 = vpop.permute.xlu1 %2391  ;;  %2061 = vmatprep.subr.mxu0 %v1866_v60  ;;  %vm6660_vm4 = vmmov %vm6648_vm1 }
 0x309   :  { %2062 = vmatpush1.msra.mxu0 %v1865_v44  ;;  %v1831_v33 = vsel %vm6660_vm4, %v1806_v28, %v1814_v6  ;;  %vm6661_vm2 = vmmov %vm6648_vm1 }
 0x30a   :  { %2063 = vmatprep.subr.mxu0 %v1858_v56  ;;  %v1802_v8 = vpop.permute.xlu0 %1801  ;;  %vm6662_vm15 = vmmov %vm6648_vm1 }
 0x30b   :  { %2064 = vmatpush1.msra.mxu0 %v1857_v61  ;;  %vm6664_vm10 = vmmov %vm6648_vm1  ;;  %v1830_v61 = vsel %vm6648_vm1, %v5452_v26, %v1812_v4 }
 0x30c   :  { %v5538_v11 = vpop.permute.xlu1 %2395  ;;  %3691 = vmatmul.mubr.msk.f32.vlgmr.msra.gmra.mxu0 %vm6657_vm5, %v5299_v13  ;;  %vm6663_vm5 = vmmov %vm6648_vm1  ;;  %v1826_v6 = vsel %vm6664_vm10, %v1812_v4, %v5460_v37 }
 0x30d   :  { %2103 = vmatprep.mubr.f32.mxu0 %v6642_v34  ;;  %v1835_v17 = vsel %vm6663_vm5, %v5468_v51, %v1806_v28  ;;  %vm6668_vm4 = vmmov %vm6648_vm1  ;;  %v1880_v28 = vsel %vm4325_vm6, %v5251_v15, %v1827_v48  ;;  %v1872_v4 = vsel %vm4325_vm6, %v5212_v46, %v1826_v6 }
 0x30e   :  { %v5543_v5 = vpop.permute.xlu0 %2389  ;;  %v1839_v37 = vsel %vm6668_vm4, %v5395_v55, %v5468_v51  ;;  %v1879_v55 = vsel %vm4345_vm7, %v5236_v21, %v1831_v33  ;;  %vm6672_vm5 = vmmov %vm6648_vm1 }
 0x30f   :  { %v1838_v48 = vsel %vm6672_vm5, %v5377_v62, %v5438_v63  ;;  %vm6673_vm10 = vmmov %vm6648_vm1 }
 0x310   :  { %v1808_v23 = vpop.permute.xlu1 %1807  ;;  %3692 = vmatmul.mubr.msk.f32.gmra.mxu0 %vm6659_vm3, %v5285_v9  ;;  %vm6667_vm3 = vmmov %vm6648_vm1  ;;  %v1829_v33 = vsel %vm6673_vm10, %v1802_v8, %v1810_v40 }
 0x311   :  { %v1832_v49 = vsel %vm6661_vm2, %v1808_v23, %v1816_v45  ;;  %v1836_v58 = vsel %vm6662_vm15, %v1800_v35, %v1808_v23  ;;  %2109 = vmatprep.mubr.f32.mxu0 %v6642_v34  ;;  %v1834_v56 = vsel %vm6667_vm3, %v5438_v63, %v5452_v26  ;;  %vm6669_vm2 = vcmask 261120   ;;  %vm6671_vm15 = vmmov %vm6648_vm1 }
 0x312   :  { %v5565_v60 = vpop.permute.xlu0 %2393  ;;  %v1886_v44 = vsel %vm4437_vm8, %v5303_v18, %v1836_v58  ;;  %v1887_v35 = vsel %vm4345_vm7, %v5257_v0, %v1832_v49  ;;  %v1885_v58 = vsel %vm4443_vm9, %v5246_v24, %v1840_v52  ;;  %v1825_v51 = vsel %vm6671_vm15, %v1810_v40, %v5424_v31  ;;  %vm6674_vm3 = vmmov %vm6648_vm1  ;;  %v6683_v49 = vld [vmem:[#allocation77_spill] sm:$0xff] }
 0x313   :  { %2235 = vmatprep.subr.mxu0 %v1886_v44  ;;  %2325 = vmatpush1.msra.mxu1 %v1887_v35  ;;  %v1878_v26 = vsel %vm4437_vm8, %v5229_v25, %v1835_v17  ;;  %v1877_v31 = vsel %vm4443_vm9, %v5224_v50, %v1839_v37  ;;  %v1833_v17 = vsel %vm6674_vm3, %v5479_v47, %v1802_v8  ;;  %vm6675_vm4 = vmmov %vm6648_vm1 }
 0x314   :  { %v5587_v23 = vpop.permute.xlu1 %1911  ;;  %3693 = vmatmul.mubr.msk.f32.gmra.mxu0 %vm6669_vm2, %v5307_v19  ;;  %2326 = vmatprep.subr.mxu1 %v1880_v28  ;;  %v1870_v62 = vsel %vm4437_vm8, %v5207_v39, %v1834_v56  ;;  %v1871_v63 = vsel %vm4345_vm7, %v5280_v36, %v1830_v61  ;;  %v1837_v40 = vsel %vm6675_vm4, %v5367_v30, %v5479_v47  ;;  %vm6676_vm1 = vmmov %vm6669_vm2  ;;  %v6679_v56 = vld [vmem:[#allocation14_spill] sm:$0xff]  ;;  %v6680_v28 = vld [vmem:[#allocation16_spill] sm:$0xff] }
 0x315   :  { %2236 = vmatpush1.msra.mxu0 %v1885_v58  ;;  %2327 = vmatpush1.msra.mxu1 %v1879_v55  ;;  %v1864_v8 = vsel %vm4325_vm6, %v5190_v59, %v1825_v51  ;;  %v1869_v44 = vsel %vm4443_vm9, %v5199_v1, %v1838_v48  ;;  %v1863_v30 = vsel %vm4345_vm7, %v5275_v12, %v1829_v33  ;;  %vm6677_vm6 = vmmov %vm6676_vm1  ;;  %v6685_v55 = vld [vmem:[#allocation74_spill] sm:$0xff] }
 0x316   :  { %2237 = vmatprep.subr.mxu0 %v1878_v26  ;;  %2328 = vmatprep.subr.mxu1 %v1872_v4  ;;  %v5615_v52 = vpop.permute.xlu0 %1903  ;;  %v1862_v47 = vsel %vm4437_vm8, %v5290_v42, %v1833_v17  ;;  %v1861_v35 = vsel %vm4443_vm9, %v5265_v22, %v1837_v40  ;;  %vm6678_vm7 = vmmov %vm6676_vm1  ;;  %v6686_v26 = vld [vmem:[#allocation73_spill] sm:$0xff] }
 0x317   :  { %2238 = vmatpush1.msra.mxu0 %v1877_v31  ;;  %2115 = vmatprep.mubr.f32.mxu0 %v6642_v34  ;;  %vm6681_vm8 = vmmov %vm6676_vm1 }
 0x318   :  { %2239 = vmatprep.subr.mxu0 %v1870_v62  ;;  %2329 = vmatpush1.msra.mxu1 %v1871_v63  ;;  %v5631_v6 = vpop.permute.xlu1 %1927  ;;  %vm6684_vm9 = vmmov %vm6676_vm1 }
 0x319   :  { %3694 = vmatmul.mubr.msk.f32.gmra.mxu0 %vm6676_vm1, %v5294_v57  ;;  %2330 = vmatprep.subr.mxu1 %v1864_v8  ;;  %vm6687_vm2 = vmmov %vm6676_vm1 }
 0x31a   :  { %2240 = vmatpush1.msra.mxu0 %v1869_v44  ;;  %2331 = vmatpush1.msra.mxu1 %v1863_v30  ;;  %v5647_v54 = vpop.permute.xlu0 %1919  ;;  %vm6688_vm15 = vmmov %vm6676_vm1 }
 0x31b   :  { %2241 = vmatprep.subr.mxu0 %v1862_v47  ;;  %3703 = vmatmul.mubr.msk.f32.vlgmr.msra.gmra.mxu1 %vm6677_vm6, %v5299_v13  ;;  %vm6689_vm5 = vmmov %vm6676_vm1  ;;  %vm6693_vm6 = vcmp.lt.s32.totalorder %v6629_v27, 127 }
 0x31c   :  { %2242 = vmatpush1.msra.mxu0 %v1861_v35  ;;  %2518 = vmatprep.subr.mxu1 %v5174_v10  ;;  %v5655_v45 = vpop.permute.xlu1 %1901  ;;  %vm6690_vm10 = vmmov %vm6676_vm1  ;;  %v1968_v17 = vsel %vm6693_vm6, %v5647_v54, %v5631_v6 }
 0x31d   :  { %2275 = vmatprep.mubr.f32.mxu0 %v6642_v34  ;;  %2429 = vmatprep.subr.mxu0 %v5160_v32  ;;  %vm6691_vm3 = vmmov %vm6676_vm1  ;;  %v2012_v44 = vsel %vm4580_vm11, %v5174_v10, %v1968_v17 }
 0x31e   :  { %2519 = vmatpush1.msra.mxu1 %v5182_v2  ;;  %3699 = vmatmul.mubr.msk.f32.vlgmr.msra.gmra.mxu0 %vm6678_vm7, %v5299_v13  ;;  %v5662_v29 = vpop.permute.xlu0 %1895  ;;  %v6682_v13 = vld [vmem:[#allocation76_spill] sm:$0xff]  ;;  %vm6692_vm4 = vmmov %vm6676_vm1 }
 0x31f   :  { %2430 = vmatpush1.msra.mxu0 %v5167_v14  ;;  %2520 = vmatprep.subr.mxu1 %v6679_v56  ;;  %vm6694_vm7 = vmmov %vm6693_vm6 }
 0x320   :  { %2370 = vmatprep.mubr.f32.mxu1 %v6642_v34  ;;  %2431 = vmatprep.subr.mxu0 %v5132_v20  ;;  %v5668_v37 = vpop.permute.xlu1 %1917  ;;  %v1976_v63 = vsel %vm6694_vm7, %v5615_v52, %v5587_v23 }
 0x321   :  { %2521 = vmatpush1.msra.mxu1 %v6680_v28  ;;  %2432 = vmatpush1.msra.mxu0 %v5124_v38  ;;  %v2010_v35 = vsel %vm4667_vm13, %v5160_v32, %v1976_v63 }
 0x322   :  { %3704 = vmatmul.mubr.msk.f32.gmra.mxu1 %vm6681_vm8, %v5285_v9  ;;  %2522 = vmatprep.subr.mxu1 %v6682_v13  ;;  %v5675_v61 = vpop.permute.xlu0 %1909  ;;  %vm6695_vm8 = vmmov %vm6676_vm1 }
 0x323   :  { %2281 = vmatprep.mubr.f32.mxu0 %v6642_v34  ;;  %2433 = vmatprep.subr.mxu0 %v5087_v53 }
 0x324   :  { %2523 = vmatpush1.msra.mxu1 %v6683_v49  ;;  %3700 = vmatmul.mubr.msk.f32.gmra.mxu0 %vm6684_vm9, %v5285_v9  ;;  %v5682_v58 = vpop.permute.xlu1 %1893  ;;  %vm6697_vm9 = vmmov %vm6676_vm1 }
 0x325   :  { %2434 = vmatpush1.msra.mxu0 %v5097_v7  ;;  %2524 = vmatprep.subr.mxu1 %v6685_v55 }
 0x326   :  { %2376 = vmatprep.mubr.f32.mxu1 %v6642_v34  ;;  %2435 = vmatprep.subr.mxu0 %v5061_v16  ;;  %v5688_v51 = vpop.permute.xlu0 %1925 }
 0x327   :  { %2525 = vmatpush1.msra.mxu1 %v6686_v26  ;;  %2436 = vmatpush1.msra.mxu0 %v5056_v43 }
 0x328   :  { %3705 = vmatmul.mubr.msk.f32.gmra.mxu1 %vm6687_vm2, %v5307_v19  ;;  %2696 = vmatprep.subr.mxu1 %v5271_v3  ;;  %v5695_v9 = vpop.permute.xlu1 %1907  ;;  %vm6699_vm2 = vmmov %vm6676_vm1 }
 0x329   :  { %2287 = vmatprep.mubr.f32.mxu0 %v6642_v34  ;;  %2607 = vmatprep.subr.mxu0 %v5303_v18 }
 0x32a   :  { %3701 = vmatmul.mubr.msk.f32.gmra.mxu0 %vm6688_vm15, %v5307_v19  ;;  %2382 = vmatprep.mubr.f32.mxu1 %v6642_v34  ;;  %v5702_v4 = vpop.permute.xlu0 %1899  ;;  %vm6700_vm15 = vmmov %vm6676_vm1 }
 0x32b   :  { %2293 = vmatprep.mubr.f32.mxu0 %v6642_v34 }
 0x32c   :  { %3706 = vmatmul.mubr.msk.f32.gmra.mxu1 %vm6689_vm5, %v5294_v57  ;;  %v5707_v48 = vpop.permute.xlu1 %1923  ;;  %vm6701_vm5 = vmmov %vm6693_vm6 }
 0x32d   :  { %2558 = vmatprep.mubr.f32.mxu1 %v6642_v34  ;;  %v1972_v63 = vsel %vm6701_vm5, %v5587_v23, %v5647_v54 }
 0x32e   :  { %3702 = vmatmul.mubr.msk.f32.gmra.mxu0 %vm6690_vm10, %v5294_v57  ;;  %v5712_v33 = vpop.permute.xlu0 %1915  ;;  %vm6702_vm10 = vmmov %vm6701_vm5 }
 0x32f   :  { %2469 = vmatprep.mubr.f32.mxu0 %v6642_v34 }
 0x330   :  { %3711 = vmatmul.mubr.msk.f32.vlgmr.msra.gmra.mxu1 %vm6691_vm3, %v5543_v5  ;;  %v5717_v19 = vpop.permute.xlu1 %1897  ;;  %vm6703_vm3 = vmmov %vm6701_vm5 }
 0x331   :  { %2697 = vmatpush1.msra.mxu1 %v5257_v0  ;;  %2564 = vmatprep.mubr.f32.mxu1 %v6642_v34  ;;  %v1967_v32 = vsel %vm6703_vm3, %v5668_v37, %v5688_v51 }
 0x332   :  { %2698 = vmatprep.subr.mxu1 %v5251_v15  ;;  %3707 = vmatmul.mubr.msk.f32.vlgmr.msra.gmra.mxu0 %vm6692_vm4, %v5543_v5  ;;  %v5724_v31 = vpop.permute.xlu0 %1891  ;;  %vm6704_vm4 = vmmov %vm6676_vm1 }
 0x333   :  { %2608 = vmatpush1.msra.mxu0 %v5246_v24  ;;  %2699 = vmatpush1.msra.mxu1 %v5236_v21  ;;  %vm6713_vm5 = vmmov %vm6704_vm4 }
 0x334   :  { %2609 = vmatprep.subr.mxu0 %v5229_v25  ;;  %2700 = vmatprep.subr.mxu1 %v5212_v46  ;;  %v1914_v57 = vpop.permute.xlu1 %1913 }
 0x335   :  { %3712 = vmatmul.mubr.msk.f32.gmra.mxu1 %vm6676_vm1, %v5527_v41  ;;  %2610 = vmatpush1.msra.mxu0 %v5224_v50  ;;  %vm6705_vm1 = vmmov %vm6703_vm3 }
 0x336   :  { %2701 = vmatpush1.msra.mxu1 %v5280_v36  ;;  %2475 = vmatprep.mubr.f32.mxu0 %v6642_v34  ;;  %v5739_v62 = vpop.permute.xlu0 %1905  ;;  %v1971_v23 = vsel %vm6705_vm1, %v5675_v61, %v5668_v37  ;;  %vm6706_vm6 = vmmov %vm6705_vm1  ;;  %v2011_v37 = vsel %vm4618_vm12, %v5182_v2, %v1972_v63 }
 0x337   :  { %2611 = vmatprep.subr.mxu0 %v5207_v39  ;;  %2702 = vmatprep.subr.mxu1 %v5190_v59  ;;  %v1975_v54 = vsel %vm6706_vm6, %v5655_v45, %v5675_v61  ;;  %vm6707_vm7 = vmmov %vm6705_vm1  ;;  %v2004_v59 = vsel %vm4580_vm11, %v6679_v56, %v1967_v32  ;;  %v2003_v32 = vsel %vm4618_vm12, %v6680_v28, %v1971_v23 }
 0x338   :  { %3708 = vmatmul.mubr.msk.f32.gmra.mxu0 %vm6695_vm8, %v5527_v41  ;;  %2703 = vmatpush1.msra.mxu1 %v5275_v12  ;;  %v5750_v40 = vpop.permute.xlu1 %1889  ;;  %v1966_v10 = vsel %vm6707_vm7, %v5712_v33, %v5707_v48  ;;  %vm6708_vm8 = vmmov %vm6699_vm2 }
 0x339   :  { %2612 = vmatpush1.msra.mxu0 %v5199_v1  ;;  %2570 = vmatprep.mubr.f32.mxu1 %v6642_v34  ;;  %vm6715_vm3 = vmmov %vm6705_vm1 }
 0x33a   :  { %2613 = vmatprep.subr.mxu0 %v5290_v42  ;;  %2890 = vmatprep.subr.mxu1 %v2012_v44  ;;  %v5758_v30 = vpop.permute.xlu0 %1921  ;;  %vm6718_vm6 = vmmov %vm6715_vm3 }
 0x33b   :  { %3713 = vmatmul.mubr.msk.f32.gmra.mxu1 %vm6697_vm9, %v5565_v60  ;;  %2614 = vmatpush1.msra.mxu0 %v5265_v22  ;;  %vm6710_vm9 = vmmov %vm6705_vm1 }
 0x33c   :  { %2481 = vmatprep.mubr.f32.mxu0 %v6642_v34  ;;  %2801 = vmatprep.subr.mxu0 %v2010_v35  ;;  %v5767_v12 = vpop.permute.xlu1 %2763  ;;  %v1980_v35 = vsel %vm6702_vm10, %v5662_v29, %v5615_v52  ;;  %v1979_v61 = vsel %vm6710_vm9, %v5682_v58, %v5655_v45  ;;  %v2002_v45 = vsel %vm4667_vm13, %v5132_v20, %v1975_v54  ;;  %vm6714_vm10 = vmmov %vm6705_vm1 }
 0x33d   :  { %3709 = vmatmul.mubr.msk.f32.gmra.mxu0 %vm6699_vm2, %v5565_v60  ;;  %2576 = vmatprep.mubr.f32.mxu1 %v6642_v34  ;;  %vm6711_vm2 = vcmp.eq.s32.totalorder %v6629_v27, 127  ;;  %vm6719_vm7 = vmmov %vm6713_vm5 }
 0x33e   :  { %2487 = vmatprep.mubr.f32.mxu0 %v6642_v34  ;;  %v5773_v17 = vpop.permute.xlu0 %2761  ;;  %v2009_v46 = vsel %vm6711_vm2, %v5167_v14, %v1980_v35  ;;  %v1974_v35 = vsel %vm6714_vm10, %v5702_v4, %v5695_v9  ;;  %vm6721_vm9 = vmmov %vm6715_vm3 }
 0x33f   :  { %3714 = vmatmul.mubr.msk.f32.gmra.mxu1 %vm6700_vm15, %v5538_v11  ;;  %vm6712_vm15 = vmmov %vm6705_vm1 }
 0x340   :  { %2736 = vmatprep.mubr.f32.mxu1 %v6642_v34  ;;  %v5782_v44 = vpop.permute.xlu1 %1943  ;;  %v1970_v63 = vsel %vm6712_vm15, %v5695_v9, %v5712_v33 }
 0x341   :  { %3710 = vmatmul.mubr.msk.f32.gmra.mxu0 %vm6704_vm4, %v5538_v11  ;;  %vm6716_vm4 = vmmov %vm6705_vm1 }
 0x342   :  { %2647 = vmatprep.mubr.f32.mxu0 %v6642_v34  ;;  %v5803_v52 = vpop.permute.xlu0 %1941  ;;  %v1969_v23 = vsel %vm6716_vm4, %v5739_v62, %v1914_v57  ;;  %vm6717_vm1 = vmmov %vm6711_vm2 }
 0x343   :  { %3719 = vmatmul.mubr.msk.f32.vlgmr.msra.gmra.mxu1 %vm6708_vm8, %v5543_v5  ;;  %v2001_v9 = vsel %vm6717_vm1, %v5124_v38, %v1979_v61  ;;  %vm6720_vm8 = vmmov %vm6715_vm3  ;;  %v1977_v61 = vsel %vm6721_vm9, %v5750_v40, %v5717_v19 }
 0x344   :  { %2891 = vmatpush1.msra.mxu1 %v2011_v37  ;;  %2742 = vmatprep.mubr.f32.mxu1 %v6642_v34  ;;  %v5825_v22 = vpop.permute.xlu1 %1933  ;;  %v1973_v54 = vsel %vm6720_vm8, %v5717_v19, %v5739_v62  ;;  %v1987_v62 = vsel %vm4618_vm12, %v6686_v26, %v1969_v23  ;;  %vm6722_vm2 = vmmov %vm6713_vm5 }
 0x345   :  { %2892 = vmatprep.subr.mxu1 %v2004_v59  ;;  %3715 = vmatmul.mubr.msk.f32.vlgmr.msra.gmra.mxu0 %vm6713_vm5, %v5543_v5  ;;  %v1965_v59 = vsel %vm6715_vm3, %v1914_v57, %v5758_v30  ;;  %v1996_v5 = vsel %vm4580_vm11, %v6682_v13, %v1966_v10  ;;  %v1995_v10 = vsel %vm4618_vm12, %v6683_v49, %v1970_v63  ;;  %vm6723_vm15 = vmmov %vm6717_vm1 }
 0x346   :  { %2802 = vmatpush1.msra.mxu0 %v2009_v46  ;;  %2893 = vmatpush1.msra.mxu1 %v2003_v32  ;;  %v5849_v33 = vpop.permute.xlu0 %2765  ;;  %v1978_v46 = vsel %vm6718_vm6, %v5724_v31, %v5702_v4  ;;  %v1994_v4 = vsel %vm4667_vm13, %v5087_v53, %v1974_v35  ;;  %v1988_v37 = vsel %vm4580_vm11, %v6685_v55, %v1965_v59  ;;  %vm6724_vm11 = vmmov %vm6722_vm2 }
 0x347   :  { %2803 = vmatprep.subr.mxu0 %v2002_v45  ;;  %2894 = vmatprep.subr.mxu1 %v1996_v5  ;;  %v1993_v8 = vsel %vm6723_vm15, %v5097_v7, %v1978_v46  ;;  %v1986_v19 = vsel %vm4667_vm13, %v5061_v16, %v1973_v54  ;;  %vm6725_vm12 = vmmov %vm6717_vm1  ;;  %v6735_v54 = vld [vmem:[#allocation44_spill] sm:$0xff] }
 0x348   :  { %3720 = vmatmul.mubr.msk.f32.gmra.mxu1 %vm6719_vm7, %v5527_v41  ;;  %2804 = vmatpush1.msra.mxu0 %v2001_v9  ;;  %v1950_v57 = vpop.permute.xlu1 %1949  ;;  %v1985_v36 = vsel %vm6725_vm12, %v5056_v43, %v1977_v61  ;;  %vm6726_vm5 = vmmov %vm6722_vm2  ;;  %vm6736_vm8 = vnez %v6735_v54 }
 0x349   :  { %2895 = vmatpush1.msra.mxu1 %v1995_v10  ;;  %2653 = vmatprep.mubr.f32.mxu0 %v6642_v34  ;;  %vm6727_vm13 = vmmov %vm6715_vm3 }
 0x34a   :  { %2805 = vmatprep.subr.mxu0 %v1994_v4  ;;  %2896 = vmatprep.subr.mxu1 %v1988_v37  ;;  %v5884_v63 = vpop.permute.xlu0 %1939  ;;  %vm6729_vm10 = vmmov %vm6722_vm2 }
 0x34b   :  { %3716 = vmatmul.mubr.msk.f32.gmra.mxu0 %vm6722_vm2, %v5527_v41  ;;  %2897 = vmatpush1.msra.mxu1 %v1987_v62  ;;  %vm6730_vm4 = vmmov %vm6715_vm3 }
 0x34c   :  { %2806 = vmatpush1.msra.mxu0 %v1993_v8  ;;  %2748 = vmatprep.mubr.f32.mxu1 %v6642_v34  ;;  %v1932_v32 = vpop.permute.xlu1 %1931  ;;  %v1983_v23 = vsel %vm6730_vm4, %v1950_v57, %v5682_v58  ;;  %vm6731_vm1 = vmmov %vm6722_vm2 }
 0x34d   :  { %2807 = vmatprep.subr.mxu0 %v1986_v19  ;;  %3721 = vmatmul.mubr.msk.f32.gmra.mxu1 %vm6724_vm11, %v5565_v60  ;;  %vm6732_vm6 = vmmov %vm6715_vm3  ;;  %v2008_v62 = vsel %vm4699_vm14, %v5251_v15, %v1983_v23 }
 0x34e   :  { %2808 = vmatpush1.msra.mxu0 %v1985_v36  ;;  %2659 = vmatprep.mubr.f32.mxu0 %v6642_v34  ;;  %v1936_v41 = vpop.permute.xlu0 %1935  ;;  %vm6733_vm7 = vmmov %vm6715_vm3  ;;  %v1955_v36 = vsel %vm6715_vm3, %v5803_v52, %v1950_v57 }
 0x34f   :  { %3717 = vmatmul.mubr.msk.f32.gmra.mxu0 %vm6726_vm5, %v5565_v60  ;;  %2754 = vmatprep.mubr.f32.mxu1 %v6642_v34  ;;  %v1960_v47 = vsel %vm6727_vm13, %v1936_v41, %v5782_v44  ;;  %v1964_v60 = vsel %vm6715_vm3, %v5631_v6, %v1936_v41  ;;  %vm6737_vm9 = vmmov %vm6715_vm3 }
 0x350   :  { %2665 = vmatprep.mubr.f32.mxu0 %v6642_v34  ;;  %v1948_v45 = vpop.permute.xlu1 %1947  ;;  %v2014_v59 = vsel %vm4829_vm0, %v5303_v18, %v1960_v47  ;;  %vm6738_vm2 = vmmov %vm6731_vm1 }
 0x351   :  { %3722 = vmatmul.mubr.msk.f32.gmra.mxu1 %vm6729_vm10, %v5538_v11  ;;  %2979 = vmatprep.subr.mxu0 %v2014_v59  ;;  %vm6741_vm11 = vmmov %vm6715_vm3 }
 0x352   :  { %2930 = vmatprep.mubr.f32.mxu1 %v6642_v34  ;;  %v1952_v5 = vpop.permute.xlu0 %1951  ;;  %v1963_v4 = vsel %vm6741_vm11, %v5688_v51, %v5825_v22  ;;  %vm6742_vm12 = vmmov %vm6715_vm3 }
 0x353   :  { %3718 = vmatmul.mubr.msk.f32.gmra.mxu0 %vm6731_vm1, %v5538_v11  ;;  %v1956_v9 = vsel %vm6732_vm6, %v5782_v44, %v1952_v5  ;;  %v1984_v46 = vsel %vm6733_vm7, %v1952_v5, %v5662_v29  ;;  %v1959_v11 = vsel %vm6737_vm9, %v5825_v22, %v5803_v52  ;;  %v6739_v29 = vld [vmem:[#allocation47_spill] sm:$0xff]  ;;  %v1958_v8 = vsel %vm6742_vm12, %v1932_v32, %v5884_v63  ;;  %vm6743_vm5 = vmmov %vm6731_vm1 }
 0x354   :  { %2841 = vmatprep.mubr.f32.mxu0 %v6642_v34  ;;  %v2016_v10 = vsel %vm4699_vm14, %v5271_v3, %v1984_v46  ;;  %v2015_v58 = vsel %vm6736_vm8, %v5257_v0, %v1956_v9  ;;  %vm6740_vm15 = vnez %v6739_v29  ;;  %v1938_v37 = vpop.permute.xlu1 %1937  ;;  %vm6744_vm13 = vmmov %vm6715_vm3  ;;  %v2006_v51 = vsel %vm4829_vm0, %v5229_v25, %v1959_v11  ;;  %v6754_v9 = vld [vmem:[#allocation69_spill] sm:$0xff]  ;;  %v6760_v11 = vld [vmem:[#allocation27_spill] sm:$0xff] }
 0x355   :  { %3727 = vmatmul.mubr.msk.f32.vlgmr.msra.gmra.mxu1 %vm6738_vm2, %v5773_v17  ;;  %v2013_v44 = vsel %vm6740_vm15, %v5246_v24, %v1964_v60  ;;  %3068 = vmatprep.subr.mxu1 %v2016_v10  ;;  %vm6745_vm10 = vmmov %vm6715_vm3  ;;  %v2005_v41 = vsel %vm6740_vm15, %v5224_v50, %v1963_v4  ;;  %v6059_v29 = vld [vmem:[#allocation5 + $0x40] sm:$0x1] }
 0x356   :  { %2936 = vmatprep.mubr.f32.mxu1 %v6642_v34  ;;  %3069 = vmatpush1.msra.mxu1 %v2015_v58  ;;  %v1930_v61 = vpop.permute.xlu0 %1929  ;;  %v1962_v22 = vsel %vm6745_vm10, %v5707_v48, %v1932_v32  ;;  %vm6746_vm4 = vmmov %vm6731_vm1  ;;  %v1998_v48 = vsel %vm4829_vm0, %v5207_v39, %v1958_v8  ;;  %6770 = vst [vmem:[#allocation53_spill] sm:$0xff] %v6059_v29 }
 0x357   :  { %3723 = vmatmul.mubr.msk.f32.vlgmr.msra.gmra.mxu0 %vm6743_vm5, %v5773_v17  ;;  %v1957_v19 = vsel %vm6744_vm13, %v1930_v61, %v1938_v37  ;;  %3070 = vmatprep.subr.mxu1 %v2008_v62  ;;  %vm6747_vm1 = vmmov %vm6715_vm3  ;;  %v1997_v59 = vsel %vm6740_vm15, %v5199_v1, %v1962_v22 }
 0x358   :  { %2847 = vmatprep.mubr.f32.mxu0 %v6642_v34  ;;  %2980 = vmatpush1.msra.mxu0 %v2013_v44  ;;  %v1961_v32 = vsel %vm6747_vm1, %v5758_v30, %v1930_v61  ;;  %v1990_v52 = vsel %vm4829_vm0, %v5290_v42, %v1957_v19  ;;  %vm6748_vm6 = vmmov %vm6747_vm1  ;;  %v2007_v30 = vsel %vm6736_vm8, %v5236_v21, %v1955_v36  ;;  %v2768_v23 = vpop.permute.xlu1 %2767 }
 0x359   :  { %3728 = vmatmul.mubr.msk.f32.gmra.mxu1 %vm6746_vm4, %v5767_v12  ;;  %2981 = vmatprep.subr.mxu0 %v2006_v51  ;;  %v1982_v47 = vsel %vm6748_vm6, %v1948_v45, %v5724_v31  ;;  %vm6749_vm7 = vmmov %vm6738_vm2  ;;  %v6751_v31 = vld [vmem:[#allocation33_spill] sm:$0xff] }
 0x35a   :  { %2942 = vmatprep.mubr.f32.mxu1 %v6642_v34  ;;  %2982 = vmatpush1.msra.mxu0 %v2005_v41  ;;  %v1946_v57 = vpop.permute.xlu0 %1945  ;;  %vm6750_vm9 = vmmov %vm6738_vm2  ;;  %v1989_v35 = vsel %vm6740_vm15, %v6751_v31, %v1961_v32  ;;  %v2000_v46 = vsel %vm4699_vm14, %v6754_v9, %v1982_v47 }
 0x35b   :  { %3724 = vmatmul.mubr.msk.f32.gmra.mxu0 %vm6749_vm7, %v5767_v12  ;;  %2983 = vmatprep.subr.mxu0 %v1998_v48  ;;  %vm6752_vm0 = vmmov %vm6747_vm1 }
 0x35c   :  { %2853 = vmatprep.mubr.f32.mxu0 %v6642_v34  ;;  %2984 = vmatpush1.msra.mxu0 %v1997_v59  ;;  %v1981_v60 = vsel %vm6752_vm0, %v1946_v57, %v5750_v40  ;;  %vm6753_vm2 = vmmov %vm6752_vm0  ;;  %v6757_v40 = vld [vmem:[#allocation61_spill] sm:$0xff] }
 0x35d   :  { %3729 = vmatmul.mubr.msk.f32.gmra.mxu1 %vm6750_vm9, %v5849_v33  ;;  %2985 = vmatprep.subr.mxu0 %v1990_v52  ;;  %v1954_v5 = vsel %vm6753_vm2, %v5884_v63, %v1948_v45  ;;  %vm6755_vm11 = vmmov %vm6752_vm0  ;;  %v1992_v63 = vsel %vm4699_vm14, %v6757_v40, %v1981_v60  ;;  %v6759_v45 = vld [vmem:[#allocation39_spill] sm:$0xff] }
 0x35e   :  { %2948 = vmatprep.mubr.f32.mxu1 %v6642_v34  ;;  %3071 = vmatpush1.msra.mxu1 %v2007_v30  ;;  %v1953_v10 = vsel %vm6755_vm11, %v1938_v37, %v1946_v57  ;;  %vm6756_vm15 = vmmov %vm6746_vm4  ;;  %v1999_v58 = vsel %vm6736_vm8, %v6759_v45, %v1954_v5 }
 0x35f   :  { %3725 = vmatmul.mubr.msk.f32.gmra.mxu0 %vm6756_vm15, %v5849_v33  ;;  %3072 = vmatprep.subr.mxu1 %v2000_v46  ;;  %vm6758_vm12 = vmmov %vm6746_vm4  ;;  %v1991_v27 = vsel %vm6736_vm8, %v6760_v11, %v1953_v10 }
 0x360   :  { %2859 = vmatprep.mubr.f32.mxu0 %v6642_v34  ;;  %2986 = vmatpush1.msra.mxu0 %v1989_v35  ;;  %vm6761_vm5 = vmmov %vm6746_vm4 }
 0x361   :  { %3730 = vmatmul.mubr.msk.f32.gmra.mxu1 %vm6758_vm12, %v2768_v23  ;;  %vm6762_vm14 = vmmov %vm6746_vm4 }
 0x362   :  { %3073 = vmatpush1.msra.mxu1 %v1999_v58  ;;  %3108 = vmatprep.mubr.f32.mxu1 %v6642_v34  ;;  %vm6763_vm13 = vmmov %vm6746_vm4 }
 0x363   :  { %3726 = vmatmul.mubr.msk.f32.gmra.mxu0 %vm6761_vm5, %v2768_v23  ;;  %3074 = vmatprep.subr.mxu1 %v1992_v63  ;;  %vm6764_vm8 = vmmov %vm6746_vm4 }
 0x364   :  { %3019 = vmatprep.mubr.f32.mxu0 %v6642_v34  ;;  %3075 = vmatpush1.msra.mxu1 %v1991_v27  ;;  %vm6765_vm10 = vmmov %vm6746_vm4 }
 0x365   :  { %3735 = vmatmul.mubr.msk.f32.vlgmr.msra.gmra.mxu1 %vm6762_vm14, %v5773_v17  ;;  %vm6766_vm3 = vmmov %vm6746_vm4 }
 0x366   :  { %3114 = vmatprep.mubr.f32.mxu1 %v6642_v34  ;;  %vm6767_vm4 = vmmov %vm6766_vm3 }
 0x367   :  { %3731 = vmatmul.mubr.msk.f32.vlgmr.msra.gmra.mxu0 %vm6763_vm13, %v5773_v17  ;;  %vm6768_vm1 = vmmov %vm6766_vm3 }
 0x368   :  { %3025 = vmatprep.mubr.f32.mxu0 %v6642_v34  ;;  %vm6769_vm6 = vmmov %vm6768_vm1 }
 0x369   :  { %3736 = vmatmul.mubr.msk.f32.gmra.mxu1 %vm6764_vm8, %v5767_v12  ;;  %vm6818_vm7 = vmmov %vm6768_vm1 }
 0x36a   :  { %3120 = vmatprep.mubr.f32.mxu1 %v6642_v34  ;;  %vm6819_vm9 = vmmov %vm6768_vm1 }
 0x36b   :  { %3732 = vmatmul.mubr.msk.f32.gmra.mxu0 %vm6765_vm10, %v5767_v12  ;;  %vm6837_vm0 = vmmov %vm6768_vm1 }
 0x36c   :  { %3031 = vmatprep.mubr.f32.mxu0 %v6642_v34  ;;  %vm6838_vm2 = vmmov %vm6837_vm0 }
 0x36d   :  { %3737 = vmatmul.mubr.msk.f32.gmra.mxu1 %vm6766_vm3, %v5849_v33 }
 0x36e   :  { %3126 = vmatprep.mubr.f32.mxu1 %v6642_v34 }
 0x36f   :  { %3733 = vmatmul.mubr.msk.f32.gmra.mxu0 %vm6767_vm4, %v5849_v33  ;;  %v3853_v33 = vmov 32  }
 0x370   :  { %3037 = vmatprep.mubr.f32.mxu0 %v6642_v34  ;;  %3768 = vset.pattern.permute.xlu1 %v3853_v33 }
 0x371   :  { %3738 = vmatmul.mubr.msk.f32.gmra.mxu1 %vm6768_vm1, %v2768_v23  ;;  %3769 = vset.pattern.permute.xlu0 %v3853_v33 }
 0x372   :  { %3419 = vmatprep.mubr.f32.mxu1 %v6642_v34  ;;  %3279 = vperm.xlu1 %3768, %v6059_v29  }
 0x373   :  { %3734 = vmatmul.mubr.msk.f32.gmra.mxu0 %vm6769_vm6, %v2768_v23 }
 0x374   :  { %3348 = vmatprep.mubr.f32.mxu0 %v6642_v34 }
 0x3b5   :  { %v6051_v12 = vpop.f32.mrf.mxu1 }
 0x3b7   :  { %v6053_v17 = vpop.f32.mrf.mxu1 }
 0x3b9   :  { %v6055_v6 = vpop.f32.mrf.mxu1 }
 0x3bb   :  { %v6057_v54 = vpop.f32.mrf.mxu1 }
 0x3bd   :  { %v6062_v44 = vpop.f32.mrf.mxu1 }
 0x3bf   :  { %v6068_v61 = vpop.f32.mrf.mxu1 }
 0x3c1   :  { %v6074_v19 = vpop.f32.mrf.mxu1 }
 0x3c3   :  { %v6080_v36 = vpop.f32.mrf.mxu1 }
 0x3cc   :  { %v6064_v4 = vpop.f32.mrf.mxu0 }
 0x3ce   :  { %v6066_v37 = vpop.f32.mrf.mxu0 }
 0x3d0   :  { %v6070_v62 = vpop.f32.mrf.mxu0 }
 0x3d2   :  { %v6072_v8 = vpop.f32.mrf.mxu0 }
 0x3d4   :  { %v6076_v22 = vpop.f32.mrf.mxu0 }
 0x3d6   :  { %v6078_v51 = vpop.f32.mrf.mxu0 }
 0x3d9   :  { %v6082_v41 = vpop.f32.mrf.mxu0 }
 0x3db   :  { %v6084_v48 = vpop.f32.mrf.mxu0  ;;  %v6086_v32 = vpop.f32.mrf.mxu1 }
 0x3dd   :  { %v6090_v57 = vpop.f32.mrf.mxu1 }
 0x3de   :  { %v6088_v52 = vpop.f32.mrf.mxu0  ;;  %6771 = vst [vmem:[#allocation64_spill] sm:$0xff] %v6090_v57 }
 0x3e0   :  { %v6092_v47 = vpop.f32.mrf.mxu0 }
 0x3e1   :  { %6772 = vst [vmem:[#allocation32_spill] sm:$0xff] %v6092_v47 }
 0x3e2   :  { %v6094_v59 = vpop.f32.mrf.mxu1 }
 0x3e3   :  { %6773 = vst [vmem:[#allocation24_spill] sm:$0xff] %v6094_v59 }
 0x3e4   :  { %v6096_v30 = vpop.f32.mrf.mxu0  ;;  %v6098_v35 = vpop.f32.mrf.mxu1 }
 0x3e5   :  { %6774 = vst [vmem:[#allocation54_spill] sm:$0xff] %v6096_v30  ;;  %6775 = vst [vmem:[#allocation66_spill] sm:$0xff] %v6098_v35 }
 0x3e6   :  { %v6100_v60 = vpop.f32.mrf.mxu0 }
 0x3e7   :  { %6776 = vst [vmem:[#allocation22_spill] sm:$0xff] %v6100_v60 }
 0x3e8   :  { %v6102_v5 = vpop.f32.mrf.mxu1 }
 0x3e9   :  { %6777 = vst [vmem:[#allocation65_spill] sm:$0xff] %v6102_v5 }
 0x3ea   :  { %v6104_v23 = vpop.f32.mrf.mxu0  ;;  %v6106_v46 = vpop.f32.mrf.mxu1 }
 0x3eb   :  { %6778 = vst [vmem:[#allocation31_spill] sm:$0xff] %v6104_v23  ;;  %6779 = vst [vmem:[#allocation59_spill] sm:$0xff] %v6106_v46 }
 0x3ec   :  { %v6108_v10 = vpop.f32.mrf.mxu0  ;;  %v6110_v63 = vpop.f32.mrf.mxu1 }
 0x3ed   :  { %6780 = vst [vmem:[#allocation23_spill] sm:$0xff] %v6108_v10  ;;  %6781 = vst [vmem:[#allocation60_spill] sm:$0xff] %v6110_v63 }
 0x3ee   :  { %v6112_v58 = vpop.f32.mrf.mxu0  ;;  %v6114_v27 = vpop.f32.mrf.mxu1 }
 0x3ef   :  { %6782 = vst [vmem:[#allocation19_spill] sm:$0xff] %v6112_v58  ;;  %6783 = vst [vmem:[#allocation34_spill] sm:$0xff] %v6114_v27  ;;  %v6118_v27 = vpop.permute.xlu0 %3178 }
 0x3f0   :  { %v6116_v33 = vpop.f32.mrf.mxu0  ;;  %v2560_v31 = vpop.f32.mrf.mxu1  ;;  %6785 = vst [vmem:[#allocation20_spill] sm:$0xff] %v6118_v27 }
 0x3f1   :  { %6784 = vst [vmem:[#allocation67_spill] sm:$0xff] %v6116_v33  ;;  %v2561_v10 = vadd.f32 %v2560_v31, %v6051_v12 }
 0x3f2   :  { %v2471_v42 = vpop.f32.mrf.mxu0  ;;  %v2562_v11 = vpop.f32.mrf.mxu1 }
 0x3f3   :  { %v2472_v46 = vadd.f32 %v2471_v42, %v6064_v4  ;;  %v2563_v23 = vadd.f32 %v2562_v11, %v6053_v17 }
 0x3f4   :  { %v2473_v40 = vpop.f32.mrf.mxu0 }
 0x3f5   :  { %v2566_v1 = vpop.f32.mrf.mxu1  ;;  %v2474_v5 = vadd.f32 %v2473_v40, %v6066_v37  ;;  %v6789_v37 = vld [vmem:[#allocation54_spill] sm:$0xff] }
 0x3f6   :  { %v2567_v60 = vadd.f32 %v2566_v1, %v6055_v6 }
 0x3f7   :  { %v2568_v39 = vpop.f32.mrf.mxu1 }
 0x3f8   :  { %v2477_v45 = vpop.f32.mrf.mxu0  ;;  %v2569_v47 = vadd.f32 %v2568_v39, %v6057_v54  ;;  %v6787_v54 = vld [vmem:[#allocation32_spill] sm:$0xff] }
 0x3f9   :  { %v2478_v59 = vadd.f32 %v2477_v45, %v6070_v62  ;;  %v6790_v62 = vld [vmem:[#allocation66_spill] sm:$0xff] }
 0x3fa   :  { %v2479_v9 = vpop.f32.mrf.mxu0 }
 0x3fb   :  { %v2572_v50 = vpop.f32.mrf.mxu1  ;;  %v2480_v27 = vadd.f32 %v2479_v9, %v6072_v8  ;;  %v6136_v9 = vpop.permute.xlu1 %3174 }
 0x3fc   :  { %v2573_v57 = vadd.f32 %v2572_v50, %v6062_v44  ;;  %v6138_v50 = vpop.permute.xlu0 %3166 }
 0x3fd   :  { %v2483_v25 = vpop.f32.mrf.mxu0  ;;  %v2574_v18 = vpop.f32.mrf.mxu1 }
 0x3fe   :  { %v2484_v31 = vadd.f32 %v2483_v25, %v6076_v22  ;;  %v2575_v42 = vadd.f32 %v2574_v18, %v6068_v61 }
 0x3ff   :  { %v2485_v21 = vpop.f32.mrf.mxu0  ;;  %v2578_v15 = vpop.f32.mrf.mxu1 }
 0x400   :  { %v2486_v11 = vadd.f32 %v2485_v21, %v6078_v51  ;;  %v2579_v40 = vadd.f32 %v2578_v15, %v6074_v19  ;;  %v6786_v15 = vld [vmem:[#allocation64_spill] sm:$0xff] }
 0x401   :  { %v2489_v3 = vpop.f32.mrf.mxu0  ;;  %v2580_v24 = vpop.f32.mrf.mxu1 }
 0x402   :  { %v2490_v17 = vadd.f32 %v2489_v3, %v6082_v41  ;;  %v2581_v45 = vadd.f32 %v2580_v24, %v6080_v36 }
 0x403   :  { %v2491_v0 = vpop.f32.mrf.mxu0  ;;  %v2738_v34 = vpop.f32.mrf.mxu1 }
 0x404   :  { %v2492_v39 = vadd.f32 %v2491_v0, %v6084_v48  ;;  %v6141_v25 = vadd.f32 %v2738_v34, %v6086_v32  ;;  %v6788_v0 = vld [vmem:[#allocation24_spill] sm:$0xff]  ;;  %v6794_v48 = vld [vmem:[#allocation59_spill] sm:$0xff] }
 0x405   :  { %v2649_v29 = vpop.f32.mrf.mxu0  ;;  %v2740_v16 = vpop.f32.mrf.mxu1 }
 0x406   :  { %v6144_v21 = vadd.f32 %v2649_v29, %v6088_v52  ;;  %v6147_v18 = vadd.f32 %v2740_v16, %v6786_v15  ;;  %v6791_v29 = vld [vmem:[#allocation22_spill] sm:$0xff]  ;;  %v6792_v16 = vld [vmem:[#allocation65_spill] sm:$0xff] }
 0x407   :  { %v2651_v7 = vpop.f32.mrf.mxu0 }
 0x408   :  { %v2744_v53 = vpop.f32.mrf.mxu1  ;;  %v6150_v3 = vadd.f32 %v2651_v7, %v6787_v54  ;;  %v6793_v7 = vld [vmem:[#allocation31_spill] sm:$0xff] }
 0x409   :  { %v6153_v4 = vadd.f32 %v2744_v53, %v6788_v0  ;;  %v6189_v0 = vpop.permute.xlu1 %3170 }
 0x40a   :  { %v2746_v38 = vpop.f32.mrf.mxu1 }
 0x40b   :  { %v2655_v20 = vpop.f32.mrf.mxu0  ;;  %v6159_v34 = vadd.f32 %v2746_v38, %v6790_v62  ;;  %v6796_v38 = vld [vmem:[#allocation60_spill] sm:$0xff] }
 0x40c   :  { %v6156_v61 = vadd.f32 %v2655_v20, %v6789_v37  ;;  %v6795_v20 = vld [vmem:[#allocation23_spill] sm:$0xff] }
 0x40d   :  { %v2657_v28 = vpop.f32.mrf.mxu0  ;;  %v2750_v49 = vpop.f32.mrf.mxu1 }
 0x40e   :  { %v6162_v19 = vadd.f32 %v2657_v28, %v6791_v29  ;;  %v6165_v22 = vadd.f32 %v2750_v49, %v6792_v16 }
 0x40f   :  { %v2661_v13 = vpop.f32.mrf.mxu0  ;;  %v2752_v14 = vpop.f32.mrf.mxu1 }
 0x410   :  { %v6168_v51 = vadd.f32 %v2661_v13, %v6793_v7  ;;  %v6171_v32 = vadd.f32 %v2752_v14, %v6794_v48 }
 0x411   :  { %v2663_v43 = vpop.f32.mrf.mxu0  ;;  %v2756_v56 = vpop.f32.mrf.mxu1 }
 0x412   :  { %v6174_v52 = vadd.f32 %v2663_v43, %v6795_v20 }
 0x413   :  { %v2667_v55 = vpop.f32.mrf.mxu0  ;;  %v2758_v2 = vpop.f32.mrf.mxu1 }
 0x415   :  { %v2669_v26 = vpop.f32.mrf.mxu0  ;;  %v2932_v33 = vpop.f32.mrf.mxu1 }
 0x416   :  { %v3135_v6 = vadd.f32 %v2932_v33, %v2561_v10  ;;  %v6797_v10 = vld [vmem:[#allocation19_spill] sm:$0xff] }
 0x417   :  { %v2843_v58 = vpop.f32.mrf.mxu0  ;;  %v2934_v63 = vpop.f32.mrf.mxu1  ;;  %v6181_v49 = vadd.f32 %v2667_v55, %v6797_v10 }
 0x418   :  { %v3136_v8 = vadd.f32 %v2934_v63, %v2563_v23  ;;  %v3133_v36 = vadd.f32 %v2843_v58, %v2472_v46  ;;  %v6177_v23 = vadd.f32 %v2756_v56, %v6796_v38  ;;  %v3183_v28 = vadd.f32 %v6138_v50, %v3135_v6  ;;  %v6798_v63 = vld [vmem:[#allocation34_spill] sm:$0xff]  ;;  %v6799_v46 = vld [vmem:[#allocation67_spill] sm:$0xff] }
 0x419   :  { %v2845_v35 = vpop.f32.mrf.mxu0  ;;  %v2938_v30 = vpop.f32.mrf.mxu1  ;;  %v6184_v13 = vadd.f32 %v2758_v2, %v6798_v63  ;;  %v6187_v58 = vadd.f32 %v2669_v26, %v6799_v46  ;;  %v6803_v38 = vld [vmem:[#allocation74_spill] sm:$0xff] }
 0x41a   :  { %v3134_v54 = vadd.f32 %v2845_v35, %v2474_v5  ;;  %v3143_v43 = vadd.f32 %v2938_v30, %v2567_v60  ;;  %v3184_v37 = vadd.f32 %v6138_v50, %v3136_v8  ;;  %v3181_v2 = vadd.f32 %v6138_v50, %v3133_v36  ;;  %v6801_v60 = vld [vmem:[#allocation20_spill] sm:$0xff]  ;;  %v6804_v46 = vld [vmem:[#allocation18_spill] sm:$0xff] }
 0x41b   :  { %v2849_v12 = vpop.f32.mrf.mxu0  ;;  %v2940_v1 = vpop.f32.mrf.mxu1  ;;  %v6802_v36 = vld [vmem:[#allocation40_spill] sm:$0xff] }
 0x41c   :  { %v3144_v56 = vadd.f32 %v2940_v1, %v2569_v47  ;;  %v3141_v7 = vadd.f32 %v2849_v12, %v2478_v59  ;;  %v3191_v59 = vadd.f32 %v6189_v0, %v3143_v43 }
 0x41d   :  { %v2851_v24 = vpop.f32.mrf.mxu0  ;;  %v2944_v44 = vpop.f32.mrf.mxu1 }
 0x41e   :  { %v3151_v6 = vadd.f32 %v2944_v44, %v2573_v57  ;;  %v3142_v35 = vadd.f32 %v2851_v24, %v2480_v27 }
 0x41f   :  { %v2855_v41 = vpop.f32.mrf.mxu0  ;;  %v2946_v53 = vpop.f32.mrf.mxu1 }
 0x420   :  { %v3152_v33 = vadd.f32 %v2946_v53, %v2575_v42  ;;  %v3149_v26 = vadd.f32 %v2855_v41, %v2484_v31  ;;  %v6800_v42 = vld [vmem:[#allocation73_spill] sm:$0xff]  ;;  %v3182_v31 = vadd.f32 %v6138_v50, %v3134_v54  ;;  %v3199_v12 = vadd.f32 %v6136_v9, %v3151_v6  ;;  %v6806_v54 = vld [vmem:[#allocation71_spill] sm:$0xff]  ;;  %v6807_v6 = vld [vmem:[#allocation68_spill] sm:$0xff] }
 0x421   :  { %v2857_v14 = vpop.f32.mrf.mxu0  ;;  %v2950_v15 = vpop.f32.mrf.mxu1  ;;  %v6194_v53 = vadd.f32 %v3183_v28, %v6800_v42  ;;  %v3190_v28 = vadd.f32 %v6189_v0, %v3142_v35  ;;  %v6215_v43 = vadd.f32 %v3181_v2, %v6806_v54  ;;  %v6811_v35 = vld [vmem:[#allocation55_spill] sm:$0xff] }
 0x422   :  { %v3150_v62 = vadd.f32 %v2857_v14, %v2486_v11  ;;  %v3159_v29 = vadd.f32 %v2950_v15, %v2579_v40  ;;  %v3200_v30 = vadd.f32 %v6136_v9, %v3152_v33  ;;  %v3192_v11 = vadd.f32 %v6189_v0, %v3144_v56  ;;  %v6805_v14 = vld [vmem:[#allocation14_spill] sm:$0xff] }
 0x423   :  { %v2861_v55 = vpop.f32.mrf.mxu0  ;;  %v2952_v16 = vpop.f32.mrf.mxu1  ;;  %v3189_v56 = vadd.f32 %v6189_v0, %v3141_v7 }
 0x424   :  { %v3157_v48 = vadd.f32 %v2861_v55, %v2490_v17  ;;  %v3207_v47 = vadd.f32 %v6801_v60, %v3159_v29  ;;  %v3160_v1 = vadd.f32 %v2952_v16, %v2581_v45  ;;  %v3198_v27 = vadd.f32 %v6136_v9, %v3150_v62  ;;  %v6808_v55 = vld [vmem:[#allocation76_spill] sm:$0xff]  ;;  %v6809_v16 = vld [vmem:[#allocation77_spill] sm:$0xff] }
 0x425   :  { %v2863_v5 = vpop.f32.mrf.mxu0  ;;  %v3110_v57 = vpop.f32.mrf.mxu1  ;;  %v3197_v45 = vadd.f32 %v6136_v9, %v3149_v26  ;;  %v3232_v15 = vadd.f32 %v3200_v30, %v6805_v14  ;;  %v3224_v29 = vadd.f32 %v3192_v11, %v6808_v55  ;;  %v6810_v26 = vld [vmem:[#allocation16_spill] sm:$0xff]  ;;  %v6814_v14 = vld [vmem:[#allocation17_spill] sm:$0xff] }
 0x426   :  { %v3205_v40 = vadd.f32 %v6801_v60, %v3157_v48  ;;  %v3158_v44 = vadd.f32 %v2863_v5, %v2492_v39  ;;  %v3208_v17 = vadd.f32 %v6801_v60, %v3160_v1  ;;  %v3239_v41 = vadd.f32 %v3207_v47, %v6802_v36 }
 0x427   :  { %v3021_v24 = vpop.f32.mrf.mxu0  ;;  %v3112_v8 = vpop.f32.mrf.mxu1  ;;  %v6209_v39 = vadd.f32 %v3184_v37, %v6803_v38  ;;  %v3223_v37 = vadd.f32 %v3191_v59, %v6809_v16  ;;  %v3231_v48 = vadd.f32 %v3199_v12, %v6810_v26  ;;  %v3139_v7 = vadd.f32 %v3110_v57, %v6141_v25 }
 0x428   :  { %v3206_v20 = vadd.f32 %v6801_v60, %v3158_v44  ;;  %v3240_v33 = vadd.f32 %v3208_v17, %v6804_v46  ;;  %v3237_v62 = vadd.f32 %v3205_v40, %v6807_v6  ;;  %v6812_v44 = vld [vmem:[#allocation15_spill] sm:$0xff]  ;;  %v6813_v17 = vld [vmem:[#allocation78_spill] sm:$0xff]  ;;  %v3271_v36 = vmax.f32 %v3239_v41, 0.0 }
 0x429   :  { %v3023_v10 = vpop.f32.mrf.mxu0  ;;  %v3116_v63 = vpop.f32.mrf.mxu1  ;;  %v3230_v30 = vadd.f32 %v3198_v27, %v6812_v44  ;;  %v3229_v2 = vadd.f32 %v3197_v45, %v6813_v17  ;;  %v3247_v40 = vmax.f32 %v6194_v53, 0.0  ;;  %v3140_v11 = vadd.f32 %v3112_v8, %v6147_v18  ;;  %v6816_v27 = vld [vmem:[#allocation72_spill] sm:$0xff] }
 0x42a   :  { %v3238_v47 = vadd.f32 %v3206_v20, %v6811_v35  ;;  %v3272_v5 = vmax.f32 %v3240_v33, 0.0  ;;  %v3264_v12 = vmax.f32 %v3232_v15, 0.0  ;;  %v3222_v20 = vadd.f32 %v3190_v28, %v6814_v14  ;;  %v6815_v33 = vld [vmem:[#allocation75_spill] sm:$0xff] }
 0x42b   :  { %v3027_v42 = vpop.f32.mrf.mxu0  ;;  %v3118_v1 = vpop.f32.mrf.mxu1  ;;  %v3221_v54 = vadd.f32 %v3189_v56, %v6815_v33  ;;  %v3269_v6 = vmax.f32 %v3237_v62, 0.0  ;;  %v3214_v45 = vadd.f32 %v3182_v31, %v6816_v27  ;;  %v3248_v41 = vmax.f32 %v6209_v39, 0.0  ;;  %v6825_v33 = vld [vmem:[#allocation70_spill] sm:$0xff] }
 0x42c   :  { %v3270_v59 = vmax.f32 %v3238_v47, 0.0  ;;  %3379 = vmatprep.subr.mxu1 %v3272_v5  ;;  %v3263_v25 = vmax.f32 %v3231_v48, 0.0  ;;  %v3262_v57 = vmax.f32 %v3230_v30, 0.0  ;;  %v3256_v18 = vmax.f32 %v3224_v29, 0.0 }
 0x42d   :  { %v3029_v38 = vpop.f32.mrf.mxu0  ;;  %v3122_v46 = vpop.f32.mrf.mxu1  ;;  %3380 = vmatpush1.msra.mxu1 %v3271_v36  ;;  %v3255_v55 = vmax.f32 %v3223_v37, 0.0  ;;  %v3261_v15 = vmax.f32 %v3229_v2, 0.0  ;;  %v3137_v16 = vadd.f32 %v3021_v24, %v6144_v21  ;;  %v6234_v28 = vadd.f32 %v6138_v50, %v3139_v7  ;;  %v6821_v7 = vld [vmem:[#allocation62_spill] sm:$0xff] }
 0x42e   :  { %3308 = vmatprep.subr.mxu0 %v3270_v59  ;;  %3381 = vmatprep.subr.mxu1 %v3264_v12  ;;  %v3155_v56 = vadd.f32 %v3122_v46, %v6165_v22  ;;  %v3138_v31 = vadd.f32 %v3023_v10, %v6150_v3  ;;  %v6239_v39 = vadd.f32 %v6138_v50, %v3140_v11  ;;  %v3254_v29 = vmax.f32 %v3222_v20, 0.0  ;;  %v6822_v11 = vld [vmem:[#allocation29_spill] sm:$0xff]  ;;  %v6823_v59 = vld [vmem:[#allocation58_spill] sm:$0xff] }
 0x42f   :  { %v3033_v53 = vpop.f32.mrf.mxu0  ;;  %v3124_v8 = vpop.f32.mrf.mxu1  ;;  %3309 = vmatpush1.msra.mxu0 %v3269_v6  ;;  %3382 = vmatpush1.msra.mxu1 %v3263_v25  ;;  %v3253_v48 = vmax.f32 %v3221_v54, 0.0  ;;  %v3145_v21 = vadd.f32 %v3027_v42, %v6156_v61  ;;  %v3147_v24 = vadd.f32 %v3116_v63, %v6153_v4  ;;  %v3148_v22 = vadd.f32 %v3118_v1, %v6159_v34  ;;  %v6824_v46 = vld [vmem:[#allocation37_spill] sm:$0xff]  ;;  %v6826_v6 = vld [vmem:[#allocation26_spill] sm:$0xff] }
 0x430   :  { %3310 = vmatprep.subr.mxu0 %v3262_v57  ;;  %v3156_v37 = vadd.f32 %v3124_v8, %v6171_v32  ;;  %3383 = vmatprep.subr.mxu1 %v3256_v18  ;;  %v3153_v3 = vadd.f32 %v3033_v53, %v6168_v51  ;;  %v3246_v47 = vmax.f32 %v3214_v45, 0.0  ;;  %v3146_v44 = vadd.f32 %v3029_v38, %v6162_v19  ;;  %v6827_v45 = vld [vmem:[#allocation57_spill] sm:$0xff]  ;;  %v6830_v8 = vld [vmem:[#allocation39_spill] sm:$0xff] }
 0x431   :  { %v3035_v62 = vpop.f32.mrf.mxu0  ;;  %v3128_v26 = vpop.f32.mrf.mxu1  ;;  %3311 = vmatpush1.msra.mxu0 %v3261_v15  ;;  %3384 = vmatpush1.msra.mxu1 %v3255_v55  ;;  %v3203_v61 = vadd.f32 %v6136_v9, %v3155_v56  ;;  %v3196_v30 = vadd.f32 %v6189_v0, %v3148_v22  ;;  %v3195_v36 = vadd.f32 %v6189_v0, %v3147_v24  ;;  %v6828_v25 = vld [vmem:[#allocation13_spill] sm:$0xff]  ;;  %v6835_v22 = vld [vmem:[#allocation63_spill] sm:$0xff] }
 0x432   :  { %v3154_v35 = vadd.f32 %v3035_v62, %v6174_v52  ;;  %3312 = vmatprep.subr.mxu0 %v3254_v29  ;;  %v3163_v32 = vadd.f32 %v3128_v26, %v6177_v23  ;;  %3385 = vmatprep.subr.mxu1 %v3248_v41  ;;  %v3245_v52 = vmax.f32 %v6215_v43, 0.0  ;;  %v3204_v51 = vadd.f32 %v6136_v9, %v3156_v37  ;;  %v6831_v62 = vld [vmem:[#allocation56_spill] sm:$0xff] }
 0x433   :  { %v3039_v10 = vpop.f32.mrf.mxu0  ;;  %v3130_v5 = vpop.f32.mrf.mxu1  ;;  %3313 = vmatpush1.msra.mxu0 %v3253_v48  ;;  %3386 = vmatpush1.msra.mxu1 %v3247_v40  ;;  %v3201_v43 = vadd.f32 %v6136_v9, %v3153_v3  ;;  %v3194_v2 = vadd.f32 %v6189_v0, %v3146_v44  ;;  %v3186_v20 = vadd.f32 %v6138_v50, %v3138_v31  ;;  %v6832_v31 = vld [vmem:[#allocation12_spill] sm:$0xff] }
 0x434   :  { %v3161_v4 = vadd.f32 %v3039_v10, %v6181_v49  ;;  %3314 = vmatprep.subr.mxu0 %v3246_v47  ;;  %v3211_v63 = vadd.f32 %v6801_v60, %v3163_v32  ;;  %v3164_v23 = vadd.f32 %v3130_v5, %v6184_v13  ;;  %v3202_v42 = vadd.f32 %v6136_v9, %v3154_v35  ;;  %v6817_v49 = vld [vmem:[#allocation53_spill] sm:$0xff] }
 0x435   :  { %v3041_v34 = vpop.f32.mrf.mxu0  ;;  %3315 = vmatpush1.msra.mxu0 %v3245_v52  ;;  %3740 = vmatmul.mubr.msk.f32.vlgmr.msra.gmra.mxu1 %vm6818_vm7, %v6817_v49  ;;  %v6820_v13 = vmov 0.0   ;;  %v3193_v9 = vadd.f32 %v6189_v0, %v3145_v21  ;;  %v3236_v14 = vadd.f32 %v3204_v51, %v6824_v46  ;;  %v3235_v54 = vadd.f32 %v3203_v61, %v6825_v33  ;;  %v6829_v0 = vld [vmem:[#allocation69_spill] sm:$0xff] }
 0x436   :  { %v3209_v19 = vadd.f32 %v6801_v60, %v3161_v4  ;;  %v3162_v1 = vadd.f32 %v3041_v34, %v6187_v58  ;;  %v3212_v17 = vadd.f32 %v6801_v60, %v3164_v23  ;;  %3739 = vmatmul.mubr.msk.f32.vlgmr.msra.gmra.mxu0 %vm6819_vm9, %v6817_v49  ;;  %3561 = vmatprep.mubr.f32.mxu1 %v6820_v13  ;;  %v6833_v21 = vld [vmem:[#allocation61_spill] sm:$0xff] }
 0x437   :  { %v3243_v40 = vadd.f32 %v3211_v63, %v6821_v7  ;;  %3490 = vmatprep.mubr.f32.mxu0 %v6820_v13  ;;  %v3185_v41 = vadd.f32 %v6138_v50, %v3137_v16  ;;  %v3233_v53 = vadd.f32 %v3201_v43, %v6828_v25  ;;  %v3228_v18 = vadd.f32 %v3196_v30, %v6829_v0  ;;  %v6834_v50 = vld [vmem:[#allocation27_spill] sm:$0xff]  ;;  %v6836_v47 = vld [vmem:[#allocation33_spill] sm:$0xff] }
 0x438   :  { %v3210_v58 = vadd.f32 %v6801_v60, %v3162_v1  ;;  %v3241_v38 = vadd.f32 %v3209_v19, %v6822_v11  ;;  %v3244_v12 = vadd.f32 %v3212_v17, %v6823_v59  ;;  %v3234_v60 = vadd.f32 %v3202_v42, %v6827_v45  ;;  %v3280_v1 = vpop.permute.xlu1 %3279 }
 0x439   :  { %v3227_v55 = vadd.f32 %v3195_v36, %v6830_v8  ;;  %v3275_v15 = vmax.f32 %v3243_v40, 0.0  ;;  %v3226_v29 = vadd.f32 %v3194_v2, %v6831_v62  ;;  %v3225_v37 = vadd.f32 %v3193_v9, %v6832_v31  ;;  %v6839_v40 = vld [vmem:[#allocation11_spill] sm:$0xff] }
 0x43a   :  { %v3242_v27 = vadd.f32 %v3210_v58, %v6826_v6  ;;  %v3276_v57 = vmax.f32 %v3244_v12, 0.0  ;;  %v3273_v26 = vmax.f32 %v3241_v38, 0.0  ;;  %v3268_v48 = vmax.f32 %v3236_v14, 0.0 }
 0x43b   :  { %v3220_v24 = vadd.f32 %v6239_v39, %v6833_v21  ;;  %v3219_v16 = vadd.f32 %v6234_v28, %v6834_v50  ;;  %v3267_v35 = vmax.f32 %v3235_v54, 0.0  ;;  %v3266_v3 = vmax.f32 %v3234_v60, 0.0 }
 0x43c   :  { %v3274_v56 = vmax.f32 %v3242_v27, 0.0  ;;  %3521 = vmatprep.subr.mxu1 %v3276_v57  ;;  %v3218_v10 = vadd.f32 %v3186_v20, %v6835_v22  ;;  %v3217_v32 = vadd.f32 %v3185_v41, %v6836_v47  ;;  %v3265_v5 = vmax.f32 %v3233_v53, 0.0 }
 0x43d   :  { %3522 = vmatpush1.msra.mxu1 %v3275_v15  ;;  %v3260_v44 = vmax.f32 %v3228_v18, 0.0  ;;  %v3259_v61 = vmax.f32 %v3227_v55, 0.0  ;;  %v3258_v4 = vmax.f32 %v3226_v29, 0.0  ;;  %v3257_v39 = vmax.f32 %v3225_v37, 0.0 }
 0x43e   :  { %3450 = vmatprep.subr.mxu0 %v3274_v56  ;;  %3523 = vmatprep.subr.mxu1 %v3268_v48  ;;  %v3252_v28 = vmax.f32 %v3220_v24, 0.0  ;;  %v3251_v52 = vmax.f32 %v3219_v16, 0.0  ;;  %v3250_v51 = vmax.f32 %v3218_v10, 0.0  ;;  %v3249_v34 = vmax.f32 %v3217_v32, 0.0 }
 0x43f   :  { %3451 = vmatpush1.msra.mxu0 %v3273_v26  ;;  %3524 = vmatpush1.msra.mxu1 %v3267_v35  ;;  %v3854_v42 = vmov 1966171168  }
 0x440   :  { %3452 = vmatprep.subr.mxu0 %v3266_v3  ;;  %3525 = vmatprep.subr.mxu1 %v3260_v44  ;;  %v3581_v19 = vunpack.c.l.s4 %v3854_v42 }
 0x441   :  { %3453 = vmatpush1.msra.mxu0 %v3265_v5  ;;  %3526 = vmatpush1.msra.mxu1 %v3259_v61 }
 0x442   :  { %3454 = vmatprep.subr.mxu0 %v3258_v4  ;;  %3527 = vmatprep.subr.mxu1 %v3252_v28  ;;  %v3582_v17 = vunpack.c.0.s8 %v3581_v19 }
 0x443   :  { %3455 = vmatpush1.msra.mxu0 %v3257_v39  ;;  %3528 = vmatpush1.msra.mxu1 %v3251_v52 }
 0x444   :  { %3456 = vmatprep.subr.mxu0 %v3250_v51  ;;  %3742 = vmatmul.mubr.msk.f32.vlgmr.msra.gmra.mxu1 %vm6837_vm0, %v6817_v49  ;;  %v3585_v9 = vsub.s32 %v3582_v17, %v6839_v40 }
 0x445   :  { %3457 = vmatpush1.msra.mxu0 %v3249_v34 }
 0x446   :  { %3741 = vmatmul.mubr.msk.f32.vlgmr.msra.gmra.mxu0 %vm6838_vm2, %v6817_v49 }
 0x4f5   :  { %v3421_v23 = vpop.f32.mrf.mxu1 }
 0x4f6   :  { %v3350_v63 = vpop.f32.mrf.mxu0  ;;  %v3422_v36 = vadd.f32 %v3421_v23, %v3280_v1 }
 0x4f7   :  { %v3423_v30 = vpop.f32.mrf.mxu1  ;;  %v3351_v13 = vadd.f32 %v3350_v63, %v3280_v1 }
 0x4f8   :  { %v3352_v43 = vpop.f32.mrf.mxu0  ;;  %v3424_v58 = vadd.f32 %v3423_v30, %v3280_v1 }
 0x4f9   :  { %v3353_v2 = vadd.f32 %v3352_v43, %v3280_v1 }
 0x4fa   :  { %v3577_v38 = vcombine.low %v3422_v36, %v3424_v58 }
 0x4fb   :  { %v3576_v11 = vcombine.low %v3351_v13, %v3353_v2 }
 0x4fc   :  { %v3593_v6 = vrot.slane %v3577_v38, %v3585_v9 }
 0x4fd   :  { %v3586_v54 = vrot.slane %v3576_v11, %v3585_v9 }
 0x4ff   :  { %v3608_v25 = vcombine.low %v3586_v54, %v3593_v6 }
 0x501   :  { %v3616_v57 = vrot.slane %v3608_v25, %v3585_v9 }
 0x504   :  { %v3563_v7 = vpop.f32.mrf.mxu1 }
 0x505   :  { %v3564_v46 = vadd.f32 %v3563_v7, %v3280_v1 }
 0x506   :  { %v3492_v59 = vpop.f32.mrf.mxu0  ;;  %v3565_v49 = vpop.f32.mrf.mxu1 }
 0x507   :  { %v3493_v12 = vadd.f32 %v3492_v59, %v3280_v1  ;;  %v3566_v20 = vadd.f32 %v3565_v49, %v3280_v1 }
 0x508   :  { %v3494_v14 = vpop.f32.mrf.mxu0 }
 0x509   :  { %v3495_v33 = vadd.f32 %v3494_v14, %v3280_v1  ;;  %v3579_v27 = vcombine.low %v3564_v46, %v3566_v20 }
 0x50b   :  { %v3578_v45 = vcombine.low %v3493_v12, %v3495_v33  ;;  %v3607_v60 = vrot.slane %v3579_v27, %v3585_v9 }
 0x50d   :  { %v3600_v41 = vrot.slane %v3578_v45, %v3585_v9 }
 0x50f   :  { %v3609_v53 = vcombine.low %v3600_v41, %v3607_v60 }
 0x511   :  { %v3623_v0 = vrot.slane %v3609_v53, %v3585_v9 }
 0x513   :  { %v3624_v18 = vcombine.low %v3616_v57, %v3623_v0 }
 0x515   :  { %3626 = vst [vmem:[#allocation7] sm:$0xff] %v3624_v18 }
 0x516   :  { %3825 = shalt.err (!%p3822_p0)
}
 0x517   :  { %3636 = dma.vmem_to_hbm [thread:$0]  %s3634_s24, 128, %s6301_s2, [#allocation4]  }
 0x518   :  { %3838 = dma.done.wait [#allocation4], 128  }
 0x519   :  { %3839 = vsyncadd [#allocation4], 4294967168 }
 0x51a   :  { %3640 = vsyncpa [#allocation3], 1 }
 0x51b   :  { %3641 = vsyncpa [#allocation6], 1 }
 0x51c   :  { %3642 = vsyncpa [#allocation4], 1 }

</bundles_post_ra>
